<compile_context>
chip_gen: v7x
topology: tpu7x:2x2x1
jax: 0.10.0
libtpu: 0.0.40
codegen_flags: <defaults>
</compile_context>

<pallas_src>
import math

import jax
import jax.numpy as jnp
from jax.experimental import pallas as pl
from jax.experimental.pallas import tpu as pltpu

# ----- model hyper-params (small, consistent with the module's structure) -----
D_MODEL = 32
N_HEADS = 4
D_HEAD = D_MODEL // N_HEADS
D_FF = 64
N_LAYERS = 2
SRC_VOCAB = 16
TGT_VOCAB = 16
MAX_LEN = 64
EPS = 1e-6


# ============================ fused Pallas kernel =============================

def _encdec_kernel(
    # per-batch data (blocked on the batch grid axis)
    src_oh_ref, tgt_oh_ref, src_mask_ref, tgt_mask_ref,
    # shared (replicated) data
    pe_src_ref, pe_tgt_ref, src_emb_ref, tgt_emb_ref,
    # encoder per-layer stacks (leading dim = layer)
    e_wqkv_ref, e_bqkv_ref, e_wo_ref, e_bo_ref,
    e_w1_ref, e_b1_ref, e_w2_ref, e_b2_ref,
    e_n1g_ref, e_n1b_ref, e_n2g_ref, e_n2b_ref,
    enc_ng_ref, enc_nb_ref,
    # decoder per-layer stacks
    d_sa_wqkv_ref, d_sa_bqkv_ref, d_sa_wo_ref, d_sa_bo_ref,
    d_ca_wqkv_ref, d_ca_bqkv_ref, d_ca_wo_ref, d_ca_bo_ref,
    d_w1_ref, d_b1_ref, d_w2_ref, d_b2_ref,
    d_n1g_ref, d_n1b_ref, d_n2g_ref, d_n2b_ref, d_n3g_ref, d_n3b_ref,
    dec_ng_ref, dec_nb_ref,
    # output
    out_ref):
  f32 = jnp.float32
  bf16 = jnp.bfloat16
  inv_sqrt_dk = 1.0 / math.sqrt(D_HEAD)

  def layer_norm(x, g, b):
    # Annotated-Transformer LayerNorm: a2*(x-mean)/(std+eps)+b2, unbiased std.
    mean = jnp.mean(x, axis=-1, keepdims=True)
    c = x - mean
    var = jnp.sum(c * c, axis=-1, keepdims=True) * (1.0 / (D_MODEL - 1))
    inv = pl.reciprocal(jnp.sqrt(var) + EPS, approx=True)
    return g * c * inv + b

  def feed_forward(x, w1, b1, w2, b2):
    h = jnp.maximum(
        jnp.dot(x.astype(bf16), w1, preferred_element_type=f32) + b1, 0.0)
    return jnp.dot(h.astype(bf16), w2, preferred_element_type=f32) + b2

  def split_heads(x):
    # (S, D) -> (H, S, d_head): stack once, then all heads share one batched
    # dot_general + one softmax block (instead of a 4x-unrolled head loop).
    return jnp.stack(
        [x[:, h * D_HEAD:(h + 1) * D_HEAD] for h in range(N_HEADS)], axis=0)

  def mha(q_in, kv_in, maskb, wqkv, bqkv, wo, bo, self_attn):
    # q_in: (Sq, D), kv_in: (Sk, D); maskb: bool (1, Sk) or (Sq, Sk).
    if self_attn:
      qkv = jnp.dot(q_in.astype(bf16), wqkv,
                    preferred_element_type=f32) + bqkv          # (Sq, 3D)
      q = qkv[:, :D_MODEL]
      k = qkv[:, D_MODEL:2 * D_MODEL]
      v = qkv[:, 2 * D_MODEL:]
    else:
      q = (jnp.dot(q_in.astype(bf16), wqkv[:, :D_MODEL],
                   preferred_element_type=f32) + bqkv[:, :D_MODEL])
      kv = (jnp.dot(kv_in.astype(bf16), wqkv[:, D_MODEL:],
                    preferred_element_type=f32) + bqkv[:, D_MODEL:])
      k = kv[:, :D_MODEL]
      v = kv[:, D_MODEL:]

    q3, k3, v3 = split_heads(q), split_heads(k), split_heads(v)  # (H, S, dk)

    # scores for all heads in one leading-batch dot_general (contract last dims)
    s = jax.lax.dot_general(q3, k3, (((2,), (2,)), ((0,), (0,))),
                            preferred_element_type=f32) * inv_sqrt_dk
    s = jnp.where(jnp.broadcast_to(maskb[None], s.shape), s, -1e9)
    s = s - jnp.max(s, axis=-1, keepdims=True)
    p = jnp.exp(s)
    p = p * pl.reciprocal(jnp.sum(p, axis=-1, keepdims=True), approx=True)

    # PV for all heads in one batched dot_general -> (H, Sq, dk)
    o3 = jax.lax.dot_general(p, v3, (((2,), (1,)), ((0,), (0,))),
                             preferred_element_type=f32)
    # head merge + output projection as ONE (Sq, D) @ (D, D) matmul
    merged = jnp.concatenate([o3[h] for h in range(N_HEADS)], axis=-1)
    return jnp.dot(merged.astype(bf16), wo, preferred_element_type=f32) + bo

  # mask compare hoisted: done once per kernel, reused by every layer
  enc_maskb = src_mask_ref[0] > 0.0        # (1, Ss)  — padding mask
  tgt_maskb = tgt_mask_ref[0] > 0.0        # (St, St) — causal/padding mask

  # ----------------------------- encode -----------------------------
  # embedding (one-hot @ table) * sqrt(d_model) + positional encoding
  # TODO(synk): replace the one-hot matmul with a gather once vocab > ~128.
  x = (jnp.dot(src_oh_ref[...], src_emb_ref[...], preferred_element_type=f32)
       * math.sqrt(D_MODEL) + pe_src_ref[...])
  for l in range(N_LAYERS):
    xn = layer_norm(x, e_n1g_ref[l], e_n1b_ref[l])
    x = x + mha(xn, xn, enc_maskb, e_wqkv_ref[l], e_bqkv_ref[l],
                e_wo_ref[l], e_bo_ref[l], self_attn=True)
    xn = layer_norm(x, e_n2g_ref[l], e_n2b_ref[l])
    x = x + feed_forward(xn, e_w1_ref[l], e_b1_ref[l], e_w2_ref[l], e_b2_ref[l])
  memory = layer_norm(x, enc_ng_ref[...], enc_nb_ref[...])

  # ----------------------------- decode -----------------------------
  y = (jnp.dot(tgt_oh_ref[...], tgt_emb_ref[...], preferred_element_type=f32)
       * math.sqrt(D_MODEL) + pe_tgt_ref[...])
  for l in range(N_LAYERS):
    yn = layer_norm(y, d_n1g_ref[l], d_n1b_ref[l])
    y = y + mha(yn, yn, tgt_maskb, d_sa_wqkv_ref[l], d_sa_bqkv_ref[l],
                d_sa_wo_ref[l], d_sa_bo_ref[l], self_attn=True)
    yn = layer_norm(y, d_n2g_ref[l], d_n2b_ref[l])
    y = y + mha(yn, memory, enc_maskb, d_ca_wqkv_ref[l], d_ca_bqkv_ref[l],
                d_ca_wo_ref[l], d_ca_bo_ref[l], self_attn=False)
    yn = layer_norm(y, d_n3g_ref[l], d_n3b_ref[l])
    y = y + feed_forward(yn, d_w1_ref[l], d_b1_ref[l], d_w2_ref[l], d_b2_ref[l])

  out_ref[...] = layer_norm(y, dec_ng_ref[...], dec_nb_ref[...]).astype(out_ref.dtype)


# ============================ JAX wrapper =====================================

def _replicated_spec(shape):
  nd = len(shape)
  return pl.BlockSpec(shape, lambda b, _nd=nd: (0,) * _nd)


@jax.jit
def encoder_decoder_forward(params, source, target, source_mask, target_mask):
  B, Ss = source.shape
  _, St = target.shape

  # TODO(synk): data-dependent embedding gather is expressed as a one-hot
  # (plain XLA) + in-kernel matmul; fine at V=16, switch to gather for real vocab.
  src_oh = jax.nn.one_hot(source, SRC_VOCAB, dtype=jnp.float32).reshape(B * Ss, SRC_VOCAB)
  tgt_oh = jax.nn.one_hot(target, TGT_VOCAB, dtype=jnp.float32).reshape(B * St, TGT_VOCAB)

  pe = params["pe"]
  pe_src = pe[:Ss]                                        # (Ss, D) — untiled
  pe_tgt = pe[:St]                                        # (St, D) — untiled

  # masks stay per-batch and un-broadcast; in-kernel jnp.where broadcasts them
  src_m = jnp.asarray(source_mask, jnp.float32).reshape(B, 1, Ss)
  tgt_m = jnp.asarray(target_mask, jnp.float32).reshape(B, St, St)

  batched = [
      (src_oh, pl.BlockSpec((Ss, SRC_VOCAB), lambda b: (b, 0))),
      (tgt_oh, pl.BlockSpec((St, TGT_VOCAB), lambda b: (b, 0))),
      (src_m, pl.BlockSpec((1, 1, Ss), lambda b: (b, 0, 0))),
      (tgt_m, pl.BlockSpec((1, St, St), lambda b: (b, 0, 0))),
  ]
  shared = [pe_src, pe_tgt, params["src_emb"], params["tgt_emb"],
            *params["enc_stack"], params["enc_norm_g"], params["enc_norm_b"],
            *params["dec_stack"], params["dec_norm_g"], params["dec_norm_b"]]

  inputs = [a for a, _ in batched] + shared
  in_specs = [s for _, s in batched] + [_replicated_spec(a.shape) for a in shared]

  out = pl.pallas_call(
      _encdec_kernel,
      out_shape=jax.ShapeDtypeStruct((B * St, D_MODEL), jnp.float32),
      grid=(B,),
      in_specs=in_specs,
      out_specs=pl.BlockSpec((St, D_MODEL), lambda b: (b, 0)),
      compiler_params=pltpu.CompilerParams(
          dimension_semantics=("parallel",),
          vmem_limit_bytes=32 * 1024 * 1024),
  )(*inputs)
  return out.reshape(B, St, D_MODEL)


# ============================ deterministic init =============================

def positional_encoding(max_len, d_model):
  pos = jnp.arange(max_len, dtype=jnp.float32)[:, None]
  div = jnp.exp(jnp.arange(0, d_model, 2, dtype=jnp.float32)
                * (-math.log(10000.0) / d_model))
  pe = jnp.zeros((max_len, d_model), jnp.float32)
  pe = pe.at[:, 0::2].set(jnp.sin(pos * div))
  pe = pe.at[:, 1::2].set(jnp.cos(pos * div))
  return pe


def init_params(key):
  keys = iter(jax.random.split(key, 512))

  def w(shape, scale=0.05, dtype=jnp.bfloat16):       # weights stored in bf16
    return (scale * jax.random.normal(next(keys), shape)).astype(dtype)

  def zeros(shape):
    return jnp.zeros(shape, jnp.float32)

  def ones(shape):
    return jnp.ones(shape, jnp.float32)

  def stack(fn):
    return jnp.stack([fn() for _ in range(N_LAYERS)])

  def attn_stack():
    # fused QKV weight (D, 3D) bf16, fused QKV bias (1, 3D) f32, out-proj, bias
    return [stack(lambda: w((D_MODEL, 3 * D_MODEL))),
            stack(lambda: zeros((1, 3 * D_MODEL))),
            stack(lambda: w((D_MODEL, D_MODEL))),
            stack(lambda: zeros((1, D_MODEL)))]

  def ff_stack():
    return [stack(lambda: w((D_MODEL, D_FF))),
            stack(lambda: zeros((1, D_FF))),
            stack(lambda: w((D_FF, D_MODEL))),
            stack(lambda: zeros((1, D_MODEL)))]

  def norm_stack():
    return [stack(lambda: ones((1, D_MODEL))),
            stack(lambda: zeros((1, D_MODEL)))]

  enc_stack = attn_stack() + ff_stack() + norm_stack() + norm_stack()
  dec_stack = (attn_stack() + attn_stack() + ff_stack()
               + norm_stack() + norm_stack() + norm_stack())

  return dict(
      pe=positional_encoding(MAX_LEN, D_MODEL),
      src_emb=w((SRC_VOCAB, D_MODEL), 1.0, jnp.float32),
      tgt_emb=w((TGT_VOCAB, D_MODEL), 1.0, jnp.float32),
      enc_stack=enc_stack,
      enc_norm_g=ones((1, D_MODEL)), enc_norm_b=zeros((1, D_MODEL)),
      dec_stack=dec_stack,
      dec_norm_g=ones((1, D_MODEL)), dec_norm_b=zeros((1, D_MODEL)),
  )


# =================================== main ====================================

if __name__ == "__main__":
  key = jax.random.PRNGKey(0)
  pkey, skey, tkey = jax.random.split(key, 3)
  params = init_params(pkey)

  B, S_SRC, S_TGT = 2, 8, 8
  source = jax.random.randint(skey, (B, S_SRC), 0, SRC_VOCAB, dtype=jnp.int32)
  target = jax.random.randint(tkey, (B, S_TGT), 0, TGT_VOCAB, dtype=jnp.int32)
  source_mask = jnp.ones((B, 1, S_SRC), jnp.float32)            # padding mask (all valid)
  target_mask = jnp.broadcast_to(                               # causal mask
      jnp.tril(jnp.ones((S_TGT, S_TGT), jnp.float32))[None, :, :],
      (B, S_TGT, S_TGT))

  out = encoder_decoder_forward(params, source, target, source_mask, target_mask)
  out = jax.block_until_ready(out)
  assert out.shape == (B, S_TGT, D_MODEL)
  assert bool(jnp.all(jnp.isfinite(out)))
  print("KERNEL_OK")
</pallas_src>

<mosaic_0001>
module attributes {stable_mosaic.version = 11 : i64} {
  func.func @_encdec_kernel(%arg0: i32, %arg1: memref<8x16xf32, #tpu.memory_space<vmem>>, %arg2: memref<8x16xf32, #tpu.memory_space<vmem>>, %arg3: memref<1x1x8xf32, #tpu.memory_space<vmem>>, %arg4: memref<1x8x8xf32, #tpu.memory_space<vmem>>, %arg5: memref<8x32xf32, #tpu.memory_space<vmem>>, %arg6: memref<8x32xf32, #tpu.memory_space<vmem>>, %arg7: memref<16x32xf32, #tpu.memory_space<vmem>>, %arg8: memref<16x32xf32, #tpu.memory_space<vmem>>, %arg9: memref<2x32x96xbf16, #tpu.memory_space<vmem>>, %arg10: memref<2x1x96xf32, #tpu.memory_space<vmem>>, %arg11: memref<2x32x32xbf16, #tpu.memory_space<vmem>>, %arg12: memref<2x1x32xf32, #tpu.memory_space<vmem>>, %arg13: memref<2x32x64xbf16, #tpu.memory_space<vmem>>, %arg14: memref<2x1x64xf32, #tpu.memory_space<vmem>>, %arg15: memref<2x64x32xbf16, #tpu.memory_space<vmem>>, %arg16: memref<2x1x32xf32, #tpu.memory_space<vmem>>, %arg17: memref<2x1x32xf32, #tpu.memory_space<vmem>>, %arg18: memref<2x1x32xf32, #tpu.memory_space<vmem>>, %arg19: memref<2x1x32xf32, #tpu.memory_space<vmem>>, %arg20: memref<2x1x32xf32, #tpu.memory_space<vmem>>, %arg21: memref<1x32xf32, #tpu.memory_space<vmem>>, %arg22: memref<1x32xf32, #tpu.memory_space<vmem>>, %arg23: memref<2x32x96xbf16, #tpu.memory_space<vmem>>, %arg24: memref<2x1x96xf32, #tpu.memory_space<vmem>>, %arg25: memref<2x32x32xbf16, #tpu.memory_space<vmem>>, %arg26: memref<2x1x32xf32, #tpu.memory_space<vmem>>, %arg27: memref<2x32x96xbf16, #tpu.memory_space<vmem>>, %arg28: memref<2x1x96xf32, #tpu.memory_space<vmem>>, %arg29: memref<2x32x32xbf16, #tpu.memory_space<vmem>>, %arg30: memref<2x1x32xf32, #tpu.memory_space<vmem>>, %arg31: memref<2x32x64xbf16, #tpu.memory_space<vmem>>, %arg32: memref<2x1x64xf32, #tpu.memory_space<vmem>>, %arg33: memref<2x64x32xbf16, #tpu.memory_space<vmem>>, %arg34: memref<2x1x32xf32, #tpu.memory_space<vmem>>, %arg35: memref<2x1x32xf32, #tpu.memory_space<vmem>>, %arg36: memref<2x1x32xf32, #tpu.memory_space<vmem>>, %arg37: memref<2x1x32xf32, #tpu.memory_space<vmem>>, %arg38: memref<2x1x32xf32, #tpu.memory_space<vmem>>, %arg39: memref<2x1x32xf32, #tpu.memory_space<vmem>>, %arg40: memref<2x1x32xf32, #tpu.memory_space<vmem>>, %arg41: memref<1x32xf32, #tpu.memory_space<vmem>>, %arg42: memref<1x32xf32, #tpu.memory_space<vmem>>, %arg43: memref<8x32xf32, #tpu.memory_space<vmem>>) attributes {dimension_semantics = [#tpu.dimension_semantics<parallel>], iteration_bounds = array<i64: 2>, scalar_prefetch = 0 : i64, scratch_operands = 0 : i64, tpu.core_type = #tpu.core_type<tc>, window_params = [{transform_indices = @transform_0, window_bounds = array<i64: 8, 16>}, {transform_indices = @transform_1, window_bounds = array<i64: 8, 16>}, {transform_indices = @transform_2, window_bounds = array<i64: 1, 1, 8>}, {transform_indices = @transform_3, window_bounds = array<i64: 1, 8, 8>}, {pipeline_mode = #tpu.pipeline_mode<synchronous>, transform_indices = @transform_4, window_bounds = array<i64: 8, 32>}, {pipeline_mode = #tpu.pipeline_mode<synchronous>, transform_indices = @transform_5, window_bounds = array<i64: 8, 32>}, {pipeline_mode = #tpu.pipeline_mode<synchronous>, transform_indices = @transform_6, window_bounds = array<i64: 16, 32>}, {pipeline_mode = #tpu.pipeline_mode<synchronous>, transform_indices = @transform_7, window_bounds = array<i64: 16, 32>}, {pipeline_mode = #tpu.pipeline_mode<synchronous>, transform_indices = @transform_8, window_bounds = array<i64: 2, 32, 96>}, {pipeline_mode = #tpu.pipeline_mode<synchronous>, transform_indices = @transform_9, window_bounds = array<i64: 2, 1, 96>}, {pipeline_mode = #tpu.pipeline_mode<synchronous>, transform_indices = @transform_10, window_bounds = array<i64: 2, 32, 32>}, {pipeline_mode = #tpu.pipeline_mode<synchronous>, transform_indices = @transform_11, window_bounds = array<i64: 2, 1, 32>}, {pipeline_mode = #tpu.pipeline_mode<synchronous>, transform_indices = @transform_12, window_bounds = array<i64: 2, 32, 64>}, {pipeline_mode = #tpu.pipeline_mode<synchronous>, transform_indices = @transform_13, window_bounds = array<i64: 2, 1, 64>}, {pipeline_mode = #tpu.pipeline_mode<synchronous>, transform_indices = @transform_14, window_bounds = array<i64: 2, 64, 32>}, {pipeline_mode = #tpu.pipeline_mode<synchronous>, transform_indices = @transform_15, window_bounds = array<i64: 2, 1, 32>}, {pipeline_mode = #tpu.pipeline_mode<synchronous>, transform_indices = @transform_16, window_bounds = array<i64: 2, 1, 32>}, {pipeline_mode = #tpu.pipeline_mode<synchronous>, transform_indices = @transform_17, window_bounds = array<i64: 2, 1, 32>}, {pipeline_mode = #tpu.pipeline_mode<synchronous>, transform_indices = @transform_18, window_bounds = array<i64: 2, 1, 32>}, {pipeline_mode = #tpu.pipeline_mode<synchronous>, transform_indices = @transform_19, window_bounds = array<i64: 2, 1, 32>}, {pipeline_mode = #tpu.pipeline_mode<synchronous>, transform_indices = @transform_20, window_bounds = array<i64: 1, 32>}, {pipeline_mode = #tpu.pipeline_mode<synchronous>, transform_indices = @transform_21, window_bounds = array<i64: 1, 32>}, {pipeline_mode = #tpu.pipeline_mode<synchronous>, transform_indices = @transform_22, window_bounds = array<i64: 2, 32, 96>}, {pipeline_mode = #tpu.pipeline_mode<synchronous>, transform_indices = @transform_23, window_bounds = array<i64: 2, 1, 96>}, {pipeline_mode = #tpu.pipeline_mode<synchronous>, transform_indices = @transform_24, window_bounds = array<i64: 2, 32, 32>}, {pipeline_mode = #tpu.pipeline_mode<synchronous>, transform_indices = @transform_25, window_bounds = array<i64: 2, 1, 32>}, {pipeline_mode = #tpu.pipeline_mode<synchronous>, transform_indices = @transform_26, window_bounds = array<i64: 2, 32, 96>}, {pipeline_mode = #tpu.pipeline_mode<synchronous>, transform_indices = @transform_27, window_bounds = array<i64: 2, 1, 96>}, {pipeline_mode = #tpu.pipeline_mode<synchronous>, transform_indices = @transform_28, window_bounds = array<i64: 2, 32, 32>}, {pipeline_mode = #tpu.pipeline_mode<synchronous>, transform_indices = @transform_29, window_bounds = array<i64: 2, 1, 32>}, {pipeline_mode = #tpu.pipeline_mode<synchronous>, transform_indices = @transform_30, window_bounds = array<i64: 2, 32, 64>}, {pipeline_mode = #tpu.pipeline_mode<synchronous>, transform_indices = @transform_31, window_bounds = array<i64: 2, 1, 64>}, {pipeline_mode = #tpu.pipeline_mode<synchronous>, transform_indices = @transform_32, window_bounds = array<i64: 2, 64, 32>}, {pipeline_mode = #tpu.pipeline_mode<synchronous>, transform_indices = @transform_33, window_bounds = array<i64: 2, 1, 32>}, {pipeline_mode = #tpu.pipeline_mode<synchronous>, transform_indices = @transform_34, window_bounds = array<i64: 2, 1, 32>}, {pipeline_mode = #tpu.pipeline_mode<synchronous>, transform_indices = @transform_35, window_bounds = array<i64: 2, 1, 32>}, {pipeline_mode = #tpu.pipeline_mode<synchronous>, transform_indices = @transform_36, window_bounds = array<i64: 2, 1, 32>}, {pipeline_mode = #tpu.pipeline_mode<synchronous>, transform_indices = @transform_37, window_bounds = array<i64: 2, 1, 32>}, {pipeline_mode = #tpu.pipeline_mode<synchronous>, transform_indices = @transform_38, window_bounds = array<i64: 2, 1, 32>}, {pipeline_mode = #tpu.pipeline_mode<synchronous>, transform_indices = @transform_39, window_bounds = array<i64: 2, 1, 32>}, {pipeline_mode = #tpu.pipeline_mode<synchronous>, transform_indices = @transform_40, window_bounds = array<i64: 1, 32>}, {pipeline_mode = #tpu.pipeline_mode<synchronous>, transform_indices = @transform_41, window_bounds = array<i64: 1, 32>}, {transform_indices = @transform_42, window_bounds = array<i64: 8, 32>}]} {
    %c0 = arith.constant 0 : index
    %c0_0 = arith.constant 0 : index
    %c0_1 = arith.constant 0 : index
    %0 = vector.load %arg3[%c0, %c0_0, %c0_1] : memref<1x1x8xf32, #tpu.memory_space<vmem>>, vector<1x1x8xf32>
    %1 = vector.shape_cast %0 : vector<1x1x8xf32> to vector<1x8xf32>
    %cst = arith.constant 0.000000e+00 : f32
    %2 = vector.broadcast %cst : f32 to vector<1x8xf32>
    %3 = arith.cmpf ogt, %1, %2 : vector<1x8xf32>
    %c0_2 = arith.constant 0 : index
    %c0_3 = arith.constant 0 : index
    %c0_4 = arith.constant 0 : index
    %4 = vector.load %arg4[%c0_2, %c0_3, %c0_4] : memref<1x8x8xf32, #tpu.memory_space<vmem>>, vector<1x8x8xf32>
    %5 = vector.shape_cast %4 : vector<1x8x8xf32> to vector<8x8xf32>
    %cst_5 = arith.constant 0.000000e+00 : f32
    %6 = vector.broadcast %cst_5 : f32 to vector<8x8xf32>
    %7 = arith.cmpf ogt, %5, %6 : vector<8x8xf32>
    %c0_6 = arith.constant 0 : index
    %c0_7 = arith.constant 0 : index
    %8 = vector.load %arg1[%c0_6, %c0_7] : memref<8x16xf32, #tpu.memory_space<vmem>>, vector<8x16xf32>
    %c0_8 = arith.constant 0 : index
    %c0_9 = arith.constant 0 : index
    %9 = vector.load %arg7[%c0_8, %c0_9] : memref<16x32xf32, #tpu.memory_space<vmem>>, vector<16x32xf32>
    %cst_10 = arith.constant dense<0.000000e+00> : vector<8x32xf32>
    %10 = tpu.matmul %8, %9, %cst_10 {dimension_numbers = #tpu.dot_dimension_numbers<[1], [0], [0], [1], [0, 0, 1, 1], [], []>} : vector<8x16xf32>, vector<16x32xf32>, vector<8x32xf32> -> vector<8x32xf32>
    %cst_11 = arith.constant 5.65685415 : f32
    %11 = vector.broadcast %cst_11 : f32 to vector<8x32xf32>
    %12 = arith.mulf %10, %11 : vector<8x32xf32>
    %c0_12 = arith.constant 0 : index
    %c0_13 = arith.constant 0 : index
    %13 = vector.load %arg5[%c0_12, %c0_13] : memref<8x32xf32, #tpu.memory_space<vmem>>, vector<8x32xf32>
    %14 = arith.addf %12, %13 : vector<8x32xf32>
    %c0_14 = arith.constant 0 : index
    %c0_15 = arith.constant 0 : index
    %c0_16 = arith.constant 0 : index
    %15 = vector.load %arg17[%c0_14, %c0_15, %c0_16] : memref<2x1x32xf32, #tpu.memory_space<vmem>>, vector<1x1x32xf32>
    %16 = vector.shape_cast %15 : vector<1x1x32xf32> to vector<1x32xf32>
    %c0_17 = arith.constant 0 : index
    %c0_18 = arith.constant 0 : index
    %c0_19 = arith.constant 0 : index
    %17 = vector.load %arg18[%c0_17, %c0_18, %c0_19] : memref<2x1x32xf32, #tpu.memory_space<vmem>>, vector<1x1x32xf32>
    %18 = vector.shape_cast %17 : vector<1x1x32xf32> to vector<1x32xf32>
    %cst_20 = arith.constant dense<0.000000e+00> : vector<8xf32>
    %19 = vector.multi_reduction <add>, %14, %cst_20 [1] : vector<8x32xf32> to vector<8xf32>
    %20 = vector.shape_cast %19 : vector<8xf32> to vector<8x1xf32>
    %cst_21 = arith.constant 3.200000e+01 : f32
    %21 = vector.broadcast %cst_21 : f32 to vector<8x1xf32>
    %22 = arith.divf %20, %21 : vector<8x1xf32>
    %23 = vector.broadcast %22 : vector<8x1xf32> to vector<8x32xf32>
    %24 = arith.subf %14, %23 : vector<8x32xf32>
    %25 = arith.mulf %24, %24 : vector<8x32xf32>
    %cst_22 = arith.constant dense<0.000000e+00> : vector<8xf32>
    %26 = vector.multi_reduction <add>, %25, %cst_22 [1] : vector<8x32xf32> to vector<8xf32>
    %27 = vector.shape_cast %26 : vector<8xf32> to vector<8x1xf32>
    %cst_23 = arith.constant 0.0322580636 : f32
    %28 = vector.broadcast %cst_23 : f32 to vector<8x1xf32>
    %29 = arith.mulf %27, %28 : vector<8x1xf32>
    %30 = math.sqrt %29 : vector<8x1xf32>
    %cst_24 = arith.constant 9.99999997E-7 : f32
    %31 = vector.broadcast %cst_24 : f32 to vector<8x1xf32>
    %32 = arith.addf %30, %31 : vector<8x1xf32>
    %33 = tpu.reciprocal %32 {approx = true} : vector<8x1xf32> -> vector<8x1xf32>
    %34 = vector.broadcast %16 : vector<1x32xf32> to vector<8x32xf32>
    %35 = arith.mulf %34, %24 : vector<8x32xf32>
    %36 = vector.broadcast %33 : vector<8x1xf32> to vector<8x32xf32>
    %37 = arith.mulf %35, %36 : vector<8x32xf32>
    %38 = vector.broadcast %18 : vector<1x32xf32> to vector<8x32xf32>
    %39 = arith.addf %37, %38 : vector<8x32xf32>
    %c0_25 = arith.constant 0 : index
    %c0_26 = arith.constant 0 : index
    %c0_27 = arith.constant 0 : index
    %40 = vector.load %arg9[%c0_25, %c0_26, %c0_27] : memref<2x32x96xbf16, #tpu.memory_space<vmem>>, vector<1x32x96xbf16>
    %41 = vector.shape_cast %40 : vector<1x32x96xbf16> to vector<32x96xbf16>
    %c0_28 = arith.constant 0 : index
    %c0_29 = arith.constant 0 : index
    %c0_30 = arith.constant 0 : index
    %42 = vector.load %arg10[%c0_28, %c0_29, %c0_30] : memref<2x1x96xf32, #tpu.memory_space<vmem>>, vector<1x1x96xf32>
    %43 = vector.shape_cast %42 : vector<1x1x96xf32> to vector<1x96xf32>
    %c0_31 = arith.constant 0 : index
    %c0_32 = arith.constant 0 : index
    %c0_33 = arith.constant 0 : index
    %44 = vector.load %arg11[%c0_31, %c0_32, %c0_33] : memref<2x32x32xbf16, #tpu.memory_space<vmem>>, vector<1x32x32xbf16>
    %45 = vector.shape_cast %44 : vector<1x32x32xbf16> to vector<32x32xbf16>
    %c0_34 = arith.constant 0 : index
    %c0_35 = arith.constant 0 : index
    %c0_36 = arith.constant 0 : index
    %46 = vector.load %arg12[%c0_34, %c0_35, %c0_36] : memref<2x1x32xf32, #tpu.memory_space<vmem>>, vector<1x1x32xf32>
    %47 = vector.shape_cast %46 : vector<1x1x32xf32> to vector<1x32xf32>
    %48 = arith.truncf %39 : vector<8x32xf32> to vector<8x32xbf16>
    %cst_37 = arith.constant dense<0.000000e+00> : vector<8x96xf32>
    %49 = tpu.matmul %48, %41, %cst_37 {dimension_numbers = #tpu.dot_dimension_numbers<[1], [0], [0], [1], [0, 0, 1, 1], [], []>} : vector<8x32xbf16>, vector<32x96xbf16>, vector<8x96xf32> -> vector<8x96xf32>
    %50 = vector.broadcast %43 : vector<1x96xf32> to vector<8x96xf32>
    %51 = arith.addf %49, %50 : vector<8x96xf32>
    %52 = vector.extract_strided_slice %51 {offsets = [0, 0], sizes = [8, 32], strides = [1, 1]} : vector<8x96xf32> to vector<8x32xf32>
    %53 = vector.extract_strided_slice %51 {offsets = [0, 32], sizes = [8, 32], strides = [1, 1]} : vector<8x96xf32> to vector<8x32xf32>
    %54 = vector.extract_strided_slice %51 {offsets = [0, 64], sizes = [8, 32], strides = [1, 1]} : vector<8x96xf32> to vector<8x32xf32>
    %55 = vector.extract_strided_slice %52 {offsets = [0, 0], sizes = [8, 8], strides = [1, 1]} : vector<8x32xf32> to vector<8x8xf32>
    %56 = vector.extract_strided_slice %52 {offsets = [0, 8], sizes = [8, 8], strides = [1, 1]} : vector<8x32xf32> to vector<8x8xf32>
    %57 = vector.extract_strided_slice %52 {offsets = [0, 16], sizes = [8, 8], strides = [1, 1]} : vector<8x32xf32> to vector<8x8xf32>
    %58 = vector.extract_strided_slice %52 {offsets = [0, 24], sizes = [8, 8], strides = [1, 1]} : vector<8x32xf32> to vector<8x8xf32>
    %59 = vector.shape_cast %55 : vector<8x8xf32> to vector<1x8x8xf32>
    %60 = vector.shape_cast %56 : vector<8x8xf32> to vector<1x8x8xf32>
    %61 = vector.shape_cast %57 : vector<8x8xf32> to vector<1x8x8xf32>
    %62 = vector.shape_cast %58 : vector<8x8xf32> to vector<1x8x8xf32>
    %63 = tpu.concatenate %59, %60, %61, %62 in 0 : vector<1x8x8xf32>, vector<1x8x8xf32>, vector<1x8x8xf32>, vector<1x8x8xf32> -> vector<4x8x8xf32>
    %64 = vector.extract_strided_slice %53 {offsets = [0, 0], sizes = [8, 8], strides = [1, 1]} : vector<8x32xf32> to vector<8x8xf32>
    %65 = vector.extract_strided_slice %53 {offsets = [0, 8], sizes = [8, 8], strides = [1, 1]} : vector<8x32xf32> to vector<8x8xf32>
    %66 = vector.extract_strided_slice %53 {offsets = [0, 16], sizes = [8, 8], strides = [1, 1]} : vector<8x32xf32> to vector<8x8xf32>
    %67 = vector.extract_strided_slice %53 {offsets = [0, 24], sizes = [8, 8], strides = [1, 1]} : vector<8x32xf32> to vector<8x8xf32>
    %68 = vector.shape_cast %64 : vector<8x8xf32> to vector<1x8x8xf32>
    %69 = vector.shape_cast %65 : vector<8x8xf32> to vector<1x8x8xf32>
    %70 = vector.shape_cast %66 : vector<8x8xf32> to vector<1x8x8xf32>
    %71 = vector.shape_cast %67 : vector<8x8xf32> to vector<1x8x8xf32>
    %72 = tpu.concatenate %68, %69, %70, %71 in 0 : vector<1x8x8xf32>, vector<1x8x8xf32>, vector<1x8x8xf32>, vector<1x8x8xf32> -> vector<4x8x8xf32>
    %73 = vector.extract_strided_slice %54 {offsets = [0, 0], sizes = [8, 8], strides = [1, 1]} : vector<8x32xf32> to vector<8x8xf32>
    %74 = vector.extract_strided_slice %54 {offsets = [0, 8], sizes = [8, 8], strides = [1, 1]} : vector<8x32xf32> to vector<8x8xf32>
    %75 = vector.extract_strided_slice %54 {offsets = [0, 16], sizes = [8, 8], strides = [1, 1]} : vector<8x32xf32> to vector<8x8xf32>
    %76 = vector.extract_strided_slice %54 {offsets = [0, 24], sizes = [8, 8], strides = [1, 1]} : vector<8x32xf32> to vector<8x8xf32>
    %77 = vector.shape_cast %73 : vector<8x8xf32> to vector<1x8x8xf32>
    %78 = vector.shape_cast %74 : vector<8x8xf32> to vector<1x8x8xf32>
    %79 = vector.shape_cast %75 : vector<8x8xf32> to vector<1x8x8xf32>
    %80 = vector.shape_cast %76 : vector<8x8xf32> to vector<1x8x8xf32>
    %81 = tpu.concatenate %77, %78, %79, %80 in 0 : vector<1x8x8xf32>, vector<1x8x8xf32>, vector<1x8x8xf32>, vector<1x8x8xf32> -> vector<4x8x8xf32>
    %cst_38 = arith.constant dense<0.000000e+00> : vector<4x8x8xf32>
    %82 = tpu.matmul %63, %72, %cst_38 {dimension_numbers = #tpu.dot_dimension_numbers<[2], [2], [1], [1], [0, 0, 0, 1, 1, 1], [0], [0]>} : vector<4x8x8xf32>, vector<4x8x8xf32>, vector<4x8x8xf32> -> vector<4x8x8xf32>
    %cst_39 = arith.constant 0.353553385 : f32
    %83 = vector.broadcast %cst_39 : f32 to vector<4x8x8xf32>
    %84 = arith.mulf %82, %83 : vector<4x8x8xf32>
    %85 = vector.shape_cast %3 : vector<1x8xi1> to vector<1x1x8xi1>
    %86 = vector.shape_cast %85 : vector<1x1x8xi1> to vector<1x1x8xi1>
    %87 = vector.broadcast %86 : vector<1x1x8xi1> to vector<4x8x8xi1>
    %cst_40 = arith.constant -1.000000e+09 : f32
    %88 = vector.broadcast %cst_40 : f32 to vector<4x8x8xf32>
    %89 = arith.select %87, %84, %88 : vector<4x8x8xi1>, vector<4x8x8xf32>
    %cst_41 = arith.constant dense<0xFF800000> : vector<4x8xf32>
    %90 = vector.multi_reduction <maximumf>, %89, %cst_41 [2] : vector<4x8x8xf32> to vector<4x8xf32>
    %91 = vector.shape_cast %90 : vector<4x8xf32> to vector<4x8x1xf32>
    %92 = vector.broadcast %91 : vector<4x8x1xf32> to vector<4x8x8xf32>
    %93 = arith.subf %89, %92 : vector<4x8x8xf32>
    %94 = math.exp %93 : vector<4x8x8xf32>
    %cst_42 = arith.constant dense<0.000000e+00> : vector<4x8xf32>
    %95 = vector.multi_reduction <add>, %94, %cst_42 [2] : vector<4x8x8xf32> to vector<4x8xf32>
    %96 = vector.shape_cast %95 : vector<4x8xf32> to vector<4x8x1xf32>
    %97 = tpu.reciprocal %96 {approx = true} : vector<4x8x1xf32> -> vector<4x8x1xf32>
    %98 = vector.broadcast %97 : vector<4x8x1xf32> to vector<4x8x8xf32>
    %99 = arith.mulf %94, %98 : vector<4x8x8xf32>
    %cst_43 = arith.constant dense<0.000000e+00> : vector<4x8x8xf32>
    %100 = tpu.matmul %99, %81, %cst_43 {dimension_numbers = #tpu.dot_dimension_numbers<[2], [1], [1], [2], [0, 0, 0, 1, 1, 2], [0], [0]>} : vector<4x8x8xf32>, vector<4x8x8xf32>, vector<4x8x8xf32> -> vector<4x8x8xf32>
    %101 = vector.extract_strided_slice %100 {offsets = [0, 0, 0], sizes = [1, 8, 8], strides = [1, 1, 1]} : vector<4x8x8xf32> to vector<1x8x8xf32>
    %102 = vector.shape_cast %101 : vector<1x8x8xf32> to vector<8x8xf32>
    %103 = vector.extract_strided_slice %100 {offsets = [1, 0, 0], sizes = [1, 8, 8], strides = [1, 1, 1]} : vector<4x8x8xf32> to vector<1x8x8xf32>
    %104 = vector.shape_cast %103 : vector<1x8x8xf32> to vector<8x8xf32>
    %105 = vector.extract_strided_slice %100 {offsets = [2, 0, 0], sizes = [1, 8, 8], strides = [1, 1, 1]} : vector<4x8x8xf32> to vector<1x8x8xf32>
    %106 = vector.shape_cast %105 : vector<1x8x8xf32> to vector<8x8xf32>
    %107 = vector.extract_strided_slice %100 {offsets = [3, 0, 0], sizes = [1, 8, 8], strides = [1, 1, 1]} : vector<4x8x8xf32> to vector<1x8x8xf32>
    %108 = vector.shape_cast %107 : vector<1x8x8xf32> to vector<8x8xf32>
    %109 = tpu.concatenate %102, %104, %106, %108 in 1 : vector<8x8xf32>, vector<8x8xf32>, vector<8x8xf32>, vector<8x8xf32> -> vector<8x32xf32>
    %110 = arith.truncf %109 : vector<8x32xf32> to vector<8x32xbf16>
    %cst_44 = arith.constant dense<0.000000e+00> : vector<8x32xf32>
    %111 = tpu.matmul %110, %45, %cst_44 {dimension_numbers = #tpu.dot_dimension_numbers<[1], [0], [0], [1], [0, 0, 1, 1], [], []>} : vector<8x32xbf16>, vector<32x32xbf16>, vector<8x32xf32> -> vector<8x32xf32>
    %112 = vector.broadcast %47 : vector<1x32xf32> to vector<8x32xf32>
    %113 = arith.addf %111, %112 : vector<8x32xf32>
    %114 = arith.addf %14, %113 : vector<8x32xf32>
    %c0_45 = arith.constant 0 : index
    %c0_46 = arith.constant 0 : index
    %c0_47 = arith.constant 0 : index
    %115 = vector.load %arg19[%c0_45, %c0_46, %c0_47] : memref<2x1x32xf32, #tpu.memory_space<vmem>>, vector<1x1x32xf32>
    %116 = vector.shape_cast %115 : vector<1x1x32xf32> to vector<1x32xf32>
    %c0_48 = arith.constant 0 : index
    %c0_49 = arith.constant 0 : index
    %c0_50 = arith.constant 0 : index
    %117 = vector.load %arg20[%c0_48, %c0_49, %c0_50] : memref<2x1x32xf32, #tpu.memory_space<vmem>>, vector<1x1x32xf32>
    %118 = vector.shape_cast %117 : vector<1x1x32xf32> to vector<1x32xf32>
    %cst_51 = arith.constant dense<0.000000e+00> : vector<8xf32>
    %119 = vector.multi_reduction <add>, %114, %cst_51 [1] : vector<8x32xf32> to vector<8xf32>
    %120 = vector.shape_cast %119 : vector<8xf32> to vector<8x1xf32>
    %cst_52 = arith.constant 3.200000e+01 : f32
    %121 = vector.broadcast %cst_52 : f32 to vector<8x1xf32>
    %122 = arith.divf %120, %121 : vector<8x1xf32>
    %123 = vector.broadcast %122 : vector<8x1xf32> to vector<8x32xf32>
    %124 = arith.subf %114, %123 : vector<8x32xf32>
    %125 = arith.mulf %124, %124 : vector<8x32xf32>
    %cst_53 = arith.constant dense<0.000000e+00> : vector<8xf32>
    %126 = vector.multi_reduction <add>, %125, %cst_53 [1] : vector<8x32xf32> to vector<8xf32>
    %127 = vector.shape_cast %126 : vector<8xf32> to vector<8x1xf32>
    %cst_54 = arith.constant 0.0322580636 : f32
    %128 = vector.broadcast %cst_54 : f32 to vector<8x1xf32>
    %129 = arith.mulf %127, %128 : vector<8x1xf32>
    %130 = math.sqrt %129 : vector<8x1xf32>
    %cst_55 = arith.constant 9.99999997E-7 : f32
    %131 = vector.broadcast %cst_55 : f32 to vector<8x1xf32>
    %132 = arith.addf %130, %131 : vector<8x1xf32>
    %133 = tpu.reciprocal %132 {approx = true} : vector<8x1xf32> -> vector<8x1xf32>
    %134 = vector.broadcast %116 : vector<1x32xf32> to vector<8x32xf32>
    %135 = arith.mulf %134, %124 : vector<8x32xf32>
    %136 = vector.broadcast %133 : vector<8x1xf32> to vector<8x32xf32>
    %137 = arith.mulf %135, %136 : vector<8x32xf32>
    %138 = vector.broadcast %118 : vector<1x32xf32> to vector<8x32xf32>
    %139 = arith.addf %137, %138 : vector<8x32xf32>
    %c0_56 = arith.constant 0 : index
    %c0_57 = arith.constant 0 : index
    %c0_58 = arith.constant 0 : index
    %140 = vector.load %arg13[%c0_56, %c0_57, %c0_58] : memref<2x32x64xbf16, #tpu.memory_space<vmem>>, vector<1x32x64xbf16>
    %141 = vector.shape_cast %140 : vector<1x32x64xbf16> to vector<32x64xbf16>
    %c0_59 = arith.constant 0 : index
    %c0_60 = arith.constant 0 : index
    %c0_61 = arith.constant 0 : index
    %142 = vector.load %arg14[%c0_59, %c0_60, %c0_61] : memref<2x1x64xf32, #tpu.memory_space<vmem>>, vector<1x1x64xf32>
    %143 = vector.shape_cast %142 : vector<1x1x64xf32> to vector<1x64xf32>
    %c0_62 = arith.constant 0 : index
    %c0_63 = arith.constant 0 : index
    %c0_64 = arith.constant 0 : index
    %144 = vector.load %arg15[%c0_62, %c0_63, %c0_64] : memref<2x64x32xbf16, #tpu.memory_space<vmem>>, vector<1x64x32xbf16>
    %145 = vector.shape_cast %144 : vector<1x64x32xbf16> to vector<64x32xbf16>
    %c0_65 = arith.constant 0 : index
    %c0_66 = arith.constant 0 : index
    %c0_67 = arith.constant 0 : index
    %146 = vector.load %arg16[%c0_65, %c0_66, %c0_67] : memref<2x1x32xf32, #tpu.memory_space<vmem>>, vector<1x1x32xf32>
    %147 = vector.shape_cast %146 : vector<1x1x32xf32> to vector<1x32xf32>
    %148 = arith.truncf %139 : vector<8x32xf32> to vector<8x32xbf16>
    %cst_68 = arith.constant dense<0.000000e+00> : vector<8x64xf32>
    %149 = tpu.matmul %148, %141, %cst_68 {dimension_numbers = #tpu.dot_dimension_numbers<[1], [0], [0], [1], [0, 0, 1, 1], [], []>} : vector<8x32xbf16>, vector<32x64xbf16>, vector<8x64xf32> -> vector<8x64xf32>
    %150 = vector.broadcast %143 : vector<1x64xf32> to vector<8x64xf32>
    %151 = arith.addf %149, %150 : vector<8x64xf32>
    %cst_69 = arith.constant 0.000000e+00 : f32
    %152 = vector.broadcast %cst_69 : f32 to vector<8x64xf32>
    %153 = arith.maximumf %151, %152 : vector<8x64xf32>
    %154 = arith.truncf %153 : vector<8x64xf32> to vector<8x64xbf16>
    %cst_70 = arith.constant dense<0.000000e+00> : vector<8x32xf32>
    %155 = tpu.matmul %154, %145, %cst_70 {dimension_numbers = #tpu.dot_dimension_numbers<[1], [0], [0], [1], [0, 0, 1, 1], [], []>} : vector<8x64xbf16>, vector<64x32xbf16>, vector<8x32xf32> -> vector<8x32xf32>
    %156 = vector.broadcast %147 : vector<1x32xf32> to vector<8x32xf32>
    %157 = arith.addf %155, %156 : vector<8x32xf32>
    %158 = arith.addf %114, %157 : vector<8x32xf32>
    %c1 = arith.constant 1 : index
    %c0_71 = arith.constant 0 : index
    %c0_72 = arith.constant 0 : index
    %159 = vector.load %arg17[%c1, %c0_71, %c0_72] : memref<2x1x32xf32, #tpu.memory_space<vmem>>, vector<1x1x32xf32>
    %160 = vector.shape_cast %159 : vector<1x1x32xf32> to vector<1x32xf32>
    %c1_73 = arith.constant 1 : index
    %c0_74 = arith.constant 0 : index
    %c0_75 = arith.constant 0 : index
    %161 = vector.load %arg18[%c1_73, %c0_74, %c0_75] : memref<2x1x32xf32, #tpu.memory_space<vmem>>, vector<1x1x32xf32>
    %162 = vector.shape_cast %161 : vector<1x1x32xf32> to vector<1x32xf32>
    %cst_76 = arith.constant dense<0.000000e+00> : vector<8xf32>
    %163 = vector.multi_reduction <add>, %158, %cst_76 [1] : vector<8x32xf32> to vector<8xf32>
    %164 = vector.shape_cast %163 : vector<8xf32> to vector<8x1xf32>
    %cst_77 = arith.constant 3.200000e+01 : f32
    %165 = vector.broadcast %cst_77 : f32 to vector<8x1xf32>
    %166 = arith.divf %164, %165 : vector<8x1xf32>
    %167 = vector.broadcast %166 : vector<8x1xf32> to vector<8x32xf32>
    %168 = arith.subf %158, %167 : vector<8x32xf32>
    %169 = arith.mulf %168, %168 : vector<8x32xf32>
    %cst_78 = arith.constant dense<0.000000e+00> : vector<8xf32>
    %170 = vector.multi_reduction <add>, %169, %cst_78 [1] : vector<8x32xf32> to vector<8xf32>
    %171 = vector.shape_cast %170 : vector<8xf32> to vector<8x1xf32>
    %cst_79 = arith.constant 0.0322580636 : f32
    %172 = vector.broadcast %cst_79 : f32 to vector<8x1xf32>
    %173 = arith.mulf %171, %172 : vector<8x1xf32>
    %174 = math.sqrt %173 : vector<8x1xf32>
    %cst_80 = arith.constant 9.99999997E-7 : f32
    %175 = vector.broadcast %cst_80 : f32 to vector<8x1xf32>
    %176 = arith.addf %174, %175 : vector<8x1xf32>
    %177 = tpu.reciprocal %176 {approx = true} : vector<8x1xf32> -> vector<8x1xf32>
    %178 = vector.broadcast %160 : vector<1x32xf32> to vector<8x32xf32>
    %179 = arith.mulf %178, %168 : vector<8x32xf32>
    %180 = vector.broadcast %177 : vector<8x1xf32> to vector<8x32xf32>
    %181 = arith.mulf %179, %180 : vector<8x32xf32>
    %182 = vector.broadcast %162 : vector<1x32xf32> to vector<8x32xf32>
    %183 = arith.addf %181, %182 : vector<8x32xf32>
    %c1_81 = arith.constant 1 : index
    %c0_82 = arith.constant 0 : index
    %c0_83 = arith.constant 0 : index
    %184 = vector.load %arg9[%c1_81, %c0_82, %c0_83] : memref<2x32x96xbf16, #tpu.memory_space<vmem>>, vector<1x32x96xbf16>
    %185 = vector.shape_cast %184 : vector<1x32x96xbf16> to vector<32x96xbf16>
    %c1_84 = arith.constant 1 : index
    %c0_85 = arith.constant 0 : index
    %c0_86 = arith.constant 0 : index
    %186 = vector.load %arg10[%c1_84, %c0_85, %c0_86] : memref<2x1x96xf32, #tpu.memory_space<vmem>>, vector<1x1x96xf32>
    %187 = vector.shape_cast %186 : vector<1x1x96xf32> to vector<1x96xf32>
    %c1_87 = arith.constant 1 : index
    %c0_88 = arith.constant 0 : index
    %c0_89 = arith.constant 0 : index
    %188 = vector.load %arg11[%c1_87, %c0_88, %c0_89] : memref<2x32x32xbf16, #tpu.memory_space<vmem>>, vector<1x32x32xbf16>
    %189 = vector.shape_cast %188 : vector<1x32x32xbf16> to vector<32x32xbf16>
    %c1_90 = arith.constant 1 : index
    %c0_91 = arith.constant 0 : index
    %c0_92 = arith.constant 0 : index
    %190 = vector.load %arg12[%c1_90, %c0_91, %c0_92] : memref<2x1x32xf32, #tpu.memory_space<vmem>>, vector<1x1x32xf32>
    %191 = vector.shape_cast %190 : vector<1x1x32xf32> to vector<1x32xf32>
    %192 = arith.truncf %183 : vector<8x32xf32> to vector<8x32xbf16>
    %cst_93 = arith.constant dense<0.000000e+00> : vector<8x96xf32>
    %193 = tpu.matmul %192, %185, %cst_93 {dimension_numbers = #tpu.dot_dimension_numbers<[1], [0], [0], [1], [0, 0, 1, 1], [], []>} : vector<8x32xbf16>, vector<32x96xbf16>, vector<8x96xf32> -> vector<8x96xf32>
    %194 = vector.broadcast %187 : vector<1x96xf32> to vector<8x96xf32>
    %195 = arith.addf %193, %194 : vector<8x96xf32>
    %196 = vector.extract_strided_slice %195 {offsets = [0, 0], sizes = [8, 32], strides = [1, 1]} : vector<8x96xf32> to vector<8x32xf32>
    %197 = vector.extract_strided_slice %195 {offsets = [0, 32], sizes = [8, 32], strides = [1, 1]} : vector<8x96xf32> to vector<8x32xf32>
    %198 = vector.extract_strided_slice %195 {offsets = [0, 64], sizes = [8, 32], strides = [1, 1]} : vector<8x96xf32> to vector<8x32xf32>
    %199 = vector.extract_strided_slice %196 {offsets = [0, 0], sizes = [8, 8], strides = [1, 1]} : vector<8x32xf32> to vector<8x8xf32>
    %200 = vector.extract_strided_slice %196 {offsets = [0, 8], sizes = [8, 8], strides = [1, 1]} : vector<8x32xf32> to vector<8x8xf32>
    %201 = vector.extract_strided_slice %196 {offsets = [0, 16], sizes = [8, 8], strides = [1, 1]} : vector<8x32xf32> to vector<8x8xf32>
    %202 = vector.extract_strided_slice %196 {offsets = [0, 24], sizes = [8, 8], strides = [1, 1]} : vector<8x32xf32> to vector<8x8xf32>
    %203 = vector.shape_cast %199 : vector<8x8xf32> to vector<1x8x8xf32>
    %204 = vector.shape_cast %200 : vector<8x8xf32> to vector<1x8x8xf32>
    %205 = vector.shape_cast %201 : vector<8x8xf32> to vector<1x8x8xf32>
    %206 = vector.shape_cast %202 : vector<8x8xf32> to vector<1x8x8xf32>
    %207 = tpu.concatenate %203, %204, %205, %206 in 0 : vector<1x8x8xf32>, vector<1x8x8xf32>, vector<1x8x8xf32>, vector<1x8x8xf32> -> vector<4x8x8xf32>
    %208 = vector.extract_strided_slice %197 {offsets = [0, 0], sizes = [8, 8], strides = [1, 1]} : vector<8x32xf32> to vector<8x8xf32>
    %209 = vector.extract_strided_slice %197 {offsets = [0, 8], sizes = [8, 8], strides = [1, 1]} : vector<8x32xf32> to vector<8x8xf32>
    %210 = vector.extract_strided_slice %197 {offsets = [0, 16], sizes = [8, 8], strides = [1, 1]} : vector<8x32xf32> to vector<8x8xf32>
    %211 = vector.extract_strided_slice %197 {offsets = [0, 24], sizes = [8, 8], strides = [1, 1]} : vector<8x32xf32> to vector<8x8xf32>
    %212 = vector.shape_cast %208 : vector<8x8xf32> to vector<1x8x8xf32>
    %213 = vector.shape_cast %209 : vector<8x8xf32> to vector<1x8x8xf32>
    %214 = vector.shape_cast %210 : vector<8x8xf32> to vector<1x8x8xf32>
    %215 = vector.shape_cast %211 : vector<8x8xf32> to vector<1x8x8xf32>
    %216 = tpu.concatenate %212, %213, %214, %215 in 0 : vector<1x8x8xf32>, vector<1x8x8xf32>, vector<1x8x8xf32>, vector<1x8x8xf32> -> vector<4x8x8xf32>
    %217 = vector.extract_strided_slice %198 {offsets = [0, 0], sizes = [8, 8], strides = [1, 1]} : vector<8x32xf32> to vector<8x8xf32>
    %218 = vector.extract_strided_slice %198 {offsets = [0, 8], sizes = [8, 8], strides = [1, 1]} : vector<8x32xf32> to vector<8x8xf32>
    %219 = vector.extract_strided_slice %198 {offsets = [0, 16], sizes = [8, 8], strides = [1, 1]} : vector<8x32xf32> to vector<8x8xf32>
    %220 = vector.extract_strided_slice %198 {offsets = [0, 24], sizes = [8, 8], strides = [1, 1]} : vector<8x32xf32> to vector<8x8xf32>
    %221 = vector.shape_cast %217 : vector<8x8xf32> to vector<1x8x8xf32>
    %222 = vector.shape_cast %218 : vector<8x8xf32> to vector<1x8x8xf32>
    %223 = vector.shape_cast %219 : vector<8x8xf32> to vector<1x8x8xf32>
    %224 = vector.shape_cast %220 : vector<8x8xf32> to vector<1x8x8xf32>
    %225 = tpu.concatenate %221, %222, %223, %224 in 0 : vector<1x8x8xf32>, vector<1x8x8xf32>, vector<1x8x8xf32>, vector<1x8x8xf32> -> vector<4x8x8xf32>
    %cst_94 = arith.constant dense<0.000000e+00> : vector<4x8x8xf32>
    %226 = tpu.matmul %207, %216, %cst_94 {dimension_numbers = #tpu.dot_dimension_numbers<[2], [2], [1], [1], [0, 0, 0, 1, 1, 1], [0], [0]>} : vector<4x8x8xf32>, vector<4x8x8xf32>, vector<4x8x8xf32> -> vector<4x8x8xf32>
    %cst_95 = arith.constant 0.353553385 : f32
    %227 = vector.broadcast %cst_95 : f32 to vector<4x8x8xf32>
    %228 = arith.mulf %226, %227 : vector<4x8x8xf32>
    %229 = vector.shape_cast %3 : vector<1x8xi1> to vector<1x1x8xi1>
    %230 = vector.shape_cast %229 : vector<1x1x8xi1> to vector<1x1x8xi1>
    %231 = vector.broadcast %230 : vector<1x1x8xi1> to vector<4x8x8xi1>
    %cst_96 = arith.constant -1.000000e+09 : f32
    %232 = vector.broadcast %cst_96 : f32 to vector<4x8x8xf32>
    %233 = arith.select %231, %228, %232 : vector<4x8x8xi1>, vector<4x8x8xf32>
    %cst_97 = arith.constant dense<0xFF800000> : vector<4x8xf32>
    %234 = vector.multi_reduction <maximumf>, %233, %cst_97 [2] : vector<4x8x8xf32> to vector<4x8xf32>
    %235 = vector.shape_cast %234 : vector<4x8xf32> to vector<4x8x1xf32>
    %236 = vector.broadcast %235 : vector<4x8x1xf32> to vector<4x8x8xf32>
    %237 = arith.subf %233, %236 : vector<4x8x8xf32>
    %238 = math.exp %237 : vector<4x8x8xf32>
    %cst_98 = arith.constant dense<0.000000e+00> : vector<4x8xf32>
    %239 = vector.multi_reduction <add>, %238, %cst_98 [2] : vector<4x8x8xf32> to vector<4x8xf32>
    %240 = vector.shape_cast %239 : vector<4x8xf32> to vector<4x8x1xf32>
    %241 = tpu.reciprocal %240 {approx = true} : vector<4x8x1xf32> -> vector<4x8x1xf32>
    %242 = vector.broadcast %241 : vector<4x8x1xf32> to vector<4x8x8xf32>
    %243 = arith.mulf %238, %242 : vector<4x8x8xf32>
    %cst_99 = arith.constant dense<0.000000e+00> : vector<4x8x8xf32>
    %244 = tpu.matmul %243, %225, %cst_99 {dimension_numbers = #tpu.dot_dimension_numbers<[2], [1], [1], [2], [0, 0, 0, 1, 1, 2], [0], [0]>} : vector<4x8x8xf32>, vector<4x8x8xf32>, vector<4x8x8xf32> -> vector<4x8x8xf32>
    %245 = vector.extract_strided_slice %244 {offsets = [0, 0, 0], sizes = [1, 8, 8], strides = [1, 1, 1]} : vector<4x8x8xf32> to vector<1x8x8xf32>
    %246 = vector.shape_cast %245 : vector<1x8x8xf32> to vector<8x8xf32>
    %247 = vector.extract_strided_slice %244 {offsets = [1, 0, 0], sizes = [1, 8, 8], strides = [1, 1, 1]} : vector<4x8x8xf32> to vector<1x8x8xf32>
    %248 = vector.shape_cast %247 : vector<1x8x8xf32> to vector<8x8xf32>
    %249 = vector.extract_strided_slice %244 {offsets = [2, 0, 0], sizes = [1, 8, 8], strides = [1, 1, 1]} : vector<4x8x8xf32> to vector<1x8x8xf32>
    %250 = vector.shape_cast %249 : vector<1x8x8xf32> to vector<8x8xf32>
    %251 = vector.extract_strided_slice %244 {offsets = [3, 0, 0], sizes = [1, 8, 8], strides = [1, 1, 1]} : vector<4x8x8xf32> to vector<1x8x8xf32>
    %252 = vector.shape_cast %251 : vector<1x8x8xf32> to vector<8x8xf32>
    %253 = tpu.concatenate %246, %248, %250, %252 in 1 : vector<8x8xf32>, vector<8x8xf32>, vector<8x8xf32>, vector<8x8xf32> -> vector<8x32xf32>
    %254 = arith.truncf %253 : vector<8x32xf32> to vector<8x32xbf16>
    %cst_100 = arith.constant dense<0.000000e+00> : vector<8x32xf32>
    %255 = tpu.matmul %254, %189, %cst_100 {dimension_numbers = #tpu.dot_dimension_numbers<[1], [0], [0], [1], [0, 0, 1, 1], [], []>} : vector<8x32xbf16>, vector<32x32xbf16>, vector<8x32xf32> -> vector<8x32xf32>
    %256 = vector.broadcast %191 : vector<1x32xf32> to vector<8x32xf32>
    %257 = arith.addf %255, %256 : vector<8x32xf32>
    %258 = arith.addf %158, %257 : vector<8x32xf32>
    %c1_101 = arith.constant 1 : index
    %c0_102 = arith.constant 0 : index
    %c0_103 = arith.constant 0 : index
    %259 = vector.load %arg19[%c1_101, %c0_102, %c0_103] : memref<2x1x32xf32, #tpu.memory_space<vmem>>, vector<1x1x32xf32>
    %260 = vector.shape_cast %259 : vector<1x1x32xf32> to vector<1x32xf32>
    %c1_104 = arith.constant 1 : index
    %c0_105 = arith.constant 0 : index
    %c0_106 = arith.constant 0 : index
    %261 = vector.load %arg20[%c1_104, %c0_105, %c0_106] : memref<2x1x32xf32, #tpu.memory_space<vmem>>, vector<1x1x32xf32>
    %262 = vector.shape_cast %261 : vector<1x1x32xf32> to vector<1x32xf32>
    %cst_107 = arith.constant dense<0.000000e+00> : vector<8xf32>
    %263 = vector.multi_reduction <add>, %258, %cst_107 [1] : vector<8x32xf32> to vector<8xf32>
    %264 = vector.shape_cast %263 : vector<8xf32> to vector<8x1xf32>
    %cst_108 = arith.constant 3.200000e+01 : f32
    %265 = vector.broadcast %cst_108 : f32 to vector<8x1xf32>
    %266 = arith.divf %264, %265 : vector<8x1xf32>
    %267 = vector.broadcast %266 : vector<8x1xf32> to vector<8x32xf32>
    %268 = arith.subf %258, %267 : vector<8x32xf32>
    %269 = arith.mulf %268, %268 : vector<8x32xf32>
    %cst_109 = arith.constant dense<0.000000e+00> : vector<8xf32>
    %270 = vector.multi_reduction <add>, %269, %cst_109 [1] : vector<8x32xf32> to vector<8xf32>
    %271 = vector.shape_cast %270 : vector<8xf32> to vector<8x1xf32>
    %cst_110 = arith.constant 0.0322580636 : f32
    %272 = vector.broadcast %cst_110 : f32 to vector<8x1xf32>
    %273 = arith.mulf %271, %272 : vector<8x1xf32>
    %274 = math.sqrt %273 : vector<8x1xf32>
    %cst_111 = arith.constant 9.99999997E-7 : f32
    %275 = vector.broadcast %cst_111 : f32 to vector<8x1xf32>
    %276 = arith.addf %274, %275 : vector<8x1xf32>
    %277 = tpu.reciprocal %276 {approx = true} : vector<8x1xf32> -> vector<8x1xf32>
    %278 = vector.broadcast %260 : vector<1x32xf32> to vector<8x32xf32>
    %279 = arith.mulf %278, %268 : vector<8x32xf32>
    %280 = vector.broadcast %277 : vector<8x1xf32> to vector<8x32xf32>
    %281 = arith.mulf %279, %280 : vector<8x32xf32>
    %282 = vector.broadcast %262 : vector<1x32xf32> to vector<8x32xf32>
    %283 = arith.addf %281, %282 : vector<8x32xf32>
    %c1_112 = arith.constant 1 : index
    %c0_113 = arith.constant 0 : index
    %c0_114 = arith.constant 0 : index
    %284 = vector.load %arg13[%c1_112, %c0_113, %c0_114] : memref<2x32x64xbf16, #tpu.memory_space<vmem>>, vector<1x32x64xbf16>
    %285 = vector.shape_cast %284 : vector<1x32x64xbf16> to vector<32x64xbf16>
    %c1_115 = arith.constant 1 : index
    %c0_116 = arith.constant 0 : index
    %c0_117 = arith.constant 0 : index
    %286 = vector.load %arg14[%c1_115, %c0_116, %c0_117] : memref<2x1x64xf32, #tpu.memory_space<vmem>>, vector<1x1x64xf32>
    %287 = vector.shape_cast %286 : vector<1x1x64xf32> to vector<1x64xf32>
    %c1_118 = arith.constant 1 : index
    %c0_119 = arith.constant 0 : index
    %c0_120 = arith.constant 0 : index
    %288 = vector.load %arg15[%c1_118, %c0_119, %c0_120] : memref<2x64x32xbf16, #tpu.memory_space<vmem>>, vector<1x64x32xbf16>
    %289 = vector.shape_cast %288 : vector<1x64x32xbf16> to vector<64x32xbf16>
    %c1_121 = arith.constant 1 : index
    %c0_122 = arith.constant 0 : index
    %c0_123 = arith.constant 0 : index
    %290 = vector.load %arg16[%c1_121, %c0_122, %c0_123] : memref<2x1x32xf32, #tpu.memory_space<vmem>>, vector<1x1x32xf32>
    %291 = vector.shape_cast %290 : vector<1x1x32xf32> to vector<1x32xf32>
    %292 = arith.truncf %283 : vector<8x32xf32> to vector<8x32xbf16>
    %cst_124 = arith.constant dense<0.000000e+00> : vector<8x64xf32>
    %293 = tpu.matmul %292, %285, %cst_124 {dimension_numbers = #tpu.dot_dimension_numbers<[1], [0], [0], [1], [0, 0, 1, 1], [], []>} : vector<8x32xbf16>, vector<32x64xbf16>, vector<8x64xf32> -> vector<8x64xf32>
    %294 = vector.broadcast %287 : vector<1x64xf32> to vector<8x64xf32>
    %295 = arith.addf %293, %294 : vector<8x64xf32>
    %cst_125 = arith.constant 0.000000e+00 : f32
    %296 = vector.broadcast %cst_125 : f32 to vector<8x64xf32>
    %297 = arith.maximumf %295, %296 : vector<8x64xf32>
    %298 = arith.truncf %297 : vector<8x64xf32> to vector<8x64xbf16>
    %cst_126 = arith.constant dense<0.000000e+00> : vector<8x32xf32>
    %299 = tpu.matmul %298, %289, %cst_126 {dimension_numbers = #tpu.dot_dimension_numbers<[1], [0], [0], [1], [0, 0, 1, 1], [], []>} : vector<8x64xbf16>, vector<64x32xbf16>, vector<8x32xf32> -> vector<8x32xf32>
    %300 = vector.broadcast %291 : vector<1x32xf32> to vector<8x32xf32>
    %301 = arith.addf %299, %300 : vector<8x32xf32>
    %302 = arith.addf %258, %301 : vector<8x32xf32>
    %c0_127 = arith.constant 0 : index
    %c0_128 = arith.constant 0 : index
    %303 = vector.load %arg21[%c0_127, %c0_128] : memref<1x32xf32, #tpu.memory_space<vmem>>, vector<1x32xf32>
    %c0_129 = arith.constant 0 : index
    %c0_130 = arith.constant 0 : index
    %304 = vector.load %arg22[%c0_129, %c0_130] : memref<1x32xf32, #tpu.memory_space<vmem>>, vector<1x32xf32>
    %cst_131 = arith.constant dense<0.000000e+00> : vector<8xf32>
    %305 = vector.multi_reduction <add>, %302, %cst_131 [1] : vector<8x32xf32> to vector<8xf32>
    %306 = vector.shape_cast %305 : vector<8xf32> to vector<8x1xf32>
    %cst_132 = arith.constant 3.200000e+01 : f32
    %307 = vector.broadcast %cst_132 : f32 to vector<8x1xf32>
    %308 = arith.divf %306, %307 : vector<8x1xf32>
    %309 = vector.broadcast %308 : vector<8x1xf32> to vector<8x32xf32>
    %310 = arith.subf %302, %309 : vector<8x32xf32>
    %311 = arith.mulf %310, %310 : vector<8x32xf32>
    %cst_133 = arith.constant dense<0.000000e+00> : vector<8xf32>
    %312 = vector.multi_reduction <add>, %311, %cst_133 [1] : vector<8x32xf32> to vector<8xf32>
    %313 = vector.shape_cast %312 : vector<8xf32> to vector<8x1xf32>
    %cst_134 = arith.constant 0.0322580636 : f32
    %314 = vector.broadcast %cst_134 : f32 to vector<8x1xf32>
    %315 = arith.mulf %313, %314 : vector<8x1xf32>
    %316 = math.sqrt %315 : vector<8x1xf32>
    %cst_135 = arith.constant 9.99999997E-7 : f32
    %317 = vector.broadcast %cst_135 : f32 to vector<8x1xf32>
    %318 = arith.addf %316, %317 : vector<8x1xf32>
    %319 = tpu.reciprocal %318 {approx = true} : vector<8x1xf32> -> vector<8x1xf32>
    %320 = vector.broadcast %303 : vector<1x32xf32> to vector<8x32xf32>
    %321 = arith.mulf %320, %310 : vector<8x32xf32>
    %322 = vector.broadcast %319 : vector<8x1xf32> to vector<8x32xf32>
    %323 = arith.mulf %321, %322 : vector<8x32xf32>
    %324 = vector.broadcast %304 : vector<1x32xf32> to vector<8x32xf32>
    %325 = arith.addf %323, %324 : vector<8x32xf32>
    %c0_136 = arith.constant 0 : index
    %c0_137 = arith.constant 0 : index
    %326 = vector.load %arg2[%c0_136, %c0_137] : memref<8x16xf32, #tpu.memory_space<vmem>>, vector<8x16xf32>
    %c0_138 = arith.constant 0 : index
    %c0_139 = arith.constant 0 : index
    %327 = vector.load %arg8[%c0_138, %c0_139] : memref<16x32xf32, #tpu.memory_space<vmem>>, vector<16x32xf32>
    %cst_140 = arith.constant dense<0.000000e+00> : vector<8x32xf32>
    %328 = tpu.matmul %326, %327, %cst_140 {dimension_numbers = #tpu.dot_dimension_numbers<[1], [0], [0], [1], [0, 0, 1, 1], [], []>} : vector<8x16xf32>, vector<16x32xf32>, vector<8x32xf32> -> vector<8x32xf32>
    %cst_141 = arith.constant 5.65685415 : f32
    %329 = vector.broadcast %cst_141 : f32 to vector<8x32xf32>
    %330 = arith.mulf %328, %329 : vector<8x32xf32>
    %c0_142 = arith.constant 0 : index
    %c0_143 = arith.constant 0 : index
    %331 = vector.load %arg6[%c0_142, %c0_143] : memref<8x32xf32, #tpu.memory_space<vmem>>, vector<8x32xf32>
    %332 = arith.addf %330, %331 : vector<8x32xf32>
    %c0_144 = arith.constant 0 : index
    %c0_145 = arith.constant 0 : index
    %c0_146 = arith.constant 0 : index
    %333 = vector.load %arg35[%c0_144, %c0_145, %c0_146] : memref<2x1x32xf32, #tpu.memory_space<vmem>>, vector<1x1x32xf32>
    %334 = vector.shape_cast %333 : vector<1x1x32xf32> to vector<1x32xf32>
    %c0_147 = arith.constant 0 : index
    %c0_148 = arith.constant 0 : index
    %c0_149 = arith.constant 0 : index
    %335 = vector.load %arg36[%c0_147, %c0_148, %c0_149] : memref<2x1x32xf32, #tpu.memory_space<vmem>>, vector<1x1x32xf32>
    %336 = vector.shape_cast %335 : vector<1x1x32xf32> to vector<1x32xf32>
    %cst_150 = arith.constant dense<0.000000e+00> : vector<8xf32>
    %337 = vector.multi_reduction <add>, %332, %cst_150 [1] : vector<8x32xf32> to vector<8xf32>
    %338 = vector.shape_cast %337 : vector<8xf32> to vector<8x1xf32>
    %cst_151 = arith.constant 3.200000e+01 : f32
    %339 = vector.broadcast %cst_151 : f32 to vector<8x1xf32>
    %340 = arith.divf %338, %339 : vector<8x1xf32>
    %341 = vector.broadcast %340 : vector<8x1xf32> to vector<8x32xf32>
    %342 = arith.subf %332, %341 : vector<8x32xf32>
    %343 = arith.mulf %342, %342 : vector<8x32xf32>
    %cst_152 = arith.constant dense<0.000000e+00> : vector<8xf32>
    %344 = vector.multi_reduction <add>, %343, %cst_152 [1] : vector<8x32xf32> to vector<8xf32>
    %345 = vector.shape_cast %344 : vector<8xf32> to vector<8x1xf32>
    %cst_153 = arith.constant 0.0322580636 : f32
    %346 = vector.broadcast %cst_153 : f32 to vector<8x1xf32>
    %347 = arith.mulf %345, %346 : vector<8x1xf32>
    %348 = math.sqrt %347 : vector<8x1xf32>
    %cst_154 = arith.constant 9.99999997E-7 : f32
    %349 = vector.broadcast %cst_154 : f32 to vector<8x1xf32>
    %350 = arith.addf %348, %349 : vector<8x1xf32>
    %351 = tpu.reciprocal %350 {approx = true} : vector<8x1xf32> -> vector<8x1xf32>
    %352 = vector.broadcast %334 : vector<1x32xf32> to vector<8x32xf32>
    %353 = arith.mulf %352, %342 : vector<8x32xf32>
    %354 = vector.broadcast %351 : vector<8x1xf32> to vector<8x32xf32>
    %355 = arith.mulf %353, %354 : vector<8x32xf32>
    %356 = vector.broadcast %336 : vector<1x32xf32> to vector<8x32xf32>
    %357 = arith.addf %355, %356 : vector<8x32xf32>
    %c0_155 = arith.constant 0 : index
    %c0_156 = arith.constant 0 : index
    %c0_157 = arith.constant 0 : index
    %358 = vector.load %arg23[%c0_155, %c0_156, %c0_157] : memref<2x32x96xbf16, #tpu.memory_space<vmem>>, vector<1x32x96xbf16>
    %359 = vector.shape_cast %358 : vector<1x32x96xbf16> to vector<32x96xbf16>
    %c0_158 = arith.constant 0 : index
    %c0_159 = arith.constant 0 : index
    %c0_160 = arith.constant 0 : index
    %360 = vector.load %arg24[%c0_158, %c0_159, %c0_160] : memref<2x1x96xf32, #tpu.memory_space<vmem>>, vector<1x1x96xf32>
    %361 = vector.shape_cast %360 : vector<1x1x96xf32> to vector<1x96xf32>
    %c0_161 = arith.constant 0 : index
    %c0_162 = arith.constant 0 : index
    %c0_163 = arith.constant 0 : index
    %362 = vector.load %arg25[%c0_161, %c0_162, %c0_163] : memref<2x32x32xbf16, #tpu.memory_space<vmem>>, vector<1x32x32xbf16>
    %363 = vector.shape_cast %362 : vector<1x32x32xbf16> to vector<32x32xbf16>
    %c0_164 = arith.constant 0 : index
    %c0_165 = arith.constant 0 : index
    %c0_166 = arith.constant 0 : index
    %364 = vector.load %arg26[%c0_164, %c0_165, %c0_166] : memref<2x1x32xf32, #tpu.memory_space<vmem>>, vector<1x1x32xf32>
    %365 = vector.shape_cast %364 : vector<1x1x32xf32> to vector<1x32xf32>
    %366 = arith.truncf %357 : vector<8x32xf32> to vector<8x32xbf16>
    %cst_167 = arith.constant dense<0.000000e+00> : vector<8x96xf32>
    %367 = tpu.matmul %366, %359, %cst_167 {dimension_numbers = #tpu.dot_dimension_numbers<[1], [0], [0], [1], [0, 0, 1, 1], [], []>} : vector<8x32xbf16>, vector<32x96xbf16>, vector<8x96xf32> -> vector<8x96xf32>
    %368 = vector.broadcast %361 : vector<1x96xf32> to vector<8x96xf32>
    %369 = arith.addf %367, %368 : vector<8x96xf32>
    %370 = vector.extract_strided_slice %369 {offsets = [0, 0], sizes = [8, 32], strides = [1, 1]} : vector<8x96xf32> to vector<8x32xf32>
    %371 = vector.extract_strided_slice %369 {offsets = [0, 32], sizes = [8, 32], strides = [1, 1]} : vector<8x96xf32> to vector<8x32xf32>
    %372 = vector.extract_strided_slice %369 {offsets = [0, 64], sizes = [8, 32], strides = [1, 1]} : vector<8x96xf32> to vector<8x32xf32>
    %373 = vector.extract_strided_slice %370 {offsets = [0, 0], sizes = [8, 8], strides = [1, 1]} : vector<8x32xf32> to vector<8x8xf32>
    %374 = vector.extract_strided_slice %370 {offsets = [0, 8], sizes = [8, 8], strides = [1, 1]} : vector<8x32xf32> to vector<8x8xf32>
    %375 = vector.extract_strided_slice %370 {offsets = [0, 16], sizes = [8, 8], strides = [1, 1]} : vector<8x32xf32> to vector<8x8xf32>
    %376 = vector.extract_strided_slice %370 {offsets = [0, 24], sizes = [8, 8], strides = [1, 1]} : vector<8x32xf32> to vector<8x8xf32>
    %377 = vector.shape_cast %373 : vector<8x8xf32> to vector<1x8x8xf32>
    %378 = vector.shape_cast %374 : vector<8x8xf32> to vector<1x8x8xf32>
    %379 = vector.shape_cast %375 : vector<8x8xf32> to vector<1x8x8xf32>
    %380 = vector.shape_cast %376 : vector<8x8xf32> to vector<1x8x8xf32>
    %381 = tpu.concatenate %377, %378, %379, %380 in 0 : vector<1x8x8xf32>, vector<1x8x8xf32>, vector<1x8x8xf32>, vector<1x8x8xf32> -> vector<4x8x8xf32>
    %382 = vector.extract_strided_slice %371 {offsets = [0, 0], sizes = [8, 8], strides = [1, 1]} : vector<8x32xf32> to vector<8x8xf32>
    %383 = vector.extract_strided_slice %371 {offsets = [0, 8], sizes = [8, 8], strides = [1, 1]} : vector<8x32xf32> to vector<8x8xf32>
    %384 = vector.extract_strided_slice %371 {offsets = [0, 16], sizes = [8, 8], strides = [1, 1]} : vector<8x32xf32> to vector<8x8xf32>
    %385 = vector.extract_strided_slice %371 {offsets = [0, 24], sizes = [8, 8], strides = [1, 1]} : vector<8x32xf32> to vector<8x8xf32>
    %386 = vector.shape_cast %382 : vector<8x8xf32> to vector<1x8x8xf32>
    %387 = vector.shape_cast %383 : vector<8x8xf32> to vector<1x8x8xf32>
    %388 = vector.shape_cast %384 : vector<8x8xf32> to vector<1x8x8xf32>
    %389 = vector.shape_cast %385 : vector<8x8xf32> to vector<1x8x8xf32>
    %390 = tpu.concatenate %386, %387, %388, %389 in 0 : vector<1x8x8xf32>, vector<1x8x8xf32>, vector<1x8x8xf32>, vector<1x8x8xf32> -> vector<4x8x8xf32>
    %391 = vector.extract_strided_slice %372 {offsets = [0, 0], sizes = [8, 8], strides = [1, 1]} : vector<8x32xf32> to vector<8x8xf32>
    %392 = vector.extract_strided_slice %372 {offsets = [0, 8], sizes = [8, 8], strides = [1, 1]} : vector<8x32xf32> to vector<8x8xf32>
    %393 = vector.extract_strided_slice %372 {offsets = [0, 16], sizes = [8, 8], strides = [1, 1]} : vector<8x32xf32> to vector<8x8xf32>
    %394 = vector.extract_strided_slice %372 {offsets = [0, 24], sizes = [8, 8], strides = [1, 1]} : vector<8x32xf32> to vector<8x8xf32>
    %395 = vector.shape_cast %391 : vector<8x8xf32> to vector<1x8x8xf32>
    %396 = vector.shape_cast %392 : vector<8x8xf32> to vector<1x8x8xf32>
    %397 = vector.shape_cast %393 : vector<8x8xf32> to vector<1x8x8xf32>
    %398 = vector.shape_cast %394 : vector<8x8xf32> to vector<1x8x8xf32>
    %399 = tpu.concatenate %395, %396, %397, %398 in 0 : vector<1x8x8xf32>, vector<1x8x8xf32>, vector<1x8x8xf32>, vector<1x8x8xf32> -> vector<4x8x8xf32>
    %cst_168 = arith.constant dense<0.000000e+00> : vector<4x8x8xf32>
    %400 = tpu.matmul %381, %390, %cst_168 {dimension_numbers = #tpu.dot_dimension_numbers<[2], [2], [1], [1], [0, 0, 0, 1, 1, 1], [0], [0]>} : vector<4x8x8xf32>, vector<4x8x8xf32>, vector<4x8x8xf32> -> vector<4x8x8xf32>
    %cst_169 = arith.constant 0.353553385 : f32
    %401 = vector.broadcast %cst_169 : f32 to vector<4x8x8xf32>
    %402 = arith.mulf %400, %401 : vector<4x8x8xf32>
    %403 = vector.shape_cast %7 : vector<8x8xi1> to vector<1x8x8xi1>
    %404 = vector.shape_cast %403 : vector<1x8x8xi1> to vector<1x8x8xi1>
    %405 = vector.broadcast %404 : vector<1x8x8xi1> to vector<4x8x8xi1>
    %cst_170 = arith.constant -1.000000e+09 : f32
    %406 = vector.broadcast %cst_170 : f32 to vector<4x8x8xf32>
    %407 = arith.select %405, %402, %406 : vector<4x8x8xi1>, vector<4x8x8xf32>
    %cst_171 = arith.constant dense<0xFF800000> : vector<4x8xf32>
    %408 = vector.multi_reduction <maximumf>, %407, %cst_171 [2] : vector<4x8x8xf32> to vector<4x8xf32>
    %409 = vector.shape_cast %408 : vector<4x8xf32> to vector<4x8x1xf32>
    %410 = vector.broadcast %409 : vector<4x8x1xf32> to vector<4x8x8xf32>
    %411 = arith.subf %407, %410 : vector<4x8x8xf32>
    %412 = math.exp %411 : vector<4x8x8xf32>
    %cst_172 = arith.constant dense<0.000000e+00> : vector<4x8xf32>
    %413 = vector.multi_reduction <add>, %412, %cst_172 [2] : vector<4x8x8xf32> to vector<4x8xf32>
    %414 = vector.shape_cast %413 : vector<4x8xf32> to vector<4x8x1xf32>
    %415 = tpu.reciprocal %414 {approx = true} : vector<4x8x1xf32> -> vector<4x8x1xf32>
    %416 = vector.broadcast %415 : vector<4x8x1xf32> to vector<4x8x8xf32>
    %417 = arith.mulf %412, %416 : vector<4x8x8xf32>
    %cst_173 = arith.constant dense<0.000000e+00> : vector<4x8x8xf32>
    %418 = tpu.matmul %417, %399, %cst_173 {dimension_numbers = #tpu.dot_dimension_numbers<[2], [1], [1], [2], [0, 0, 0, 1, 1, 2], [0], [0]>} : vector<4x8x8xf32>, vector<4x8x8xf32>, vector<4x8x8xf32> -> vector<4x8x8xf32>
    %419 = vector.extract_strided_slice %418 {offsets = [0, 0, 0], sizes = [1, 8, 8], strides = [1, 1, 1]} : vector<4x8x8xf32> to vector<1x8x8xf32>
    %420 = vector.shape_cast %419 : vector<1x8x8xf32> to vector<8x8xf32>
    %421 = vector.extract_strided_slice %418 {offsets = [1, 0, 0], sizes = [1, 8, 8], strides = [1, 1, 1]} : vector<4x8x8xf32> to vector<1x8x8xf32>
    %422 = vector.shape_cast %421 : vector<1x8x8xf32> to vector<8x8xf32>
    %423 = vector.extract_strided_slice %418 {offsets = [2, 0, 0], sizes = [1, 8, 8], strides = [1, 1, 1]} : vector<4x8x8xf32> to vector<1x8x8xf32>
    %424 = vector.shape_cast %423 : vector<1x8x8xf32> to vector<8x8xf32>
    %425 = vector.extract_strided_slice %418 {offsets = [3, 0, 0], sizes = [1, 8, 8], strides = [1, 1, 1]} : vector<4x8x8xf32> to vector<1x8x8xf32>
    %426 = vector.shape_cast %425 : vector<1x8x8xf32> to vector<8x8xf32>
    %427 = tpu.concatenate %420, %422, %424, %426 in 1 : vector<8x8xf32>, vector<8x8xf32>, vector<8x8xf32>, vector<8x8xf32> -> vector<8x32xf32>
    %428 = arith.truncf %427 : vector<8x32xf32> to vector<8x32xbf16>
    %cst_174 = arith.constant dense<0.000000e+00> : vector<8x32xf32>
    %429 = tpu.matmul %428, %363, %cst_174 {dimension_numbers = #tpu.dot_dimension_numbers<[1], [0], [0], [1], [0, 0, 1, 1], [], []>} : vector<8x32xbf16>, vector<32x32xbf16>, vector<8x32xf32> -> vector<8x32xf32>
    %430 = vector.broadcast %365 : vector<1x32xf32> to vector<8x32xf32>
    %431 = arith.addf %429, %430 : vector<8x32xf32>
    %432 = arith.addf %332, %431 : vector<8x32xf32>
    %c0_175 = arith.constant 0 : index
    %c0_176 = arith.constant 0 : index
    %c0_177 = arith.constant 0 : index
    %433 = vector.load %arg37[%c0_175, %c0_176, %c0_177] : memref<2x1x32xf32, #tpu.memory_space<vmem>>, vector<1x1x32xf32>
    %434 = vector.shape_cast %433 : vector<1x1x32xf32> to vector<1x32xf32>
    %c0_178 = arith.constant 0 : index
    %c0_179 = arith.constant 0 : index
    %c0_180 = arith.constant 0 : index
    %435 = vector.load %arg38[%c0_178, %c0_179, %c0_180] : memref<2x1x32xf32, #tpu.memory_space<vmem>>, vector<1x1x32xf32>
    %436 = vector.shape_cast %435 : vector<1x1x32xf32> to vector<1x32xf32>
    %cst_181 = arith.constant dense<0.000000e+00> : vector<8xf32>
    %437 = vector.multi_reduction <add>, %432, %cst_181 [1] : vector<8x32xf32> to vector<8xf32>
    %438 = vector.shape_cast %437 : vector<8xf32> to vector<8x1xf32>
    %cst_182 = arith.constant 3.200000e+01 : f32
    %439 = vector.broadcast %cst_182 : f32 to vector<8x1xf32>
    %440 = arith.divf %438, %439 : vector<8x1xf32>
    %441 = vector.broadcast %440 : vector<8x1xf32> to vector<8x32xf32>
    %442 = arith.subf %432, %441 : vector<8x32xf32>
    %443 = arith.mulf %442, %442 : vector<8x32xf32>
    %cst_183 = arith.constant dense<0.000000e+00> : vector<8xf32>
    %444 = vector.multi_reduction <add>, %443, %cst_183 [1] : vector<8x32xf32> to vector<8xf32>
    %445 = vector.shape_cast %444 : vector<8xf32> to vector<8x1xf32>
    %cst_184 = arith.constant 0.0322580636 : f32
    %446 = vector.broadcast %cst_184 : f32 to vector<8x1xf32>
    %447 = arith.mulf %445, %446 : vector<8x1xf32>
    %448 = math.sqrt %447 : vector<8x1xf32>
    %cst_185 = arith.constant 9.99999997E-7 : f32
    %449 = vector.broadcast %cst_185 : f32 to vector<8x1xf32>
    %450 = arith.addf %448, %449 : vector<8x1xf32>
    %451 = tpu.reciprocal %450 {approx = true} : vector<8x1xf32> -> vector<8x1xf32>
    %452 = vector.broadcast %434 : vector<1x32xf32> to vector<8x32xf32>
    %453 = arith.mulf %452, %442 : vector<8x32xf32>
    %454 = vector.broadcast %451 : vector<8x1xf32> to vector<8x32xf32>
    %455 = arith.mulf %453, %454 : vector<8x32xf32>
    %456 = vector.broadcast %436 : vector<1x32xf32> to vector<8x32xf32>
    %457 = arith.addf %455, %456 : vector<8x32xf32>
    %c0_186 = arith.constant 0 : index
    %c0_187 = arith.constant 0 : index
    %c0_188 = arith.constant 0 : index
    %458 = vector.load %arg27[%c0_186, %c0_187, %c0_188] : memref<2x32x96xbf16, #tpu.memory_space<vmem>>, vector<1x32x96xbf16>
    %459 = vector.shape_cast %458 : vector<1x32x96xbf16> to vector<32x96xbf16>
    %c0_189 = arith.constant 0 : index
    %c0_190 = arith.constant 0 : index
    %c0_191 = arith.constant 0 : index
    %460 = vector.load %arg28[%c0_189, %c0_190, %c0_191] : memref<2x1x96xf32, #tpu.memory_space<vmem>>, vector<1x1x96xf32>
    %461 = vector.shape_cast %460 : vector<1x1x96xf32> to vector<1x96xf32>
    %c0_192 = arith.constant 0 : index
    %c0_193 = arith.constant 0 : index
    %c0_194 = arith.constant 0 : index
    %462 = vector.load %arg29[%c0_192, %c0_193, %c0_194] : memref<2x32x32xbf16, #tpu.memory_space<vmem>>, vector<1x32x32xbf16>
    %463 = vector.shape_cast %462 : vector<1x32x32xbf16> to vector<32x32xbf16>
    %c0_195 = arith.constant 0 : index
    %c0_196 = arith.constant 0 : index
    %c0_197 = arith.constant 0 : index
    %464 = vector.load %arg30[%c0_195, %c0_196, %c0_197] : memref<2x1x32xf32, #tpu.memory_space<vmem>>, vector<1x1x32xf32>
    %465 = vector.shape_cast %464 : vector<1x1x32xf32> to vector<1x32xf32>
    %466 = arith.truncf %457 : vector<8x32xf32> to vector<8x32xbf16>
    %467 = vector.extract_strided_slice %459 {offsets = [0, 0], sizes = [32, 32], strides = [1, 1]} : vector<32x96xbf16> to vector<32x32xbf16>
    %cst_198 = arith.constant dense<0.000000e+00> : vector<8x32xf32>
    %468 = tpu.matmul %466, %467, %cst_198 {dimension_numbers = #tpu.dot_dimension_numbers<[1], [0], [0], [1], [0, 0, 1, 1], [], []>} : vector<8x32xbf16>, vector<32x32xbf16>, vector<8x32xf32> -> vector<8x32xf32>
    %469 = vector.extract_strided_slice %461 {offsets = [0, 0], sizes = [1, 32], strides = [1, 1]} : vector<1x96xf32> to vector<1x32xf32>
    %470 = vector.broadcast %469 : vector<1x32xf32> to vector<8x32xf32>
    %471 = arith.addf %468, %470 : vector<8x32xf32>
    %472 = arith.truncf %325 : vector<8x32xf32> to vector<8x32xbf16>
    %473 = vector.extract_strided_slice %459 {offsets = [0, 32], sizes = [32, 64], strides = [1, 1]} : vector<32x96xbf16> to vector<32x64xbf16>
    %cst_199 = arith.constant dense<0.000000e+00> : vector<8x64xf32>
    %474 = tpu.matmul %472, %473, %cst_199 {dimension_numbers = #tpu.dot_dimension_numbers<[1], [0], [0], [1], [0, 0, 1, 1], [], []>} : vector<8x32xbf16>, vector<32x64xbf16>, vector<8x64xf32> -> vector<8x64xf32>
    %475 = vector.extract_strided_slice %461 {offsets = [0, 32], sizes = [1, 64], strides = [1, 1]} : vector<1x96xf32> to vector<1x64xf32>
    %476 = vector.broadcast %475 : vector<1x64xf32> to vector<8x64xf32>
    %477 = arith.addf %474, %476 : vector<8x64xf32>
    %478 = vector.extract_strided_slice %477 {offsets = [0, 0], sizes = [8, 32], strides = [1, 1]} : vector<8x64xf32> to vector<8x32xf32>
    %479 = vector.extract_strided_slice %477 {offsets = [0, 32], sizes = [8, 32], strides = [1, 1]} : vector<8x64xf32> to vector<8x32xf32>
    %480 = vector.extract_strided_slice %471 {offsets = [0, 0], sizes = [8, 8], strides = [1, 1]} : vector<8x32xf32> to vector<8x8xf32>
    %481 = vector.extract_strided_slice %471 {offsets = [0, 8], sizes = [8, 8], strides = [1, 1]} : vector<8x32xf32> to vector<8x8xf32>
    %482 = vector.extract_strided_slice %471 {offsets = [0, 16], sizes = [8, 8], strides = [1, 1]} : vector<8x32xf32> to vector<8x8xf32>
    %483 = vector.extract_strided_slice %471 {offsets = [0, 24], sizes = [8, 8], strides = [1, 1]} : vector<8x32xf32> to vector<8x8xf32>
    %484 = vector.shape_cast %480 : vector<8x8xf32> to vector<1x8x8xf32>
    %485 = vector.shape_cast %481 : vector<8x8xf32> to vector<1x8x8xf32>
    %486 = vector.shape_cast %482 : vector<8x8xf32> to vector<1x8x8xf32>
    %487 = vector.shape_cast %483 : vector<8x8xf32> to vector<1x8x8xf32>
    %488 = tpu.concatenate %484, %485, %486, %487 in 0 : vector<1x8x8xf32>, vector<1x8x8xf32>, vector<1x8x8xf32>, vector<1x8x8xf32> -> vector<4x8x8xf32>
    %489 = vector.extract_strided_slice %478 {offsets = [0, 0], sizes = [8, 8], strides = [1, 1]} : vector<8x32xf32> to vector<8x8xf32>
    %490 = vector.extract_strided_slice %478 {offsets = [0, 8], sizes = [8, 8], strides = [1, 1]} : vector<8x32xf32> to vector<8x8xf32>
    %491 = vector.extract_strided_slice %478 {offsets = [0, 16], sizes = [8, 8], strides = [1, 1]} : vector<8x32xf32> to vector<8x8xf32>
    %492 = vector.extract_strided_slice %478 {offsets = [0, 24], sizes = [8, 8], strides = [1, 1]} : vector<8x32xf32> to vector<8x8xf32>
    %493 = vector.shape_cast %489 : vector<8x8xf32> to vector<1x8x8xf32>
    %494 = vector.shape_cast %490 : vector<8x8xf32> to vector<1x8x8xf32>
    %495 = vector.shape_cast %491 : vector<8x8xf32> to vector<1x8x8xf32>
    %496 = vector.shape_cast %492 : vector<8x8xf32> to vector<1x8x8xf32>
    %497 = tpu.concatenate %493, %494, %495, %496 in 0 : vector<1x8x8xf32>, vector<1x8x8xf32>, vector<1x8x8xf32>, vector<1x8x8xf32> -> vector<4x8x8xf32>
    %498 = vector.extract_strided_slice %479 {offsets = [0, 0], sizes = [8, 8], strides = [1, 1]} : vector<8x32xf32> to vector<8x8xf32>
    %499 = vector.extract_strided_slice %479 {offsets = [0, 8], sizes = [8, 8], strides = [1, 1]} : vector<8x32xf32> to vector<8x8xf32>
    %500 = vector.extract_strided_slice %479 {offsets = [0, 16], sizes = [8, 8], strides = [1, 1]} : vector<8x32xf32> to vector<8x8xf32>
    %501 = vector.extract_strided_slice %479 {offsets = [0, 24], sizes = [8, 8], strides = [1, 1]} : vector<8x32xf32> to vector<8x8xf32>
    %502 = vector.shape_cast %498 : vector<8x8xf32> to vector<1x8x8xf32>
    %503 = vector.shape_cast %499 : vector<8x8xf32> to vector<1x8x8xf32>
    %504 = vector.shape_cast %500 : vector<8x8xf32> to vector<1x8x8xf32>
    %505 = vector.shape_cast %501 : vector<8x8xf32> to vector<1x8x8xf32>
    %506 = tpu.concatenate %502, %503, %504, %505 in 0 : vector<1x8x8xf32>, vector<1x8x8xf32>, vector<1x8x8xf32>, vector<1x8x8xf32> -> vector<4x8x8xf32>
    %cst_200 = arith.constant dense<0.000000e+00> : vector<4x8x8xf32>
    %507 = tpu.matmul %488, %497, %cst_200 {dimension_numbers = #tpu.dot_dimension_numbers<[2], [2], [1], [1], [0, 0, 0, 1, 1, 1], [0], [0]>} : vector<4x8x8xf32>, vector<4x8x8xf32>, vector<4x8x8xf32> -> vector<4x8x8xf32>
    %cst_201 = arith.constant 0.353553385 : f32
    %508 = vector.broadcast %cst_201 : f32 to vector<4x8x8xf32>
    %509 = arith.mulf %507, %508 : vector<4x8x8xf32>
    %510 = vector.shape_cast %3 : vector<1x8xi1> to vector<1x1x8xi1>
    %511 = vector.shape_cast %510 : vector<1x1x8xi1> to vector<1x1x8xi1>
    %512 = vector.broadcast %511 : vector<1x1x8xi1> to vector<4x8x8xi1>
    %cst_202 = arith.constant -1.000000e+09 : f32
    %513 = vector.broadcast %cst_202 : f32 to vector<4x8x8xf32>
    %514 = arith.select %512, %509, %513 : vector<4x8x8xi1>, vector<4x8x8xf32>
    %cst_203 = arith.constant dense<0xFF800000> : vector<4x8xf32>
    %515 = vector.multi_reduction <maximumf>, %514, %cst_203 [2] : vector<4x8x8xf32> to vector<4x8xf32>
    %516 = vector.shape_cast %515 : vector<4x8xf32> to vector<4x8x1xf32>
    %517 = vector.broadcast %516 : vector<4x8x1xf32> to vector<4x8x8xf32>
    %518 = arith.subf %514, %517 : vector<4x8x8xf32>
    %519 = math.exp %518 : vector<4x8x8xf32>
    %cst_204 = arith.constant dense<0.000000e+00> : vector<4x8xf32>
    %520 = vector.multi_reduction <add>, %519, %cst_204 [2] : vector<4x8x8xf32> to vector<4x8xf32>
    %521 = vector.shape_cast %520 : vector<4x8xf32> to vector<4x8x1xf32>
    %522 = tpu.reciprocal %521 {approx = true} : vector<4x8x1xf32> -> vector<4x8x1xf32>
    %523 = vector.broadcast %522 : vector<4x8x1xf32> to vector<4x8x8xf32>
    %524 = arith.mulf %519, %523 : vector<4x8x8xf32>
    %cst_205 = arith.constant dense<0.000000e+00> : vector<4x8x8xf32>
    %525 = tpu.matmul %524, %506, %cst_205 {dimension_numbers = #tpu.dot_dimension_numbers<[2], [1], [1], [2], [0, 0, 0, 1, 1, 2], [0], [0]>} : vector<4x8x8xf32>, vector<4x8x8xf32>, vector<4x8x8xf32> -> vector<4x8x8xf32>
    %526 = vector.extract_strided_slice %525 {offsets = [0, 0, 0], sizes = [1, 8, 8], strides = [1, 1, 1]} : vector<4x8x8xf32> to vector<1x8x8xf32>
    %527 = vector.shape_cast %526 : vector<1x8x8xf32> to vector<8x8xf32>
    %528 = vector.extract_strided_slice %525 {offsets = [1, 0, 0], sizes = [1, 8, 8], strides = [1, 1, 1]} : vector<4x8x8xf32> to vector<1x8x8xf32>
    %529 = vector.shape_cast %528 : vector<1x8x8xf32> to vector<8x8xf32>
    %530 = vector.extract_strided_slice %525 {offsets = [2, 0, 0], sizes = [1, 8, 8], strides = [1, 1, 1]} : vector<4x8x8xf32> to vector<1x8x8xf32>
    %531 = vector.shape_cast %530 : vector<1x8x8xf32> to vector<8x8xf32>
    %532 = vector.extract_strided_slice %525 {offsets = [3, 0, 0], sizes = [1, 8, 8], strides = [1, 1, 1]} : vector<4x8x8xf32> to vector<1x8x8xf32>
    %533 = vector.shape_cast %532 : vector<1x8x8xf32> to vector<8x8xf32>
    %534 = tpu.concatenate %527, %529, %531, %533 in 1 : vector<8x8xf32>, vector<8x8xf32>, vector<8x8xf32>, vector<8x8xf32> -> vector<8x32xf32>
    %535 = arith.truncf %534 : vector<8x32xf32> to vector<8x32xbf16>
    %cst_206 = arith.constant dense<0.000000e+00> : vector<8x32xf32>
    %536 = tpu.matmul %535, %463, %cst_206 {dimension_numbers = #tpu.dot_dimension_numbers<[1], [0], [0], [1], [0, 0, 1, 1], [], []>} : vector<8x32xbf16>, vector<32x32xbf16>, vector<8x32xf32> -> vector<8x32xf32>
    %537 = vector.broadcast %465 : vector<1x32xf32> to vector<8x32xf32>
    %538 = arith.addf %536, %537 : vector<8x32xf32>
    %539 = arith.addf %432, %538 : vector<8x32xf32>
    %c0_207 = arith.constant 0 : index
    %c0_208 = arith.constant 0 : index
    %c0_209 = arith.constant 0 : index
    %540 = vector.load %arg39[%c0_207, %c0_208, %c0_209] : memref<2x1x32xf32, #tpu.memory_space<vmem>>, vector<1x1x32xf32>
    %541 = vector.shape_cast %540 : vector<1x1x32xf32> to vector<1x32xf32>
    %c0_210 = arith.constant 0 : index
    %c0_211 = arith.constant 0 : index
    %c0_212 = arith.constant 0 : index
    %542 = vector.load %arg40[%c0_210, %c0_211, %c0_212] : memref<2x1x32xf32, #tpu.memory_space<vmem>>, vector<1x1x32xf32>
    %543 = vector.shape_cast %542 : vector<1x1x32xf32> to vector<1x32xf32>
    %cst_213 = arith.constant dense<0.000000e+00> : vector<8xf32>
    %544 = vector.multi_reduction <add>, %539, %cst_213 [1] : vector<8x32xf32> to vector<8xf32>
    %545 = vector.shape_cast %544 : vector<8xf32> to vector<8x1xf32>
    %cst_214 = arith.constant 3.200000e+01 : f32
    %546 = vector.broadcast %cst_214 : f32 to vector<8x1xf32>
    %547 = arith.divf %545, %546 : vector<8x1xf32>
    %548 = vector.broadcast %547 : vector<8x1xf32> to vector<8x32xf32>
    %549 = arith.subf %539, %548 : vector<8x32xf32>
    %550 = arith.mulf %549, %549 : vector<8x32xf32>
    %cst_215 = arith.constant dense<0.000000e+00> : vector<8xf32>
    %551 = vector.multi_reduction <add>, %550, %cst_215 [1] : vector<8x32xf32> to vector<8xf32>
    %552 = vector.shape_cast %551 : vector<8xf32> to vector<8x1xf32>
    %cst_216 = arith.constant 0.0322580636 : f32
    %553 = vector.broadcast %cst_216 : f32 to vector<8x1xf32>
    %554 = arith.mulf %552, %553 : vector<8x1xf32>
    %555 = math.sqrt %554 : vector<8x1xf32>
    %cst_217 = arith.constant 9.99999997E-7 : f32
    %556 = vector.broadcast %cst_217 : f32 to vector<8x1xf32>
    %557 = arith.addf %555, %556 : vector<8x1xf32>
    %558 = tpu.reciprocal %557 {approx = true} : vector<8x1xf32> -> vector<8x1xf32>
    %559 = vector.broadcast %541 : vector<1x32xf32> to vector<8x32xf32>
    %560 = arith.mulf %559, %549 : vector<8x32xf32>
    %561 = vector.broadcast %558 : vector<8x1xf32> to vector<8x32xf32>
    %562 = arith.mulf %560, %561 : vector<8x32xf32>
    %563 = vector.broadcast %543 : vector<1x32xf32> to vector<8x32xf32>
    %564 = arith.addf %562, %563 : vector<8x32xf32>
    %c0_218 = arith.constant 0 : index
    %c0_219 = arith.constant 0 : index
    %c0_220 = arith.constant 0 : index
    %565 = vector.load %arg31[%c0_218, %c0_219, %c0_220] : memref<2x32x64xbf16, #tpu.memory_space<vmem>>, vector<1x32x64xbf16>
    %566 = vector.shape_cast %565 : vector<1x32x64xbf16> to vector<32x64xbf16>
    %c0_221 = arith.constant 0 : index
    %c0_222 = arith.constant 0 : index
    %c0_223 = arith.constant 0 : index
    %567 = vector.load %arg32[%c0_221, %c0_222, %c0_223] : memref<2x1x64xf32, #tpu.memory_space<vmem>>, vector<1x1x64xf32>
    %568 = vector.shape_cast %567 : vector<1x1x64xf32> to vector<1x64xf32>
    %c0_224 = arith.constant 0 : index
    %c0_225 = arith.constant 0 : index
    %c0_226 = arith.constant 0 : index
    %569 = vector.load %arg33[%c0_224, %c0_225, %c0_226] : memref<2x64x32xbf16, #tpu.memory_space<vmem>>, vector<1x64x32xbf16>
    %570 = vector.shape_cast %569 : vector<1x64x32xbf16> to vector<64x32xbf16>
    %c0_227 = arith.constant 0 : index
    %c0_228 = arith.constant 0 : index
    %c0_229 = arith.constant 0 : index
    %571 = vector.load %arg34[%c0_227, %c0_228, %c0_229] : memref<2x1x32xf32, #tpu.memory_space<vmem>>, vector<1x1x32xf32>
    %572 = vector.shape_cast %571 : vector<1x1x32xf32> to vector<1x32xf32>
    %573 = arith.truncf %564 : vector<8x32xf32> to vector<8x32xbf16>
    %cst_230 = arith.constant dense<0.000000e+00> : vector<8x64xf32>
    %574 = tpu.matmul %573, %566, %cst_230 {dimension_numbers = #tpu.dot_dimension_numbers<[1], [0], [0], [1], [0, 0, 1, 1], [], []>} : vector<8x32xbf16>, vector<32x64xbf16>, vector<8x64xf32> -> vector<8x64xf32>
    %575 = vector.broadcast %568 : vector<1x64xf32> to vector<8x64xf32>
    %576 = arith.addf %574, %575 : vector<8x64xf32>
    %cst_231 = arith.constant 0.000000e+00 : f32
    %577 = vector.broadcast %cst_231 : f32 to vector<8x64xf32>
    %578 = arith.maximumf %576, %577 : vector<8x64xf32>
    %579 = arith.truncf %578 : vector<8x64xf32> to vector<8x64xbf16>
    %cst_232 = arith.constant dense<0.000000e+00> : vector<8x32xf32>
    %580 = tpu.matmul %579, %570, %cst_232 {dimension_numbers = #tpu.dot_dimension_numbers<[1], [0], [0], [1], [0, 0, 1, 1], [], []>} : vector<8x64xbf16>, vector<64x32xbf16>, vector<8x32xf32> -> vector<8x32xf32>
    %581 = vector.broadcast %572 : vector<1x32xf32> to vector<8x32xf32>
    %582 = arith.addf %580, %581 : vector<8x32xf32>
    %583 = arith.addf %539, %582 : vector<8x32xf32>
    %c1_233 = arith.constant 1 : index
    %c0_234 = arith.constant 0 : index
    %c0_235 = arith.constant 0 : index
    %584 = vector.load %arg35[%c1_233, %c0_234, %c0_235] : memref<2x1x32xf32, #tpu.memory_space<vmem>>, vector<1x1x32xf32>
    %585 = vector.shape_cast %584 : vector<1x1x32xf32> to vector<1x32xf32>
    %c1_236 = arith.constant 1 : index
    %c0_237 = arith.constant 0 : index
    %c0_238 = arith.constant 0 : index
    %586 = vector.load %arg36[%c1_236, %c0_237, %c0_238] : memref<2x1x32xf32, #tpu.memory_space<vmem>>, vector<1x1x32xf32>
    %587 = vector.shape_cast %586 : vector<1x1x32xf32> to vector<1x32xf32>
    %cst_239 = arith.constant dense<0.000000e+00> : vector<8xf32>
    %588 = vector.multi_reduction <add>, %583, %cst_239 [1] : vector<8x32xf32> to vector<8xf32>
    %589 = vector.shape_cast %588 : vector<8xf32> to vector<8x1xf32>
    %cst_240 = arith.constant 3.200000e+01 : f32
    %590 = vector.broadcast %cst_240 : f32 to vector<8x1xf32>
    %591 = arith.divf %589, %590 : vector<8x1xf32>
    %592 = vector.broadcast %591 : vector<8x1xf32> to vector<8x32xf32>
    %593 = arith.subf %583, %592 : vector<8x32xf32>
    %594 = arith.mulf %593, %593 : vector<8x32xf32>
    %cst_241 = arith.constant dense<0.000000e+00> : vector<8xf32>
    %595 = vector.multi_reduction <add>, %594, %cst_241 [1] : vector<8x32xf32> to vector<8xf32>
    %596 = vector.shape_cast %595 : vector<8xf32> to vector<8x1xf32>
    %cst_242 = arith.constant 0.0322580636 : f32
    %597 = vector.broadcast %cst_242 : f32 to vector<8x1xf32>
    %598 = arith.mulf %596, %597 : vector<8x1xf32>
    %599 = math.sqrt %598 : vector<8x1xf32>
    %cst_243 = arith.constant 9.99999997E-7 : f32
    %600 = vector.broadcast %cst_243 : f32 to vector<8x1xf32>
    %601 = arith.addf %599, %600 : vector<8x1xf32>
    %602 = tpu.reciprocal %601 {approx = true} : vector<8x1xf32> -> vector<8x1xf32>
    %603 = vector.broadcast %585 : vector<1x32xf32> to vector<8x32xf32>
    %604 = arith.mulf %603, %593 : vector<8x32xf32>
    %605 = vector.broadcast %602 : vector<8x1xf32> to vector<8x32xf32>
    %606 = arith.mulf %604, %605 : vector<8x32xf32>
    %607 = vector.broadcast %587 : vector<1x32xf32> to vector<8x32xf32>
    %608 = arith.addf %606, %607 : vector<8x32xf32>
    %c1_244 = arith.constant 1 : index
    %c0_245 = arith.constant 0 : index
    %c0_246 = arith.constant 0 : index
    %609 = vector.load %arg23[%c1_244, %c0_245, %c0_246] : memref<2x32x96xbf16, #tpu.memory_space<vmem>>, vector<1x32x96xbf16>
    %610 = vector.shape_cast %609 : vector<1x32x96xbf16> to vector<32x96xbf16>
    %c1_247 = arith.constant 1 : index
    %c0_248 = arith.constant 0 : index
    %c0_249 = arith.constant 0 : index
    %611 = vector.load %arg24[%c1_247, %c0_248, %c0_249] : memref<2x1x96xf32, #tpu.memory_space<vmem>>, vector<1x1x96xf32>
    %612 = vector.shape_cast %611 : vector<1x1x96xf32> to vector<1x96xf32>
    %c1_250 = arith.constant 1 : index
    %c0_251 = arith.constant 0 : index
    %c0_252 = arith.constant 0 : index
    %613 = vector.load %arg25[%c1_250, %c0_251, %c0_252] : memref<2x32x32xbf16, #tpu.memory_space<vmem>>, vector<1x32x32xbf16>
    %614 = vector.shape_cast %613 : vector<1x32x32xbf16> to vector<32x32xbf16>
    %c1_253 = arith.constant 1 : index
    %c0_254 = arith.constant 0 : index
    %c0_255 = arith.constant 0 : index
    %615 = vector.load %arg26[%c1_253, %c0_254, %c0_255] : memref<2x1x32xf32, #tpu.memory_space<vmem>>, vector<1x1x32xf32>
    %616 = vector.shape_cast %615 : vector<1x1x32xf32> to vector<1x32xf32>
    %617 = arith.truncf %608 : vector<8x32xf32> to vector<8x32xbf16>
    %cst_256 = arith.constant dense<0.000000e+00> : vector<8x96xf32>
    %618 = tpu.matmul %617, %610, %cst_256 {dimension_numbers = #tpu.dot_dimension_numbers<[1], [0], [0], [1], [0, 0, 1, 1], [], []>} : vector<8x32xbf16>, vector<32x96xbf16>, vector<8x96xf32> -> vector<8x96xf32>
    %619 = vector.broadcast %612 : vector<1x96xf32> to vector<8x96xf32>
    %620 = arith.addf %618, %619 : vector<8x96xf32>
    %621 = vector.extract_strided_slice %620 {offsets = [0, 0], sizes = [8, 32], strides = [1, 1]} : vector<8x96xf32> to vector<8x32xf32>
    %622 = vector.extract_strided_slice %620 {offsets = [0, 32], sizes = [8, 32], strides = [1, 1]} : vector<8x96xf32> to vector<8x32xf32>
    %623 = vector.extract_strided_slice %620 {offsets = [0, 64], sizes = [8, 32], strides = [1, 1]} : vector<8x96xf32> to vector<8x32xf32>
    %624 = vector.extract_strided_slice %621 {offsets = [0, 0], sizes = [8, 8], strides = [1, 1]} : vector<8x32xf32> to vector<8x8xf32>
    %625 = vector.extract_strided_slice %621 {offsets = [0, 8], sizes = [8, 8], strides = [1, 1]} : vector<8x32xf32> to vector<8x8xf32>
    %626 = vector.extract_strided_slice %621 {offsets = [0, 16], sizes = [8, 8], strides = [1, 1]} : vector<8x32xf32> to vector<8x8xf32>
    %627 = vector.extract_strided_slice %621 {offsets = [0, 24], sizes = [8, 8], strides = [1, 1]} : vector<8x32xf32> to vector<8x8xf32>
    %628 = vector.shape_cast %624 : vector<8x8xf32> to vector<1x8x8xf32>
    %629 = vector.shape_cast %625 : vector<8x8xf32> to vector<1x8x8xf32>
    %630 = vector.shape_cast %626 : vector<8x8xf32> to vector<1x8x8xf32>
    %631 = vector.shape_cast %627 : vector<8x8xf32> to vector<1x8x8xf32>
    %632 = tpu.concatenate %628, %629, %630, %631 in 0 : vector<1x8x8xf32>, vector<1x8x8xf32>, vector<1x8x8xf32>, vector<1x8x8xf32> -> vector<4x8x8xf32>
    %633 = vector.extract_strided_slice %622 {offsets = [0, 0], sizes = [8, 8], strides = [1, 1]} : vector<8x32xf32> to vector<8x8xf32>
    %634 = vector.extract_strided_slice %622 {offsets = [0, 8], sizes = [8, 8], strides = [1, 1]} : vector<8x32xf32> to vector<8x8xf32>
    %635 = vector.extract_strided_slice %622 {offsets = [0, 16], sizes = [8, 8], strides = [1, 1]} : vector<8x32xf32> to vector<8x8xf32>
    %636 = vector.extract_strided_slice %622 {offsets = [0, 24], sizes = [8, 8], strides = [1, 1]} : vector<8x32xf32> to vector<8x8xf32>
    %637 = vector.shape_cast %633 : vector<8x8xf32> to vector<1x8x8xf32>
    %638 = vector.shape_cast %634 : vector<8x8xf32> to vector<1x8x8xf32>
    %639 = vector.shape_cast %635 : vector<8x8xf32> to vector<1x8x8xf32>
    %640 = vector.shape_cast %636 : vector<8x8xf32> to vector<1x8x8xf32>
    %641 = tpu.concatenate %637, %638, %639, %640 in 0 : vector<1x8x8xf32>, vector<1x8x8xf32>, vector<1x8x8xf32>, vector<1x8x8xf32> -> vector<4x8x8xf32>
    %642 = vector.extract_strided_slice %623 {offsets = [0, 0], sizes = [8, 8], strides = [1, 1]} : vector<8x32xf32> to vector<8x8xf32>
    %643 = vector.extract_strided_slice %623 {offsets = [0, 8], sizes = [8, 8], strides = [1, 1]} : vector<8x32xf32> to vector<8x8xf32>
    %644 = vector.extract_strided_slice %623 {offsets = [0, 16], sizes = [8, 8], strides = [1, 1]} : vector<8x32xf32> to vector<8x8xf32>
    %645 = vector.extract_strided_slice %623 {offsets = [0, 24], sizes = [8, 8], strides = [1, 1]} : vector<8x32xf32> to vector<8x8xf32>
    %646 = vector.shape_cast %642 : vector<8x8xf32> to vector<1x8x8xf32>
    %647 = vector.shape_cast %643 : vector<8x8xf32> to vector<1x8x8xf32>
    %648 = vector.shape_cast %644 : vector<8x8xf32> to vector<1x8x8xf32>
    %649 = vector.shape_cast %645 : vector<8x8xf32> to vector<1x8x8xf32>
    %650 = tpu.concatenate %646, %647, %648, %649 in 0 : vector<1x8x8xf32>, vector<1x8x8xf32>, vector<1x8x8xf32>, vector<1x8x8xf32> -> vector<4x8x8xf32>
    %cst_257 = arith.constant dense<0.000000e+00> : vector<4x8x8xf32>
    %651 = tpu.matmul %632, %641, %cst_257 {dimension_numbers = #tpu.dot_dimension_numbers<[2], [2], [1], [1], [0, 0, 0, 1, 1, 1], [0], [0]>} : vector<4x8x8xf32>, vector<4x8x8xf32>, vector<4x8x8xf32> -> vector<4x8x8xf32>
    %cst_258 = arith.constant 0.353553385 : f32
    %652 = vector.broadcast %cst_258 : f32 to vector<4x8x8xf32>
    %653 = arith.mulf %651, %652 : vector<4x8x8xf32>
    %654 = vector.shape_cast %7 : vector<8x8xi1> to vector<1x8x8xi1>
    %655 = vector.shape_cast %654 : vector<1x8x8xi1> to vector<1x8x8xi1>
    %656 = vector.broadcast %655 : vector<1x8x8xi1> to vector<4x8x8xi1>
    %cst_259 = arith.constant -1.000000e+09 : f32
    %657 = vector.broadcast %cst_259 : f32 to vector<4x8x8xf32>
    %658 = arith.select %656, %653, %657 : vector<4x8x8xi1>, vector<4x8x8xf32>
    %cst_260 = arith.constant dense<0xFF800000> : vector<4x8xf32>
    %659 = vector.multi_reduction <maximumf>, %658, %cst_260 [2] : vector<4x8x8xf32> to vector<4x8xf32>
    %660 = vector.shape_cast %659 : vector<4x8xf32> to vector<4x8x1xf32>
    %661 = vector.broadcast %660 : vector<4x8x1xf32> to vector<4x8x8xf32>
    %662 = arith.subf %658, %661 : vector<4x8x8xf32>
    %663 = math.exp %662 : vector<4x8x8xf32>
    %cst_261 = arith.constant dense<0.000000e+00> : vector<4x8xf32>
    %664 = vector.multi_reduction <add>, %663, %cst_261 [2] : vector<4x8x8xf32> to vector<4x8xf32>
    %665 = vector.shape_cast %664 : vector<4x8xf32> to vector<4x8x1xf32>
    %666 = tpu.reciprocal %665 {approx = true} : vector<4x8x1xf32> -> vector<4x8x1xf32>
    %667 = vector.broadcast %666 : vector<4x8x1xf32> to vector<4x8x8xf32>
    %668 = arith.mulf %663, %667 : vector<4x8x8xf32>
    %cst_262 = arith.constant dense<0.000000e+00> : vector<4x8x8xf32>
    %669 = tpu.matmul %668, %650, %cst_262 {dimension_numbers = #tpu.dot_dimension_numbers<[2], [1], [1], [2], [0, 0, 0, 1, 1, 2], [0], [0]>} : vector<4x8x8xf32>, vector<4x8x8xf32>, vector<4x8x8xf32> -> vector<4x8x8xf32>
    %670 = vector.extract_strided_slice %669 {offsets = [0, 0, 0], sizes = [1, 8, 8], strides = [1, 1, 1]} : vector<4x8x8xf32> to vector<1x8x8xf32>
    %671 = vector.shape_cast %670 : vector<1x8x8xf32> to vector<8x8xf32>
    %672 = vector.extract_strided_slice %669 {offsets = [1, 0, 0], sizes = [1, 8, 8], strides = [1, 1, 1]} : vector<4x8x8xf32> to vector<1x8x8xf32>
    %673 = vector.shape_cast %672 : vector<1x8x8xf32> to vector<8x8xf32>
    %674 = vector.extract_strided_slice %669 {offsets = [2, 0, 0], sizes = [1, 8, 8], strides = [1, 1, 1]} : vector<4x8x8xf32> to vector<1x8x8xf32>
    %675 = vector.shape_cast %674 : vector<1x8x8xf32> to vector<8x8xf32>
    %676 = vector.extract_strided_slice %669 {offsets = [3, 0, 0], sizes = [1, 8, 8], strides = [1, 1, 1]} : vector<4x8x8xf32> to vector<1x8x8xf32>
    %677 = vector.shape_cast %676 : vector<1x8x8xf32> to vector<8x8xf32>
    %678 = tpu.concatenate %671, %673, %675, %677 in 1 : vector<8x8xf32>, vector<8x8xf32>, vector<8x8xf32>, vector<8x8xf32> -> vector<8x32xf32>
    %679 = arith.truncf %678 : vector<8x32xf32> to vector<8x32xbf16>
    %cst_263 = arith.constant dense<0.000000e+00> : vector<8x32xf32>
    %680 = tpu.matmul %679, %614, %cst_263 {dimension_numbers = #tpu.dot_dimension_numbers<[1], [0], [0], [1], [0, 0, 1, 1], [], []>} : vector<8x32xbf16>, vector<32x32xbf16>, vector<8x32xf32> -> vector<8x32xf32>
    %681 = vector.broadcast %616 : vector<1x32xf32> to vector<8x32xf32>
    %682 = arith.addf %680, %681 : vector<8x32xf32>
    %683 = arith.addf %583, %682 : vector<8x32xf32>
    %c1_264 = arith.constant 1 : index
    %c0_265 = arith.constant 0 : index
    %c0_266 = arith.constant 0 : index
    %684 = vector.load %arg37[%c1_264, %c0_265, %c0_266] : memref<2x1x32xf32, #tpu.memory_space<vmem>>, vector<1x1x32xf32>
    %685 = vector.shape_cast %684 : vector<1x1x32xf32> to vector<1x32xf32>
    %c1_267 = arith.constant 1 : index
    %c0_268 = arith.constant 0 : index
    %c0_269 = arith.constant 0 : index
    %686 = vector.load %arg38[%c1_267, %c0_268, %c0_269] : memref<2x1x32xf32, #tpu.memory_space<vmem>>, vector<1x1x32xf32>
    %687 = vector.shape_cast %686 : vector<1x1x32xf32> to vector<1x32xf32>
    %cst_270 = arith.constant dense<0.000000e+00> : vector<8xf32>
    %688 = vector.multi_reduction <add>, %683, %cst_270 [1] : vector<8x32xf32> to vector<8xf32>
    %689 = vector.shape_cast %688 : vector<8xf32> to vector<8x1xf32>
    %cst_271 = arith.constant 3.200000e+01 : f32
    %690 = vector.broadcast %cst_271 : f32 to vector<8x1xf32>
    %691 = arith.divf %689, %690 : vector<8x1xf32>
    %692 = vector.broadcast %691 : vector<8x1xf32> to vector<8x32xf32>
    %693 = arith.subf %683, %692 : vector<8x32xf32>
    %694 = arith.mulf %693, %693 : vector<8x32xf32>
    %cst_272 = arith.constant dense<0.000000e+00> : vector<8xf32>
    %695 = vector.multi_reduction <add>, %694, %cst_272 [1] : vector<8x32xf32> to vector<8xf32>
    %696 = vector.shape_cast %695 : vector<8xf32> to vector<8x1xf32>
    %cst_273 = arith.constant 0.0322580636 : f32
    %697 = vector.broadcast %cst_273 : f32 to vector<8x1xf32>
    %698 = arith.mulf %696, %697 : vector<8x1xf32>
    %699 = math.sqrt %698 : vector<8x1xf32>
    %cst_274 = arith.constant 9.99999997E-7 : f32
    %700 = vector.broadcast %cst_274 : f32 to vector<8x1xf32>
    %701 = arith.addf %699, %700 : vector<8x1xf32>
    %702 = tpu.reciprocal %701 {approx = true} : vector<8x1xf32> -> vector<8x1xf32>
    %703 = vector.broadcast %685 : vector<1x32xf32> to vector<8x32xf32>
    %704 = arith.mulf %703, %693 : vector<8x32xf32>
    %705 = vector.broadcast %702 : vector<8x1xf32> to vector<8x32xf32>
    %706 = arith.mulf %704, %705 : vector<8x32xf32>
    %707 = vector.broadcast %687 : vector<1x32xf32> to vector<8x32xf32>
    %708 = arith.addf %706, %707 : vector<8x32xf32>
    %c1_275 = arith.constant 1 : index
    %c0_276 = arith.constant 0 : index
    %c0_277 = arith.constant 0 : index
    %709 = vector.load %arg27[%c1_275, %c0_276, %c0_277] : memref<2x32x96xbf16, #tpu.memory_space<vmem>>, vector<1x32x96xbf16>
    %710 = vector.shape_cast %709 : vector<1x32x96xbf16> to vector<32x96xbf16>
    %c1_278 = arith.constant 1 : index
    %c0_279 = arith.constant 0 : index
    %c0_280 = arith.constant 0 : index
    %711 = vector.load %arg28[%c1_278, %c0_279, %c0_280] : memref<2x1x96xf32, #tpu.memory_space<vmem>>, vector<1x1x96xf32>
    %712 = vector.shape_cast %711 : vector<1x1x96xf32> to vector<1x96xf32>
    %c1_281 = arith.constant 1 : index
    %c0_282 = arith.constant 0 : index
    %c0_283 = arith.constant 0 : index
    %713 = vector.load %arg29[%c1_281, %c0_282, %c0_283] : memref<2x32x32xbf16, #tpu.memory_space<vmem>>, vector<1x32x32xbf16>
    %714 = vector.shape_cast %713 : vector<1x32x32xbf16> to vector<32x32xbf16>
    %c1_284 = arith.constant 1 : index
    %c0_285 = arith.constant 0 : index
    %c0_286 = arith.constant 0 : index
    %715 = vector.load %arg30[%c1_284, %c0_285, %c0_286] : memref<2x1x32xf32, #tpu.memory_space<vmem>>, vector<1x1x32xf32>
    %716 = vector.shape_cast %715 : vector<1x1x32xf32> to vector<1x32xf32>
    %717 = arith.truncf %708 : vector<8x32xf32> to vector<8x32xbf16>
    %718 = vector.extract_strided_slice %710 {offsets = [0, 0], sizes = [32, 32], strides = [1, 1]} : vector<32x96xbf16> to vector<32x32xbf16>
    %cst_287 = arith.constant dense<0.000000e+00> : vector<8x32xf32>
    %719 = tpu.matmul %717, %718, %cst_287 {dimension_numbers = #tpu.dot_dimension_numbers<[1], [0], [0], [1], [0, 0, 1, 1], [], []>} : vector<8x32xbf16>, vector<32x32xbf16>, vector<8x32xf32> -> vector<8x32xf32>
    %720 = vector.extract_strided_slice %712 {offsets = [0, 0], sizes = [1, 32], strides = [1, 1]} : vector<1x96xf32> to vector<1x32xf32>
    %721 = vector.broadcast %720 : vector<1x32xf32> to vector<8x32xf32>
    %722 = arith.addf %719, %721 : vector<8x32xf32>
    %723 = arith.truncf %325 : vector<8x32xf32> to vector<8x32xbf16>
    %724 = vector.extract_strided_slice %710 {offsets = [0, 32], sizes = [32, 64], strides = [1, 1]} : vector<32x96xbf16> to vector<32x64xbf16>
    %cst_288 = arith.constant dense<0.000000e+00> : vector<8x64xf32>
    %725 = tpu.matmul %723, %724, %cst_288 {dimension_numbers = #tpu.dot_dimension_numbers<[1], [0], [0], [1], [0, 0, 1, 1], [], []>} : vector<8x32xbf16>, vector<32x64xbf16>, vector<8x64xf32> -> vector<8x64xf32>
    %726 = vector.extract_strided_slice %712 {offsets = [0, 32], sizes = [1, 64], strides = [1, 1]} : vector<1x96xf32> to vector<1x64xf32>
    %727 = vector.broadcast %726 : vector<1x64xf32> to vector<8x64xf32>
    %728 = arith.addf %725, %727 : vector<8x64xf32>
    %729 = vector.extract_strided_slice %728 {offsets = [0, 0], sizes = [8, 32], strides = [1, 1]} : vector<8x64xf32> to vector<8x32xf32>
    %730 = vector.extract_strided_slice %728 {offsets = [0, 32], sizes = [8, 32], strides = [1, 1]} : vector<8x64xf32> to vector<8x32xf32>
    %731 = vector.extract_strided_slice %722 {offsets = [0, 0], sizes = [8, 8], strides = [1, 1]} : vector<8x32xf32> to vector<8x8xf32>
    %732 = vector.extract_strided_slice %722 {offsets = [0, 8], sizes = [8, 8], strides = [1, 1]} : vector<8x32xf32> to vector<8x8xf32>
    %733 = vector.extract_strided_slice %722 {offsets = [0, 16], sizes = [8, 8], strides = [1, 1]} : vector<8x32xf32> to vector<8x8xf32>
    %734 = vector.extract_strided_slice %722 {offsets = [0, 24], sizes = [8, 8], strides = [1, 1]} : vector<8x32xf32> to vector<8x8xf32>
    %735 = vector.shape_cast %731 : vector<8x8xf32> to vector<1x8x8xf32>
    %736 = vector.shape_cast %732 : vector<8x8xf32> to vector<1x8x8xf32>
    %737 = vector.shape_cast %733 : vector<8x8xf32> to vector<1x8x8xf32>
    %738 = vector.shape_cast %734 : vector<8x8xf32> to vector<1x8x8xf32>
    %739 = tpu.concatenate %735, %736, %737, %738 in 0 : vector<1x8x8xf32>, vector<1x8x8xf32>, vector<1x8x8xf32>, vector<1x8x8xf32> -> vector<4x8x8xf32>
    %740 = vector.extract_strided_slice %729 {offsets = [0, 0], sizes = [8, 8], strides = [1, 1]} : vector<8x32xf32> to vector<8x8xf32>
    %741 = vector.extract_strided_slice %729 {offsets = [0, 8], sizes = [8, 8], strides = [1, 1]} : vector<8x32xf32> to vector<8x8xf32>
    %742 = vector.extract_strided_slice %729 {offsets = [0, 16], sizes = [8, 8], strides = [1, 1]} : vector<8x32xf32> to vector<8x8xf32>
    %743 = vector.extract_strided_slice %729 {offsets = [0, 24], sizes = [8, 8], strides = [1, 1]} : vector<8x32xf32> to vector<8x8xf32>
    %744 = vector.shape_cast %740 : vector<8x8xf32> to vector<1x8x8xf32>
    %745 = vector.shape_cast %741 : vector<8x8xf32> to vector<1x8x8xf32>
    %746 = vector.shape_cast %742 : vector<8x8xf32> to vector<1x8x8xf32>
    %747 = vector.shape_cast %743 : vector<8x8xf32> to vector<1x8x8xf32>
    %748 = tpu.concatenate %744, %745, %746, %747 in 0 : vector<1x8x8xf32>, vector<1x8x8xf32>, vector<1x8x8xf32>, vector<1x8x8xf32> -> vector<4x8x8xf32>
    %749 = vector.extract_strided_slice %730 {offsets = [0, 0], sizes = [8, 8], strides = [1, 1]} : vector<8x32xf32> to vector<8x8xf32>
    %750 = vector.extract_strided_slice %730 {offsets = [0, 8], sizes = [8, 8], strides = [1, 1]} : vector<8x32xf32> to vector<8x8xf32>
    %751 = vector.extract_strided_slice %730 {offsets = [0, 16], sizes = [8, 8], strides = [1, 1]} : vector<8x32xf32> to vector<8x8xf32>
    %752 = vector.extract_strided_slice %730 {offsets = [0, 24], sizes = [8, 8], strides = [1, 1]} : vector<8x32xf32> to vector<8x8xf32>
    %753 = vector.shape_cast %749 : vector<8x8xf32> to vector<1x8x8xf32>
    %754 = vector.shape_cast %750 : vector<8x8xf32> to vector<1x8x8xf32>
    %755 = vector.shape_cast %751 : vector<8x8xf32> to vector<1x8x8xf32>
    %756 = vector.shape_cast %752 : vector<8x8xf32> to vector<1x8x8xf32>
    %757 = tpu.concatenate %753, %754, %755, %756 in 0 : vector<1x8x8xf32>, vector<1x8x8xf32>, vector<1x8x8xf32>, vector<1x8x8xf32> -> vector<4x8x8xf32>
    %cst_289 = arith.constant dense<0.000000e+00> : vector<4x8x8xf32>
    %758 = tpu.matmul %739, %748, %cst_289 {dimension_numbers = #tpu.dot_dimension_numbers<[2], [2], [1], [1], [0, 0, 0, 1, 1, 1], [0], [0]>} : vector<4x8x8xf32>, vector<4x8x8xf32>, vector<4x8x8xf32> -> vector<4x8x8xf32>
    %cst_290 = arith.constant 0.353553385 : f32
    %759 = vector.broadcast %cst_290 : f32 to vector<4x8x8xf32>
    %760 = arith.mulf %758, %759 : vector<4x8x8xf32>
    %761 = vector.shape_cast %3 : vector<1x8xi1> to vector<1x1x8xi1>
    %762 = vector.shape_cast %761 : vector<1x1x8xi1> to vector<1x1x8xi1>
    %763 = vector.broadcast %762 : vector<1x1x8xi1> to vector<4x8x8xi1>
    %cst_291 = arith.constant -1.000000e+09 : f32
    %764 = vector.broadcast %cst_291 : f32 to vector<4x8x8xf32>
    %765 = arith.select %763, %760, %764 : vector<4x8x8xi1>, vector<4x8x8xf32>
    %cst_292 = arith.constant dense<0xFF800000> : vector<4x8xf32>
    %766 = vector.multi_reduction <maximumf>, %765, %cst_292 [2] : vector<4x8x8xf32> to vector<4x8xf32>
    %767 = vector.shape_cast %766 : vector<4x8xf32> to vector<4x8x1xf32>
    %768 = vector.broadcast %767 : vector<4x8x1xf32> to vector<4x8x8xf32>
    %769 = arith.subf %765, %768 : vector<4x8x8xf32>
    %770 = math.exp %769 : vector<4x8x8xf32>
    %cst_293 = arith.constant dense<0.000000e+00> : vector<4x8xf32>
    %771 = vector.multi_reduction <add>, %770, %cst_293 [2] : vector<4x8x8xf32> to vector<4x8xf32>
    %772 = vector.shape_cast %771 : vector<4x8xf32> to vector<4x8x1xf32>
    %773 = tpu.reciprocal %772 {approx = true} : vector<4x8x1xf32> -> vector<4x8x1xf32>
    %774 = vector.broadcast %773 : vector<4x8x1xf32> to vector<4x8x8xf32>
    %775 = arith.mulf %770, %774 : vector<4x8x8xf32>
    %cst_294 = arith.constant dense<0.000000e+00> : vector<4x8x8xf32>
    %776 = tpu.matmul %775, %757, %cst_294 {dimension_numbers = #tpu.dot_dimension_numbers<[2], [1], [1], [2], [0, 0, 0, 1, 1, 2], [0], [0]>} : vector<4x8x8xf32>, vector<4x8x8xf32>, vector<4x8x8xf32> -> vector<4x8x8xf32>
    %777 = vector.extract_strided_slice %776 {offsets = [0, 0, 0], sizes = [1, 8, 8], strides = [1, 1, 1]} : vector<4x8x8xf32> to vector<1x8x8xf32>
    %778 = vector.shape_cast %777 : vector<1x8x8xf32> to vector<8x8xf32>
    %779 = vector.extract_strided_slice %776 {offsets = [1, 0, 0], sizes = [1, 8, 8], strides = [1, 1, 1]} : vector<4x8x8xf32> to vector<1x8x8xf32>
    %780 = vector.shape_cast %779 : vector<1x8x8xf32> to vector<8x8xf32>
    %781 = vector.extract_strided_slice %776 {offsets = [2, 0, 0], sizes = [1, 8, 8], strides = [1, 1, 1]} : vector<4x8x8xf32> to vector<1x8x8xf32>
    %782 = vector.shape_cast %781 : vector<1x8x8xf32> to vector<8x8xf32>
    %783 = vector.extract_strided_slice %776 {offsets = [3, 0, 0], sizes = [1, 8, 8], strides = [1, 1, 1]} : vector<4x8x8xf32> to vector<1x8x8xf32>
    %784 = vector.shape_cast %783 : vector<1x8x8xf32> to vector<8x8xf32>
    %785 = tpu.concatenate %778, %780, %782, %784 in 1 : vector<8x8xf32>, vector<8x8xf32>, vector<8x8xf32>, vector<8x8xf32> -> vector<8x32xf32>
    %786 = arith.truncf %785 : vector<8x32xf32> to vector<8x32xbf16>
    %cst_295 = arith.constant dense<0.000000e+00> : vector<8x32xf32>
    %787 = tpu.matmul %786, %714, %cst_295 {dimension_numbers = #tpu.dot_dimension_numbers<[1], [0], [0], [1], [0, 0, 1, 1], [], []>} : vector<8x32xbf16>, vector<32x32xbf16>, vector<8x32xf32> -> vector<8x32xf32>
    %788 = vector.broadcast %716 : vector<1x32xf32> to vector<8x32xf32>
    %789 = arith.addf %787, %788 : vector<8x32xf32>
    %790 = arith.addf %683, %789 : vector<8x32xf32>
    %c1_296 = arith.constant 1 : index
    %c0_297 = arith.constant 0 : index
    %c0_298 = arith.constant 0 : index
    %791 = vector.load %arg39[%c1_296, %c0_297, %c0_298] : memref<2x1x32xf32, #tpu.memory_space<vmem>>, vector<1x1x32xf32>
    %792 = vector.shape_cast %791 : vector<1x1x32xf32> to vector<1x32xf32>
    %c1_299 = arith.constant 1 : index
    %c0_300 = arith.constant 0 : index
    %c0_301 = arith.constant 0 : index
    %793 = vector.load %arg40[%c1_299, %c0_300, %c0_301] : memref<2x1x32xf32, #tpu.memory_space<vmem>>, vector<1x1x32xf32>
    %794 = vector.shape_cast %793 : vector<1x1x32xf32> to vector<1x32xf32>
    %cst_302 = arith.constant dense<0.000000e+00> : vector<8xf32>
    %795 = vector.multi_reduction <add>, %790, %cst_302 [1] : vector<8x32xf32> to vector<8xf32>
    %796 = vector.shape_cast %795 : vector<8xf32> to vector<8x1xf32>
    %cst_303 = arith.constant 3.200000e+01 : f32
    %797 = vector.broadcast %cst_303 : f32 to vector<8x1xf32>
    %798 = arith.divf %796, %797 : vector<8x1xf32>
    %799 = vector.broadcast %798 : vector<8x1xf32> to vector<8x32xf32>
    %800 = arith.subf %790, %799 : vector<8x32xf32>
    %801 = arith.mulf %800, %800 : vector<8x32xf32>
    %cst_304 = arith.constant dense<0.000000e+00> : vector<8xf32>
    %802 = vector.multi_reduction <add>, %801, %cst_304 [1] : vector<8x32xf32> to vector<8xf32>
    %803 = vector.shape_cast %802 : vector<8xf32> to vector<8x1xf32>
    %cst_305 = arith.constant 0.0322580636 : f32
    %804 = vector.broadcast %cst_305 : f32 to vector<8x1xf32>
    %805 = arith.mulf %803, %804 : vector<8x1xf32>
    %806 = math.sqrt %805 : vector<8x1xf32>
    %cst_306 = arith.constant 9.99999997E-7 : f32
    %807 = vector.broadcast %cst_306 : f32 to vector<8x1xf32>
    %808 = arith.addf %806, %807 : vector<8x1xf32>
    %809 = tpu.reciprocal %808 {approx = true} : vector<8x1xf32> -> vector<8x1xf32>
    %810 = vector.broadcast %792 : vector<1x32xf32> to vector<8x32xf32>
    %811 = arith.mulf %810, %800 : vector<8x32xf32>
    %812 = vector.broadcast %809 : vector<8x1xf32> to vector<8x32xf32>
    %813 = arith.mulf %811, %812 : vector<8x32xf32>
    %814 = vector.broadcast %794 : vector<1x32xf32> to vector<8x32xf32>
    %815 = arith.addf %813, %814 : vector<8x32xf32>
    %c1_307 = arith.constant 1 : index
    %c0_308 = arith.constant 0 : index
    %c0_309 = arith.constant 0 : index
    %816 = vector.load %arg31[%c1_307, %c0_308, %c0_309] : memref<2x32x64xbf16, #tpu.memory_space<vmem>>, vector<1x32x64xbf16>
    %817 = vector.shape_cast %816 : vector<1x32x64xbf16> to vector<32x64xbf16>
    %c1_310 = arith.constant 1 : index
    %c0_311 = arith.constant 0 : index
    %c0_312 = arith.constant 0 : index
    %818 = vector.load %arg32[%c1_310, %c0_311, %c0_312] : memref<2x1x64xf32, #tpu.memory_space<vmem>>, vector<1x1x64xf32>
    %819 = vector.shape_cast %818 : vector<1x1x64xf32> to vector<1x64xf32>
    %c1_313 = arith.constant 1 : index
    %c0_314 = arith.constant 0 : index
    %c0_315 = arith.constant 0 : index
    %820 = vector.load %arg33[%c1_313, %c0_314, %c0_315] : memref<2x64x32xbf16, #tpu.memory_space<vmem>>, vector<1x64x32xbf16>
    %821 = vector.shape_cast %820 : vector<1x64x32xbf16> to vector<64x32xbf16>
    %c1_316 = arith.constant 1 : index
    %c0_317 = arith.constant 0 : index
    %c0_318 = arith.constant 0 : index
    %822 = vector.load %arg34[%c1_316, %c0_317, %c0_318] : memref<2x1x32xf32, #tpu.memory_space<vmem>>, vector<1x1x32xf32>
    %823 = vector.shape_cast %822 : vector<1x1x32xf32> to vector<1x32xf32>
    %824 = arith.truncf %815 : vector<8x32xf32> to vector<8x32xbf16>
    %cst_319 = arith.constant dense<0.000000e+00> : vector<8x64xf32>
    %825 = tpu.matmul %824, %817, %cst_319 {dimension_numbers = #tpu.dot_dimension_numbers<[1], [0], [0], [1], [0, 0, 1, 1], [], []>} : vector<8x32xbf16>, vector<32x64xbf16>, vector<8x64xf32> -> vector<8x64xf32>
    %826 = vector.broadcast %819 : vector<1x64xf32> to vector<8x64xf32>
    %827 = arith.addf %825, %826 : vector<8x64xf32>
    %cst_320 = arith.constant 0.000000e+00 : f32
    %828 = vector.broadcast %cst_320 : f32 to vector<8x64xf32>
    %829 = arith.maximumf %827, %828 : vector<8x64xf32>
    %830 = arith.truncf %829 : vector<8x64xf32> to vector<8x64xbf16>
    %cst_321 = arith.constant dense<0.000000e+00> : vector<8x32xf32>
    %831 = tpu.matmul %830, %821, %cst_321 {dimension_numbers = #tpu.dot_dimension_numbers<[1], [0], [0], [1], [0, 0, 1, 1], [], []>} : vector<8x64xbf16>, vector<64x32xbf16>, vector<8x32xf32> -> vector<8x32xf32>
    %832 = vector.broadcast %823 : vector<1x32xf32> to vector<8x32xf32>
    %833 = arith.addf %831, %832 : vector<8x32xf32>
    %834 = arith.addf %790, %833 : vector<8x32xf32>
    %c0_322 = arith.constant 0 : index
    %c0_323 = arith.constant 0 : index
    %835 = vector.load %arg41[%c0_322, %c0_323] : memref<1x32xf32, #tpu.memory_space<vmem>>, vector<1x32xf32>
    %c0_324 = arith.constant 0 : index
    %c0_325 = arith.constant 0 : index
    %836 = vector.load %arg42[%c0_324, %c0_325] : memref<1x32xf32, #tpu.memory_space<vmem>>, vector<1x32xf32>
    %cst_326 = arith.constant dense<0.000000e+00> : vector<8xf32>
    %837 = vector.multi_reduction <add>, %834, %cst_326 [1] : vector<8x32xf32> to vector<8xf32>
    %838 = vector.shape_cast %837 : vector<8xf32> to vector<8x1xf32>
    %cst_327 = arith.constant 3.200000e+01 : f32
    %839 = vector.broadcast %cst_327 : f32 to vector<8x1xf32>
    %840 = arith.divf %838, %839 : vector<8x1xf32>
    %841 = vector.broadcast %840 : vector<8x1xf32> to vector<8x32xf32>
    %842 = arith.subf %834, %841 : vector<8x32xf32>
    %843 = arith.mulf %842, %842 : vector<8x32xf32>
    %cst_328 = arith.constant dense<0.000000e+00> : vector<8xf32>
    %844 = vector.multi_reduction <add>, %843, %cst_328 [1] : vector<8x32xf32> to vector<8xf32>
    %845 = vector.shape_cast %844 : vector<8xf32> to vector<8x1xf32>
    %cst_329 = arith.constant 0.0322580636 : f32
    %846 = vector.broadcast %cst_329 : f32 to vector<8x1xf32>
    %847 = arith.mulf %845, %846 : vector<8x1xf32>
    %848 = math.sqrt %847 : vector<8x1xf32>
    %cst_330 = arith.constant 9.99999997E-7 : f32
    %849 = vector.broadcast %cst_330 : f32 to vector<8x1xf32>
    %850 = arith.addf %848, %849 : vector<8x1xf32>
    %851 = tpu.reciprocal %850 {approx = true} : vector<8x1xf32> -> vector<8x1xf32>
    %852 = vector.broadcast %835 : vector<1x32xf32> to vector<8x32xf32>
    %853 = arith.mulf %852, %842 : vector<8x32xf32>
    %854 = vector.broadcast %851 : vector<8x1xf32> to vector<8x32xf32>
    %855 = arith.mulf %853, %854 : vector<8x32xf32>
    %856 = vector.broadcast %836 : vector<1x32xf32> to vector<8x32xf32>
    %857 = arith.addf %855, %856 : vector<8x32xf32>
    %c0_331 = arith.constant 0 : index
    %c0_332 = arith.constant 0 : index
    %858 = vector.load %arg43[%c0_331, %c0_332] : memref<8x32xf32, #tpu.memory_space<vmem>>, vector<8x32xf32>
    tpu.vector_store %arg43[%c0_331, %c0_332], %857 {strides = array<i32>} : memref<8x32xf32, #tpu.memory_space<vmem>>, vector<8x32xf32>,
    return
  }
  func.func @transform_0(%arg0: i32) -> (i32, i32) {
    %c0_i32 = arith.constant 0 : i32
    %c0_i32_0 = arith.constant 0 : i32
    return %arg0, %c0_i32 : i32, i32
  }
  func.func @transform_1(%arg0: i32) -> (i32, i32) {
    %c0_i32 = arith.constant 0 : i32
    %c0_i32_0 = arith.constant 0 : i32
    return %arg0, %c0_i32 : i32, i32
  }
  func.func @transform_2(%arg0: i32) -> (i32, i32, i32) {
    %c0_i32 = arith.constant 0 : i32
    %c0_i32_0 = arith.constant 0 : i32
    %c0_i32_1 = arith.constant 0 : i32
    return %arg0, %c0_i32, %c0_i32_0 : i32, i32, i32
  }
  func.func @transform_3(%arg0: i32) -> (i32, i32, i32) {
    %c0_i32 = arith.constant 0 : i32
    %c0_i32_0 = arith.constant 0 : i32
    %c0_i32_1 = arith.constant 0 : i32
    return %arg0, %c0_i32, %c0_i32_0 : i32, i32, i32
  }
  func.func @transform_4(%arg0: i32) -> (i32, i32) {
    %c0_i32 = arith.constant 0 : i32
    %c0_i32_0 = arith.constant 0 : i32
    %c0_i32_1 = arith.constant 0 : i32
    return %c0_i32, %c0_i32_0 : i32, i32
  }
  func.func @transform_5(%arg0: i32) -> (i32, i32) {
    %c0_i32 = arith.constant 0 : i32
    %c0_i32_0 = arith.constant 0 : i32
    %c0_i32_1 = arith.constant 0 : i32
    return %c0_i32, %c0_i32_0 : i32, i32
  }
  func.func @transform_6(%arg0: i32) -> (i32, i32) {
    %c0_i32 = arith.constant 0 : i32
    %c0_i32_0 = arith.constant 0 : i32
    %c0_i32_1 = arith.constant 0 : i32
    return %c0_i32, %c0_i32_0 : i32, i32
  }
  func.func @transform_7(%arg0: i32) -> (i32, i32) {
    %c0_i32 = arith.constant 0 : i32
    %c0_i32_0 = arith.constant 0 : i32
    %c0_i32_1 = arith.constant 0 : i32
    return %c0_i32, %c0_i32_0 : i32, i32
  }
  func.func @transform_8(%arg0: i32) -> (i32, i32, i32) {
    %c0_i32 = arith.constant 0 : i32
    %c0_i32_0 = arith.constant 0 : i32
    %c0_i32_1 = arith.constant 0 : i32
    %c0_i32_2 = arith.constant 0 : i32
    return %c0_i32, %c0_i32_0, %c0_i32_1 : i32, i32, i32
  }
  func.func @transform_9(%arg0: i32) -> (i32, i32, i32) {
    %c0_i32 = arith.constant 0 : i32
    %c0_i32_0 = arith.constant 0 : i32
    %c0_i32_1 = arith.constant 0 : i32
    %c0_i32_2 = arith.constant 0 : i32
    return %c0_i32, %c0_i32_0, %c0_i32_1 : i32, i32, i32
  }
  func.func @transform_10(%arg0: i32) -> (i32, i32, i32) {
    %c0_i32 = arith.constant 0 : i32
    %c0_i32_0 = arith.constant 0 : i32
    %c0_i32_1 = arith.constant 0 : i32
    %c0_i32_2 = arith.constant 0 : i32
    return %c0_i32, %c0_i32_0, %c0_i32_1 : i32, i32, i32
  }
  func.func @transform_11(%arg0: i32) -> (i32, i32, i32) {
    %c0_i32 = arith.constant 0 : i32
    %c0_i32_0 = arith.constant 0 : i32
    %c0_i32_1 = arith.constant 0 : i32
    %c0_i32_2 = arith.constant 0 : i32
    return %c0_i32, %c0_i32_0, %c0_i32_1 : i32, i32, i32
  }
  func.func @transform_12(%arg0: i32) -> (i32, i32, i32) {
    %c0_i32 = arith.constant 0 : i32
    %c0_i32_0 = arith.constant 0 : i32
    %c0_i32_1 = arith.constant 0 : i32
    %c0_i32_2 = arith.constant 0 : i32
    return %c0_i32, %c0_i32_0, %c0_i32_1 : i32, i32, i32
  }
  func.func @transform_13(%arg0: i32) -> (i32, i32, i32) {
    %c0_i32 = arith.constant 0 : i32
    %c0_i32_0 = arith.constant 0 : i32
    %c0_i32_1 = arith.constant 0 : i32
    %c0_i32_2 = arith.constant 0 : i32
    return %c0_i32, %c0_i32_0, %c0_i32_1 : i32, i32, i32
  }
  func.func @transform_14(%arg0: i32) -> (i32, i32, i32) {
    %c0_i32 = arith.constant 0 : i32
    %c0_i32_0 = arith.constant 0 : i32
    %c0_i32_1 = arith.constant 0 : i32
    %c0_i32_2 = arith.constant 0 : i32
    return %c0_i32, %c0_i32_0, %c0_i32_1 : i32, i32, i32
  }
  func.func @transform_15(%arg0: i32) -> (i32, i32, i32) {
    %c0_i32 = arith.constant 0 : i32
    %c0_i32_0 = arith.constant 0 : i32
    %c0_i32_1 = arith.constant 0 : i32
    %c0_i32_2 = arith.constant 0 : i32
    return %c0_i32, %c0_i32_0, %c0_i32_1 : i32, i32, i32
  }
  func.func @transform_16(%arg0: i32) -> (i32, i32, i32) {
    %c0_i32 = arith.constant 0 : i32
    %c0_i32_0 = arith.constant 0 : i32
    %c0_i32_1 = arith.constant 0 : i32
    %c0_i32_2 = arith.constant 0 : i32
    return %c0_i32, %c0_i32_0, %c0_i32_1 : i32, i32, i32
  }
  func.func @transform_17(%arg0: i32) -> (i32, i32, i32) {
    %c0_i32 = arith.constant 0 : i32
    %c0_i32_0 = arith.constant 0 : i32
    %c0_i32_1 = arith.constant 0 : i32
    %c0_i32_2 = arith.constant 0 : i32
    return %c0_i32, %c0_i32_0, %c0_i32_1 : i32, i32, i32
  }
  func.func @transform_18(%arg0: i32) -> (i32, i32, i32) {
    %c0_i32 = arith.constant 0 : i32
    %c0_i32_0 = arith.constant 0 : i32
    %c0_i32_1 = arith.constant 0 : i32
    %c0_i32_2 = arith.constant 0 : i32
    return %c0_i32, %c0_i32_0, %c0_i32_1 : i32, i32, i32
  }
  func.func @transform_19(%arg0: i32) -> (i32, i32, i32) {
    %c0_i32 = arith.constant 0 : i32
    %c0_i32_0 = arith.constant 0 : i32
    %c0_i32_1 = arith.constant 0 : i32
    %c0_i32_2 = arith.constant 0 : i32
    return %c0_i32, %c0_i32_0, %c0_i32_1 : i32, i32, i32
  }
  func.func @transform_20(%arg0: i32) -> (i32, i32) {
    %c0_i32 = arith.constant 0 : i32
    %c0_i32_0 = arith.constant 0 : i32
    %c0_i32_1 = arith.constant 0 : i32
    return %c0_i32, %c0_i32_0 : i32, i32
  }
  func.func @transform_21(%arg0: i32) -> (i32, i32) {
    %c0_i32 = arith.constant 0 : i32
    %c0_i32_0 = arith.constant 0 : i32
    %c0_i32_1 = arith.constant 0 : i32
    return %c0_i32, %c0_i32_0 : i32, i32
  }
  func.func @transform_22(%arg0: i32) -> (i32, i32, i32) {
    %c0_i32 = arith.constant 0 : i32
    %c0_i32_0 = arith.constant 0 : i32
    %c0_i32_1 = arith.constant 0 : i32
    %c0_i32_2 = arith.constant 0 : i32
    return %c0_i32, %c0_i32_0, %c0_i32_1 : i32, i32, i32
  }
  func.func @transform_23(%arg0: i32) -> (i32, i32, i32) {
    %c0_i32 = arith.constant 0 : i32
    %c0_i32_0 = arith.constant 0 : i32
    %c0_i32_1 = arith.constant 0 : i32
    %c0_i32_2 = arith.constant 0 : i32
    return %c0_i32, %c0_i32_0, %c0_i32_1 : i32, i32, i32
  }
  func.func @transform_24(%arg0: i32) -> (i32, i32, i32) {
    %c0_i32 = arith.constant 0 : i32
    %c0_i32_0 = arith.constant 0 : i32
    %c0_i32_1 = arith.constant 0 : i32
    %c0_i32_2 = arith.constant 0 : i32
    return %c0_i32, %c0_i32_0, %c0_i32_1 : i32, i32, i32
  }
  func.func @transform_25(%arg0: i32) -> (i32, i32, i32) {
    %c0_i32 = arith.constant 0 : i32
    %c0_i32_0 = arith.constant 0 : i32
    %c0_i32_1 = arith.constant 0 : i32
    %c0_i32_2 = arith.constant 0 : i32
    return %c0_i32, %c0_i32_0, %c0_i32_1 : i32, i32, i32
  }
  func.func @transform_26(%arg0: i32) -> (i32, i32, i32) {
    %c0_i32 = arith.constant 0 : i32
    %c0_i32_0 = arith.constant 0 : i32
    %c0_i32_1 = arith.constant 0 : i32
    %c0_i32_2 = arith.constant 0 : i32
    return %c0_i32, %c0_i32_0, %c0_i32_1 : i32, i32, i32
  }
  func.func @transform_27(%arg0: i32) -> (i32, i32, i32) {
    %c0_i32 = arith.constant 0 : i32
    %c0_i32_0 = arith.constant 0 : i32
    %c0_i32_1 = arith.constant 0 : i32
    %c0_i32_2 = arith.constant 0 : i32
    return %c0_i32, %c0_i32_0, %c0_i32_1 : i32, i32, i32
  }
  func.func @transform_28(%arg0: i32) -> (i32, i32, i32) {
    %c0_i32 = arith.constant 0 : i32
    %c0_i32_0 = arith.constant 0 : i32
    %c0_i32_1 = arith.constant 0 : i32
    %c0_i32_2 = arith.constant 0 : i32
    return %c0_i32, %c0_i32_0, %c0_i32_1 : i32, i32, i32
  }
  func.func @transform_29(%arg0: i32) -> (i32, i32, i32) {
    %c0_i32 = arith.constant 0 : i32
    %c0_i32_0 = arith.constant 0 : i32
    %c0_i32_1 = arith.constant 0 : i32
    %c0_i32_2 = arith.constant 0 : i32
    return %c0_i32, %c0_i32_0, %c0_i32_1 : i32, i32, i32
  }
  func.func @transform_30(%arg0: i32) -> (i32, i32, i32) {
    %c0_i32 = arith.constant 0 : i32
    %c0_i32_0 = arith.constant 0 : i32
    %c0_i32_1 = arith.constant 0 : i32
    %c0_i32_2 = arith.constant 0 : i32
    return %c0_i32, %c0_i32_0, %c0_i32_1 : i32, i32, i32
  }
  func.func @transform_31(%arg0: i32) -> (i32, i32, i32) {
    %c0_i32 = arith.constant 0 : i32
    %c0_i32_0 = arith.constant 0 : i32
    %c0_i32_1 = arith.constant 0 : i32
    %c0_i32_2 = arith.constant 0 : i32
    return %c0_i32, %c0_i32_0, %c0_i32_1 : i32, i32, i32
  }
  func.func @transform_32(%arg0: i32) -> (i32, i32, i32) {
    %c0_i32 = arith.constant 0 : i32
    %c0_i32_0 = arith.constant 0 : i32
    %c0_i32_1 = arith.constant 0 : i32
    %c0_i32_2 = arith.constant 0 : i32
    return %c0_i32, %c0_i32_0, %c0_i32_1 : i32, i32, i32
  }
  func.func @transform_33(%arg0: i32) -> (i32, i32, i32) {
    %c0_i32 = arith.constant 0 : i32
    %c0_i32_0 = arith.constant 0 : i32
    %c0_i32_1 = arith.constant 0 : i32
    %c0_i32_2 = arith.constant 0 : i32
    return %c0_i32, %c0_i32_0, %c0_i32_1 : i32, i32, i32
  }
  func.func @transform_34(%arg0: i32) -> (i32, i32, i32) {
    %c0_i32 = arith.constant 0 : i32
    %c0_i32_0 = arith.constant 0 : i32
    %c0_i32_1 = arith.constant 0 : i32
    %c0_i32_2 = arith.constant 0 : i32
    return %c0_i32, %c0_i32_0, %c0_i32_1 : i32, i32, i32
  }
  func.func @transform_35(%arg0: i32) -> (i32, i32, i32) {
    %c0_i32 = arith.constant 0 : i32
    %c0_i32_0 = arith.constant 0 : i32
    %c0_i32_1 = arith.constant 0 : i32
    %c0_i32_2 = arith.constant 0 : i32
    return %c0_i32, %c0_i32_0, %c0_i32_1 : i32, i32, i32
  }
  func.func @transform_36(%arg0: i32) -> (i32, i32, i32) {
    %c0_i32 = arith.constant 0 : i32
    %c0_i32_0 = arith.constant 0 : i32
    %c0_i32_1 = arith.constant 0 : i32
    %c0_i32_2 = arith.constant 0 : i32
    return %c0_i32, %c0_i32_0, %c0_i32_1 : i32, i32, i32
  }
  func.func @transform_37(%arg0: i32) -> (i32, i32, i32) {
    %c0_i32 = arith.constant 0 : i32
    %c0_i32_0 = arith.constant 0 : i32
    %c0_i32_1 = arith.constant 0 : i32
    %c0_i32_2 = arith.constant 0 : i32
    return %c0_i32, %c0_i32_0, %c0_i32_1 : i32, i32, i32
  }
  func.func @transform_38(%arg0: i32) -> (i32, i32, i32) {
    %c0_i32 = arith.constant 0 : i32
    %c0_i32_0 = arith.constant 0 : i32
    %c0_i32_1 = arith.constant 0 : i32
    %c0_i32_2 = arith.constant 0 : i32
    return %c0_i32, %c0_i32_0, %c0_i32_1 : i32, i32, i32
  }
  func.func @transform_39(%arg0: i32) -> (i32, i32, i32) {
    %c0_i32 = arith.constant 0 : i32
    %c0_i32_0 = arith.constant 0 : i32
    %c0_i32_1 = arith.constant 0 : i32
    %c0_i32_2 = arith.constant 0 : i32
    return %c0_i32, %c0_i32_0, %c0_i32_1 : i32, i32, i32
  }
  func.func @transform_40(%arg0: i32) -> (i32, i32) {
    %c0_i32 = arith.constant 0 : i32
    %c0_i32_0 = arith.constant 0 : i32
    %c0_i32_1 = arith.constant 0 : i32
    return %c0_i32, %c0_i32_0 : i32, i32
  }
  func.func @transform_41(%arg0: i32) -> (i32, i32) {
    %c0_i32 = arith.constant 0 : i32
    %c0_i32_0 = arith.constant 0 : i32
    %c0_i32_1 = arith.constant 0 : i32
    return %c0_i32, %c0_i32_0 : i32, i32
  }
  func.func @transform_42(%arg0: i32) -> (i32, i32) {
    %c0_i32 = arith.constant 0 : i32
    %c0_i32_0 = arith.constant 0 : i32
    return %arg0, %c0_i32 : i32, i32
  }
}

</mosaic_0001>

<bundles_post_ra>
// kernel: encoder_decoder_forward.1
= control target key start
LH: loop header
LB: loop body
LE: loop exit
PB: predicated region body
PF: predicated region fallthrough
CT: control target
= control target key end

     0   :  { %s10452_s6 = smov 1   ;;  %s10453_s10 = smov 2   ;;  %s12004_s0 = inlined_call_operand.smem [shape: u32[43], index: -1, kind: input, shape index: {}] }
   0x1   :  { %s10540_s5 = sld [smem:[%s12004_s0]]   ;;  %s10454_s14 = smov 3  }
   0x2   :  { %s10545_s9 = sld [smem:[%s12004_s0 + %s10452_s6]]   ;;  %s10455_s18 = smov 4  }
   0x3   :  { %s10550_s13 = sld [smem:[%s12004_s0 + %s10453_s10]]   ;;  %s10456_s22 = smov 5  }
   0x4   :  { %s10555_s17 = sld [smem:[%s12004_s0 + %s10454_s14]]   ;;  %s10457_s26 = smov 6  }
   0x5   :  { %s10560_s21 = sld [smem:[%s12004_s0 + %s10455_s18]]   ;;  %s10458_s30 = smov 7  }
   0x6   :  { %s10565_s25 = sld [smem:[%s12004_s0 + %s10456_s22]]   ;;  %s10459_s4 = smov 8  }
   0x7   :  { %12069 = sst [smem:[#allocation52_spill]] %s10540_s5  ;;  %s10460_s10 = smov 9  }
   0x8   :  { %12070 = sst [smem:[#allocation53_spill]] %s10545_s9  ;;  %s10461_s15 = smov 10  }
   0x9   :  { %12071 = sst [smem:[#allocation54_spill]] %s10550_s13  ;;  %s10462_s20 = smov 11  }
   0xa   :  { %12072 = sst [smem:[#allocation55_spill]] %s10555_s17  ;;  %s10464_s1 = smov 13  }
   0xb   :  { %12073 = sst [smem:[#allocation56_spill]] %s10560_s21  ;;  %s10465_s7 = smov 14  }
   0xc   :  { %12074 = sst [smem:[#allocation57_spill]] %s10565_s25  ;;  %s10467_s22 = smov 16  }
   0xd   :  { %s10570_s29 = sld [smem:[%s12004_s0 + %s10457_s26]]   ;;  %s10463_s26 = smov 12  }
   0xe   :  { %s10575_s3 = sld [smem:[%s12004_s0 + %s10458_s30]]   ;;  %s10468_s28 = smov 17  }
   0xf   :  { %s10580_s8 = sld [smem:[%s12004_s0 + %s10459_s4]]  }
  0x10   :  { %s10585_s14 = sld [smem:[%s12004_s0 + %s10460_s10]]  }
  0x11   :  { %s10590_s19 = sld [smem:[%s12004_s0 + %s10461_s15]]   ;;  %s10466_s15 = smov 15  }
  0x12   :  { %s10595_s24 = sld [smem:[%s12004_s0 + %s10462_s20]]  }
  0x13   :  { %12075 = sst [smem:[#allocation58_spill]] %s10570_s29 }
  0x14   :  { %12076 = sst [smem:[#allocation59_spill]] %s10575_s3 }
  0x15   :  { %12077 = sst [smem:[#allocation60_spill]] %s10580_s8 }
  0x16   :  { %s10600_s30 = sld [smem:[%s12004_s0 + %s10463_s26]]  }
  0x17   :  { %12078 = sst [smem:[#allocation61_spill]] %s10590_s19 }
  0x18   :  { %12079 = sst [smem:[#allocation62_spill]] %s10595_s24 }
  0x19   :  { %s10605_s6 = sld [smem:[%s12004_s0 + %s10464_s1]]  }
  0x1a   :  { %s10610_s12 = sld [smem:[%s12004_s0 + %s10465_s7]]   ;;  %s10469_s7 = smov 18  }
  0x1b   :  { %s10615_s20 = sld [smem:[%s12004_s0 + %s10466_s15]]   ;;  %s10470_s15 = smov 19  }
  0x1c   :  { %12080 = sst [smem:[#allocation63_spill]] %s10600_s30 }
  0x1d   :  { %s10620_s27 = sld [smem:[%s12004_s0 + %s10467_s22]]   ;;  %s10471_s22 = smov 20  }
  0x1e   :  { %s10625_s4 = sld [smem:[%s12004_s0 + %s10468_s28]]   ;;  %s10472_s28 = smov 21  }
  0x1f   :  { %12081 = sst [smem:[#allocation64_spill]] %s10605_s6 }
  0x20   :  { %12082 = sst [smem:[#allocation65_spill]] %s10610_s12 }
  0x21   :  { %12083 = sst [smem:[#allocation66_spill]] %s10615_s20 }
  0x22   :  { %s10630_s17 = sld [smem:[%s12004_s0 + %s10469_s7]]   ;;  %s10473_s7 = smov 22  }
  0x23   :  { %s10635_s25 = sld [smem:[%s12004_s0 + %s10470_s15]]   ;;  %s10474_s15 = smov 23  }
  0x24   :  { %12084 = sst [smem:[#allocation67_spill]] %s10625_s4 }
  0x25   :  { %s10640_s9 = sld [smem:[%s12004_s0 + %s10471_s22]]   ;;  %s10475_s22 = smov 24  }
  0x26   :  { %s10645_s3 = sld [smem:[%s12004_s0 + %s10472_s28]]   ;;  %s10476_s28 = smov 25  }
  0x27   :  { %s10650_s12 = sld [smem:[%s12004_s0 + %s10473_s7]]   ;;  %s10477_s7 = smov 26  }
  0x28   :  { %s10660_s30 = sld [smem:[%s12004_s0 + %s10475_s22]]   ;;  %s10479_s22 = smov 28  }
  0x29   :  { %12085 = sst [smem:[#allocation68_spill]] %s10635_s25 }
  0x2a   :  { %s10655_s25 = sld [smem:[%s12004_s0 + %s10474_s15]]   ;;  %s10478_s15 = smov 27  }
  0x2b   :  { %12086 = sst [smem:[#allocation69_spill]] %s10640_s9 }
  0x2c   :  { %12087 = sst [smem:[#allocation70_spill]] %s10645_s3 }
  0x2d   :  { %12088 = sst [smem:[#allocation71_spill]] %s10650_s12 }
  0x2e   :  { %12089 = sst [smem:[#allocation72_spill]] %s10660_s30 }
  0x2f   :  { %s10665_s19 = sld [smem:[%s12004_s0 + %s10476_s28]]   ;;  %s10480_s28 = smov 29  }
  0x30   :  { %s10670_s12 = sld [smem:[%s12004_s0 + %s10477_s7]]   ;;  %s10481_s7 = smov 30  }
  0x31   :  { %s10675_s13 = sld [smem:[%s12004_s0 + %s10478_s15]]   ;;  %s10482_s15 = smov 31  }
  0x32   :  { %s10680_s30 = sld [smem:[%s12004_s0 + %s10479_s22]]   ;;  %s10483_s22 = smov 32  }
  0x33   :  { %s10685_s8 = sld [smem:[%s12004_s0 + %s10480_s28]]   ;;  %s10484_s28 = smov 33  }
  0x34   :  { %s10695_s21 = sld [smem:[%s12004_s0 + %s10482_s15]]   ;;  %s10486_s15 = smov 35  }
  0x35   :  { %12090 = sst [smem:[#allocation73_spill]] %s10665_s19 }
  0x36   :  { %12091 = sst [smem:[#allocation74_spill]] %s10670_s12 }
  0x37   :  { %s10690_s12 = sld [smem:[%s12004_s0 + %s10481_s7]]   ;;  %s10485_s7 = smov 34  }
  0x38   :  { %12092 = sst [smem:[#allocation75_spill]] %s10680_s30 }
  0x39   :  { %12093 = sst [smem:[#allocation76_spill]] %s10685_s8 }
  0x3a   :  { %s10700_s30 = sld [smem:[%s12004_s0 + %s10483_s22]]   ;;  %s10487_s22 = smov 36  }
  0x3b   :  { %s10705_s29 = sld [smem:[%s12004_s0 + %s10484_s28]]   ;;  %s10488_s28 = smov 37  }
  0x3c   :  { %s10715_s5 = sld [smem:[%s12004_s0 + %s10486_s15]]   ;;  %s10490_s15 = smov 39  }
  0x3d   :  { %12094 = sst [smem:[#allocation77_spill]] %s10690_s12 }
  0x3e   :  { %s10710_s12 = sld [smem:[%s12004_s0 + %s10485_s7]]   ;;  %s10489_s7 = smov 38  }
  0x3f   :  { %s10730_s8 = sld [smem:[%s12004_s0 + %s10489_s7]]   ;;  %s10493_s7 = smov 42  }
  0x40   :  { %12095 = sst [smem:[#allocation78_spill]] %s10700_s30 }
  0x41   :  { %12096 = sst [smem:[#allocation79_spill]] %s10705_s29 }
  0x42   :  { %12098 = sst [smem:[#allocation81_spill]] %s10715_s5 }
  0x43   :  { %s10720_s30 = sld [smem:[%s12004_s0 + %s10487_s22]]   ;;  %s10491_s22 = smov 40  }
  0x44   :  { %12097 = sst [smem:[#allocation80_spill]] %s10710_s12 }
  0x45   :  { %s10725_s29 = sld [smem:[%s12004_s0 + %s10488_s28]]   ;;  %s10492_s28 = smov 41  }
  0x46   :  { %12100 = sst [smem:[#allocation83_spill]] %s10730_s8 }
  0x47   :  { %s10735_s5 = sld [smem:[%s12004_s0 + %s10490_s15]]  }
  0x48   :  { %s10740_s19 = sld [smem:[%s12004_s0 + %s10491_s22]]  }
  0x49   :  { %s10750_s3 = sld [smem:[%s12004_s0 + %s10493_s7]]  }
  0x4b   :  { %12099 = sst [smem:[#allocation82_spill]] %s10725_s29 }
  0x4c   :  { %s10745_s29 = sld [smem:[%s12004_s0 + %s10492_s28]]  }
  0x4d   :  { %12101 = sst [smem:[#allocation84_spill]] %s10735_s5 }
  0x4e   :  { %90 = vsyncpa [#allocation3], 0 }
  0x4f   :  { %91 = vsyncpa [#allocation6], 0 }
  0x50   :  { %92 = vsyncpa [#allocation9], 0 }
  0x51   :  { %93 = vsyncpa [#allocation12], 0 }
  0x52   :  { %94 = vsyncpa [#allocation15], 0 }
  0x53   :  { %95 = vsyncpa [#allocation18], 0 }
  0x54   :  { %96 = vsyncpa [#allocation21], 0 }
  0x55   :  { %97 = vsyncpa [#allocation24], 0 }
  0x56   :  { %98 = vsyncpa [#allocation27], 0 }
  0x57   :  { %99 = vsyncpa [#allocation30], 0 }
  0x58   :  { %100 = vsyncpa [#allocation33], 0 }
  0x59   :  { %101 = vsyncpa [#allocation36], 0 }
  0x5a   :  { %102 = vsyncpa [#allocation4], 0 }
  0x5b   :  { %104 = vsyncpa [#allocation4 + $0x1], 0  ;;  %s10752_s15 = smov 0   ;;  %s10754_s16 = smov 0  }
  0x5c   :  { %s10756_s0 = smov 0   ;;  %s10758_s18 = smov 0  }
  0x5d LB: > { %s12102_s12 = sld [smem:[#allocation80_spill]]  ;;  %s12103_s5 = sld [smem:[#allocation84_spill]]  ;;  %s10450_s18 = sphi %s10758_s18, %s12189_s18   ;;  %s10446_s0 = sphi %s10756_s0, %s12191_s0   ;;  %s10442_s16 = sphi %s10754_s16, %s12193_s16   ;;  %s10438_s15 = sphi %s10752_s15, %s12192_s15  }
  0x5e   : > { %s12104_s9 = sld [smem:[#allocation69_spill]]  ;;  %s12105_s8 = sld [smem:[#allocation83_spill]] }
  0x5f   : > { %s12106_s6 = sld [smem:[#allocation64_spill]]  ;;  %s12107_s4 = sld [smem:[#allocation67_spill]] }
  0x60   : > { %s12108_s24 = sld [smem:[#allocation62_spill]]  ;;  %s12109_s20 = sld [smem:[#allocation66_spill]] }
  0x61   : > { %12110 = sst [smem:[#allocation85_spill]] %s10438_s15  ;;  %s10773_s22 = sadd.s32 4294967295, %s10450_s18  }
  0x62   : > { %12111 = sst [smem:[#allocation86_spill]] %s10446_s0  ;;  %s8255_s23 = sadd.s32 4294967294, %s10450_s18  }
  0x63   : > { %12112 = sst [smem:[#allocation87_spill]] %s10450_s18  ;;  %s10777_s26 = sadd.s32 1, %s10450_s18  }
  0x64   : > { %12113 = sst [smem:[#allocation88_spill]] %s10777_s26  ;;  %s1019_s28 = sadd.s32 1, %s10446_s0 }
  0x65   : > { %s1016_s1 = ssub.s32 %s10450_s18, %s10777_s26  ;;  %p1029_p0 = scmp.ne.s32.totalorder %s10446_s0, %s10442_s16 }
  0x66   : > { %p1017_p1 = scmp.eq.s32.totalorder %s1016_s1, 0  ;;  %p1030_p2 = scmp.eq.s32.totalorder %s10773_s22, 1 }
  0x67   : > { %p1035_p3 = scmp.ne.s32.totalorder %s10442_s16, %s10438_s15  ;;  %p1036_p4 = scmp.eq.s32.totalorder %s8255_s23, 1 }
  0x68   : > { %s10788_s2 = scalar_select %p1017_p1, %s10446_s0, %s1019_s28  }
  0x69   : > { %p10790_p5 = por %p1030_p2, %p1029_p0  ;;  %p10794_p6 = por %p1036_p4, %p1035_p3 }
  0x6a   : > { %12114 = sst [smem:[#allocation89_spill]] %s10788_s2  ;;  %p8256_p7 = scmp.ge.s32.totalorder %s10450_s18, 1 }
  0x6b   : > { %s12115_s7 = scalar_select %p10790_p5, 1, 0 }
  0x6c   : > { %s12116_s10 = scalar_select %p10794_p6, 1, 0 }
  0x6d   : > { %p1043_p8 = scmp.lt.s32.totalorder %s10450_s18, 3  ;;  %p12029_p9 = scmp.eq.s32.totalorder %s10773_s22, 0 }
  0x6e   : > { %12117 = sst [smem:[#allocation90_spill]] %s12116_s10  ;;  %s10494_s23 = smov [#allocation5]  }
  0x6f   : > { %p10801_p10 = pnand %p8256_p7, %p1043_p8  ;;  %s1086_s28 = sshll.u32 %s10494_s23, 4  ;;  %s10807_s28 = int_to_ptr.vmem [resolvable:$true] %s1086_s28 }
  0x70   : > { %s10495_s2 = smov [#allocation8]   ;;  %s10496_s26 = smov [#allocation11]  }
  0x71   : > { %s12118_s11 = scalar_select %p10801_p10, 1, 0 }
  0x72   : > { %p9272_p11 = pneg %p10801_p10  ;;  %s1118_s0 = sshll.u32 %s10495_s2, 4  ;;  %s10815_s0 = int_to_ptr.vmem [resolvable:$true] %s1118_s0 }
  0x73   : > { %s10817_s10 = sshll.u32 %s10496_s26, 4  ;;  %s9696_s15 = scalar_lea.hbm %s12108_s24, 32  ;;  %s1145_s10 = int_to_ptr.vmem [resolvable:$true] %s10817_s10 }
  0x74   : > { %p10811_p12 = pnand %p12029_p9, %p9272_p11  ;;  %p9697_p13 = scmp.ne.s32.totalorder %s12108_s24, %s9696_s15 }
  0x75   : > { %p9703_p3 = scmp.lt.u32.totalorder %s9696_s15, %s12108_s24 }
  0x76   : > { %p10823_p0 = pneg %p10811_p12 }
  0x78   : > { %p9699_p1 = pnand %p10823_p0, %p9697_p13 }
  0x7a   : > { %p9700_p2 = pneg %p9699_p1 }
  0x7c   : > { %p9705_p4 = pnand %p9703_p3, %p9700_p2 }
  0x7e   : > { %9708 = shalt.err (!%p9705_p4)
}
  0x7f   : > { %s9709_s26 = scalar_lea.vmem %s10807_s28, 32  ;;  %p9717_p9 = scmp.lt.s32.totalorder %s10807_s28, %s10807_s28 }
  0x80   : > { %p9710_p7 = scmp.ne.s32.totalorder %s10807_s28, %s9709_s26  ;;  %p9718_p6 = scmp.lt.s32.totalorder %s9709_s26, %s9709_s26 }
  0x82   : > { %p9712_p8 = pnand %p9710_p7, %p10823_p0  ;;  %p9719_p5 = por %p9718_p6, %p9717_p9 }
  0x84   : > { %p9713_p11 = pneg %p9712_p8 }
  0x86   : > { %p9720_p10 = pnand %p9719_p5, %p9713_p11 }
  0x88   : > { %9723 = shalt.err (!%p9720_p10)
}
  0x89   : > { %s12035_s2 = smov 16   ;;  %s10498_s15 = smov 1  }
  0x8a   : > { %9278 = dma.hbm_to_vmem [thread:$0]  (!%p10811_p12), %s12108_s24, 32, %s10807_s28, [#allocation6], %s12035_s2, %s12035_s2, %s10498_s15  }
  0x8b   : > { %s9724_s18 = scalar_lea.hbm %s12109_s20, 32 }
  0x8c   : > { %p9725_p13 = scmp.ne.s32.totalorder %s12109_s20, %s9724_s18  ;;  %p9731_p9 = scmp.lt.u32.totalorder %s9724_s18, %s12109_s20 }
  0x8e   : > { %p9727_p6 = pnand %p9725_p13, %p10823_p0 }
  0x90   : > { %p9728_p5 = pneg %p9727_p6 }
  0x92   : > { %p9733_p10 = pnand %p9731_p9, %p9728_p5 }
  0x94   : > { %9736 = shalt.err (!%p9733_p10)
}
  0x95   : > { %s9737_s26 = scalar_lea.vmem %s10815_s0, 32  ;;  %p9745_p4 = scmp.lt.s32.totalorder %s10815_s0, %s10815_s0 }
  0x96   : > { %p9738_p1 = scmp.ne.s32.totalorder %s10815_s0, %s9737_s26  ;;  %p9746_p7 = scmp.lt.s32.totalorder %s9737_s26, %s9737_s26 }
  0x98   : > { %p9740_p2 = pnand %p9738_p1, %p10823_p0  ;;  %p9747_p8 = por %p9746_p7, %p9745_p4 }
  0x9a   : > { %p9741_p3 = pneg %p9740_p2 }
  0x9c   : > { %p9748_p11 = pnand %p9747_p8, %p9741_p3 }
  0x9e   : > { %9751 = shalt.err (!%p9748_p11)
}
  0x9f   : > { %9284 = dma.hbm_to_vmem [thread:$0]  (!%p10811_p12), %s12109_s20, 32, %s10815_s0, [#allocation9], %s12035_s2, %s12035_s2, %s10498_s15  }
  0xa0   : > { %s9752_s18 = scalar_lea.hbm %s12107_s4, 32 }
  0xa1   : > { %p9753_p13 = scmp.ne.s32.totalorder %s12107_s4, %s9752_s18  ;;  %p9759_p9 = scmp.lt.u32.totalorder %s9752_s18, %s12107_s4 }
  0xa3   : > { %p9755_p6 = pnand %p9753_p13, %p10823_p0 }
  0xa5   : > { %p9756_p5 = pneg %p9755_p6 }
  0xa7   : > { %p9761_p10 = pnand %p9759_p9, %p9756_p5 }
  0xa9   : > { %9764 = shalt.err (!%p9761_p10)
}
  0xaa   : > { %s9765_s28 = scalar_lea.vmem %s1145_s10, 32  ;;  %p9773_p4 = scmp.lt.s32.totalorder %s1145_s10, %s1145_s10 }
  0xab   : > { %p9766_p1 = scmp.ne.s32.totalorder %s1145_s10, %s9765_s28  ;;  %p9774_p7 = scmp.lt.s32.totalorder %s9765_s28, %s9765_s28 }
  0xad   : > { %p9768_p2 = pnand %p9766_p1, %p10823_p0  ;;  %p9775_p8 = por %p9774_p7, %p9773_p4 }
  0xaf   : > { %p9769_p3 = pneg %p9768_p2 }
  0xb1   : > { %p9776_p11 = pnand %p9775_p8, %p9769_p3 }
  0xb3   : > { %9779 = shalt.err (!%p9776_p11)
}
  0xb4   : > { %9290 = dma.hbm_to_vmem [thread:$0]  (!%p10811_p12), %s12107_s4, 32, %s1145_s10, [#allocation12], %s12035_s2, %s12035_s2, %s10498_s15  }
  0xb5   : > { %s10499_s0 = smov [#allocation14]   ;;  %s10500_s18 = smov [#allocation17]  }
  0xb6   : > { %s1174_s26 = sshll.u32 %s10499_s0, 4  ;;  %s1198_s20 = sshll.u32 %s10500_s18, 4  ;;  %s1175_s26 = int_to_ptr.vmem [resolvable:$true] %s1174_s26  ;;  %s1199_s20 = int_to_ptr.vmem [resolvable:$true] %s1198_s20 }
  0xb7   : > { %s9780_s28 = scalar_lea.hbm %s12104_s9, 16 }
  0xb8   : > { %p9781_p13 = scmp.ne.s32.totalorder %s12104_s9, %s9780_s28  ;;  %p9787_p9 = scmp.lt.u32.totalorder %s9780_s28, %s12104_s9 }
  0xba   : > { %p9783_p6 = pnand %p9781_p13, %p10823_p0 }
  0xbc   : > { %p9784_p5 = pneg %p9783_p6 }
  0xbe   : > { %p9789_p10 = pnand %p9787_p9, %p9784_p5 }
  0xc0   : > { %9792 = shalt.err (!%p9789_p10)
}
  0xc1   : > { %s9793_s24 = scalar_lea.vmem %s1175_s26, 16  ;;  %s9800_s10 = scalar_lea.vmem %s1175_s26, 32 }
  0xc2   : > { %p9794_p1 = scmp.ne.s32.totalorder %s1175_s26, %s9793_s24  ;;  %p9801_p4 = scmp.lt.s32.totalorder %s1175_s26, %s1175_s26 }
  0xc3   : > { %p9802_p7 = scmp.lt.s32.totalorder %s9800_s10, %s9793_s24 }
  0xc4   : > { %p9796_p2 = pnand %p9794_p1, %p10823_p0 }
  0xc5   : > { %p9803_p8 = por %p9802_p7, %p9801_p4 }
  0xc6   : > { %p9797_p3 = pneg %p9796_p2 }
  0xc8   : > { %p9804_p11 = pnand %p9803_p8, %p9797_p3 }
  0xca   : > { %9807 = shalt.err (!%p9804_p11)
}
  0xcb   : > { %9296 = dma.hbm_to_vmem [thread:$0]  (!%p10811_p12), %s12104_s9, 16, %s1175_s26, [#allocation15]  }
  0xcc   : > { %s9808_s0 = scalar_lea.hbm %s10655_s25, 32 }
  0xcd   : > { %p9809_p13 = scmp.ne.s32.totalorder %s10655_s25, %s9808_s0  ;;  %p9815_p9 = scmp.lt.u32.totalorder %s9808_s0, %s10655_s25 }
  0xcf   : > { %p9811_p6 = pnand %p9809_p13, %p10823_p0 }
  0xd1   : > { %p9812_p5 = pneg %p9811_p6 }
  0xd3   : > { %p9817_p10 = pnand %p9815_p9, %p9812_p5 }
  0xd5   : > { %9820 = shalt.err (!%p9817_p10)
}
  0xd6   : > { %s9821_s24 = scalar_lea.vmem %s1199_s20, 32  ;;  %p9829_p4 = scmp.lt.s32.totalorder %s1199_s20, %s1199_s20 }
  0xd7   : > { %p9822_p1 = scmp.ne.s32.totalorder %s1199_s20, %s9821_s24  ;;  %p9830_p7 = scmp.lt.s32.totalorder %s9821_s24, %s9821_s24 }
  0xd9   : > { %p9824_p2 = pnand %p9822_p1, %p10823_p0  ;;  %p9831_p8 = por %p9830_p7, %p9829_p4 }
  0xdb   : > { %p9825_p3 = pneg %p9824_p2 }
  0xdd   : > { %p9832_p11 = pnand %p9831_p8, %p9825_p3 }
  0xdf   : > { %9835 = shalt.err (!%p9832_p11)
}
  0xe0   : > { %9302 = dma.hbm_to_vmem [thread:$0]  (!%p10811_p12), %s10655_s25, 32, %s1199_s20, [#allocation18], %s12035_s2, %s12035_s2, %s10498_s15  }
  0xe1   : > { %s10501_s26 = smov [#allocation20]   ;;  %s10502_s28 = smov [#allocation23]  }
  0xe2   : > { %s1230_s18 = sshll.u32 %s10501_s26, 4  ;;  %s1262_s10 = sshll.u32 %s10502_s28, 4  ;;  %s1231_s18 = int_to_ptr.vmem [resolvable:$true] %s1230_s18  ;;  %s1263_s10 = int_to_ptr.vmem [resolvable:$true] %s1262_s10 }
  0xe3   : > { %s9836_s0 = scalar_lea.hbm %s10675_s13, 32 }
  0xe4   : > { %p9837_p13 = scmp.ne.s32.totalorder %s10675_s13, %s9836_s0  ;;  %p9843_p9 = scmp.lt.u32.totalorder %s9836_s0, %s10675_s13 }
  0xe6   : > { %p9839_p6 = pnand %p9837_p13, %p10823_p0 }
  0xe8   : > { %p9840_p5 = pneg %p9839_p6 }
  0xea   : > { %p9845_p10 = pnand %p9843_p9, %p9840_p5 }
  0xec   : > { %9848 = shalt.err (!%p9845_p10)
}
  0xed   : > { %s9849_s24 = scalar_lea.vmem %s1231_s18, 32  ;;  %p9857_p4 = scmp.lt.s32.totalorder %s1231_s18, %s1231_s18 }
  0xee   : > { %p9850_p1 = scmp.ne.s32.totalorder %s1231_s18, %s9849_s24  ;;  %p9858_p7 = scmp.lt.s32.totalorder %s9849_s24, %s9849_s24 }
  0xf0   : > { %p9852_p2 = pnand %p9850_p1, %p10823_p0  ;;  %p9859_p8 = por %p9858_p7, %p9857_p4 }
  0xf2   : > { %p9853_p3 = pneg %p9852_p2 }
  0xf4   : > { %p9860_p11 = pnand %p9859_p8, %p9853_p3 }
  0xf6   : > { %9863 = shalt.err (!%p9860_p11)
}
  0xf7   : > { %9308 = dma.hbm_to_vmem [thread:$0]  (!%p10811_p12), %s10675_s13, 32, %s1231_s18, [#allocation21], %s12035_s2, %s12035_s2, %s10498_s15  }
  0xf8   : > { %s9864_s20 = scalar_lea.hbm %s10695_s21, 32 }
  0xf9   : > { %p9865_p13 = scmp.ne.s32.totalorder %s10695_s21, %s9864_s20  ;;  %p9871_p9 = scmp.lt.u32.totalorder %s9864_s20, %s10695_s21 }
  0xfb   : > { %p9867_p6 = pnand %p9865_p13, %p10823_p0 }
  0xfd   : > { %p9868_p5 = pneg %p9867_p6 }
  0xff   : > { %p9873_p10 = pnand %p9871_p9, %p9868_p5 }
 0x101   : > { %9876 = shalt.err (!%p9873_p10)
}
 0x102   : > { %s9877_s26 = scalar_lea.vmem %s1263_s10, 32  ;;  %p9885_p4 = scmp.lt.s32.totalorder %s1263_s10, %s1263_s10 }
 0x103   : > { %p9878_p1 = scmp.ne.s32.totalorder %s1263_s10, %s9877_s26  ;;  %p9886_p7 = scmp.lt.s32.totalorder %s9877_s26, %s9877_s26 }
 0x105   : > { %p9880_p2 = pnand %p9878_p1, %p10823_p0  ;;  %p9887_p8 = por %p9886_p7, %p9885_p4 }
 0x107   : > { %p9881_p3 = pneg %p9880_p2 }
 0x109   : > { %p9888_p11 = pnand %p9887_p8, %p9881_p3 }
 0x10b   : > { %9891 = shalt.err (!%p9888_p11)
}
 0x10c   : > { %9314 = dma.hbm_to_vmem [thread:$0]  (!%p10811_p12), %s10695_s21, 32, %s1263_s10, [#allocation24], %s12035_s2, %s12035_s2, %s10498_s15  }
 0x10d   : > { %s10503_s18 = smov [#allocation26]   ;;  %s10504_s0 = smov [#allocation29]  }
 0x10e   : > { %s1291_s28 = sshll.u32 %s10503_s18, 4  ;;  %s1317_s24 = sshll.u32 %s10504_s0, 4  ;;  %s1292_s28 = int_to_ptr.vmem [resolvable:$true] %s1291_s28  ;;  %s1318_s24 = int_to_ptr.vmem [resolvable:$true] %s1317_s24 }
 0x10f   : > { %s9892_s20 = scalar_lea.hbm %s12102_s12, 32 }
 0x110   : > { %p9893_p13 = scmp.ne.s32.totalorder %s12102_s12, %s9892_s20  ;;  %p9899_p9 = scmp.lt.u32.totalorder %s9892_s20, %s12102_s12 }
 0x112   : > { %p9895_p6 = pnand %p9893_p13, %p10823_p0 }
 0x114   : > { %p9896_p5 = pneg %p9895_p6 }
 0x116   : > { %p9901_p10 = pnand %p9899_p9, %p9896_p5 }
 0x118   : > { %9904 = shalt.err (!%p9901_p10)
}
 0x119   : > { %s9905_s26 = scalar_lea.vmem %s1292_s28, 32  ;;  %p9913_p4 = scmp.lt.s32.totalorder %s1292_s28, %s1292_s28 }
 0x11a   : > { %p9906_p1 = scmp.ne.s32.totalorder %s1292_s28, %s9905_s26  ;;  %p9914_p7 = scmp.lt.s32.totalorder %s9905_s26, %s9905_s26 }
 0x11c   : > { %p9908_p2 = pnand %p9906_p1, %p10823_p0  ;;  %p9915_p8 = por %p9914_p7, %p9913_p4 }
 0x11e   : > { %p9909_p3 = pneg %p9908_p2 }
 0x120   : > { %p9916_p11 = pnand %p9915_p8, %p9909_p3 }
 0x122   : > { %9919 = shalt.err (!%p9916_p11)
}
 0x123   : > { %9320 = dma.hbm_to_vmem [thread:$0]  (!%p10811_p12), %s12102_s12, 32, %s1292_s28, [#allocation27], %s12035_s2, %s12035_s2, %s10498_s15  }
 0x124   : > { %s9920_s10 = scalar_lea.hbm %s10720_s30, 32 }
 0x125   : > { %p9921_p13 = scmp.ne.s32.totalorder %s10720_s30, %s9920_s10  ;;  %p9927_p9 = scmp.lt.u32.totalorder %s9920_s10, %s10720_s30 }
 0x127   : > { %p9923_p6 = pnand %p9921_p13, %p10823_p0 }
 0x129   : > { %p9924_p5 = pneg %p9923_p6 }
 0x12b   : > { %p9929_p10 = pnand %p9927_p9, %p9924_p5 }
 0x12d   : > { %9932 = shalt.err (!%p9929_p10)
}
 0x12e   : > { %s9933_s18 = scalar_lea.vmem %s1318_s24, 32  ;;  %p9941_p4 = scmp.lt.s32.totalorder %s1318_s24, %s1318_s24 }
 0x12f   : > { %p9934_p1 = scmp.ne.s32.totalorder %s1318_s24, %s9933_s18  ;;  %p9942_p7 = scmp.lt.s32.totalorder %s9933_s18, %s9933_s18 }
 0x131   : > { %p9936_p2 = pnand %p9934_p1, %p10823_p0  ;;  %p9943_p8 = por %p9942_p7, %p9941_p4 }
 0x133   : > { %p9937_p3 = pneg %p9936_p2 }
 0x135   : > { %p9944_p11 = pnand %p9943_p8, %p9937_p3 }
 0x137   : > { %9947 = shalt.err (!%p9944_p11)
}
 0x138   : > { %9326 = dma.hbm_to_vmem [thread:$0]  (!%p10811_p12), %s10720_s30, 32, %s1318_s24, [#allocation30], %s12035_s2, %s12035_s2, %s10498_s15  }
 0x139   : > { %s10505_s28 = smov [#allocation32]   ;;  %s10506_s20 = smov [#allocation35]  }
 0x13a   : > { %s1343_s0 = sshll.u32 %s10505_s28, 4  ;;  %s1370_s26 = sshll.u32 %s10506_s20, 4  ;;  %s1344_s0 = int_to_ptr.vmem [resolvable:$true] %s1343_s0  ;;  %s1371_s26 = int_to_ptr.vmem [resolvable:$true] %s1370_s26 }
 0x13b   : > { %s9948_s10 = scalar_lea.hbm %s12105_s8, 32 }
 0x13c   : > { %p9949_p13 = scmp.ne.s32.totalorder %s12105_s8, %s9948_s10  ;;  %p9955_p9 = scmp.lt.u32.totalorder %s9948_s10, %s12105_s8 }
 0x13e   : > { %p9951_p6 = pnand %p9949_p13, %p10823_p0 }
 0x140   : > { %p9952_p5 = pneg %p9951_p6 }
 0x142   : > { %p9957_p10 = pnand %p9955_p9, %p9952_p5 }
 0x144   : > { %9960 = shalt.err (!%p9957_p10)
}
 0x145   : > { %s9961_s18 = scalar_lea.vmem %s1344_s0, 32  ;;  %p9969_p4 = scmp.lt.s32.totalorder %s1344_s0, %s1344_s0 }
 0x146   : > { %p9962_p1 = scmp.ne.s32.totalorder %s1344_s0, %s9961_s18  ;;  %p9970_p7 = scmp.lt.s32.totalorder %s9961_s18, %s9961_s18 }
 0x148   : > { %p9964_p2 = pnand %p9962_p1, %p10823_p0  ;;  %p9971_p8 = por %p9970_p7, %p9969_p4 }
 0x14a   : > { %p9965_p3 = pneg %p9964_p2 }
 0x14c   : > { %p9972_p11 = pnand %p9971_p8, %p9965_p3 }
 0x14e   : > { %9975 = shalt.err (!%p9972_p11)
}
 0x14f   : > { %9332 = dma.hbm_to_vmem [thread:$0]  (!%p10811_p12), %s12105_s8, 32, %s1344_s0, [#allocation33], %s12035_s2, %s12035_s2, %s10498_s15  }
 0x150   : > { %s9976_s24 = scalar_lea.hbm %s10740_s19, 16 }
 0x151   : > { %p9977_p13 = scmp.ne.s32.totalorder %s10740_s19, %s9976_s24  ;;  %p9983_p9 = scmp.lt.u32.totalorder %s9976_s24, %s10740_s19 }
 0x153   : > { %p9979_p6 = pnand %p9977_p13, %p10823_p0 }
 0x155   : > { %p9980_p5 = pneg %p9979_p6 }
 0x157   : > { %p9985_p10 = pnand %p9983_p9, %p9980_p5 }
 0x159   : > { %9988 = shalt.err (!%p9985_p10)
}
 0x15a   : > { %s9989_s28 = scalar_lea.vmem %s1371_s26, 16  ;;  %s9996_s20 = scalar_lea.vmem %s1371_s26, 32 }
 0x15b   : > { %p9990_p1 = scmp.ne.s32.totalorder %s1371_s26, %s9989_s28  ;;  %p9997_p4 = scmp.lt.s32.totalorder %s1371_s26, %s1371_s26 }
 0x15c   : > { %p9998_p7 = scmp.lt.s32.totalorder %s9996_s20, %s9989_s28 }
 0x15d   : > { %p9992_p2 = pnand %p9990_p1, %p10823_p0 }
 0x15e   : > { %p9999_p8 = por %p9998_p7, %p9997_p4 }
 0x15f   : > { %p9993_p3 = pneg %p9992_p2 }
 0x161   : > { %p10000_p11 = pnand %p9999_p8, %p9993_p3 }
 0x163   : > { %10003 = shalt.err (!%p10000_p11)
}
 0x164   : > { %9338 = dma.hbm_to_vmem [thread:$0]  (!%p10811_p12), %s10740_s19, 16, %s1371_s26, [#allocation36]  }
 0x165   : > { %s10507_s0 = smov [#allocation2]   ;;  %s10508_s18 = smov [#allocation7]  }
 0x166   : > { %s1070_s10 = sshll.u32 %s10507_s0, 4  ;;  %s1102_s24 = sshll.u32 %s10508_s18, 4  ;;  %s1071_s10 = int_to_ptr.vmem [resolvable:$true] %s1070_s10  ;;  %s1103_s24 = int_to_ptr.vmem [resolvable:$true] %s1102_s24 }
 0x167   : > { %s10004_s2 = scalar_lea.hbm %s10585_s14, 32 }
 0x168   : > { %p10005_p13 = scmp.ne.s32.totalorder %s10585_s14, %s10004_s2  ;;  %p10011_p9 = scmp.lt.u32.totalorder %s10004_s2, %s10585_s14 }
 0x16a   : > { %p10007_p6 = pnand %p10005_p13, %p10823_p0 }
 0x16c   : > { %p10008_p5 = pneg %p10007_p6 }
 0x16e   : > { %p10013_p10 = pnand %p10011_p9, %p10008_p5 }
 0x170   : > { %10016 = shalt.err (!%p10013_p10)
}
 0x171   : > { %s10017_s28 = scalar_lea.vmem %s1071_s10, 32  ;;  %p10025_p4 = scmp.lt.s32.totalorder %s1071_s10, %s1071_s10 }
 0x172   : > { %p10018_p1 = scmp.ne.s32.totalorder %s1071_s10, %s10017_s28  ;;  %p10026_p7 = scmp.lt.s32.totalorder %s10017_s28, %s10017_s28 }
 0x174   : > { %p10020_p2 = pnand %p10018_p1, %p10823_p0  ;;  %p10027_p8 = por %p10026_p7, %p10025_p4 }
 0x176   : > { %p10021_p3 = pneg %p10020_p2 }
 0x178   : > { %p10028_p11 = pnand %p10027_p8, %p10021_p3 }
 0x17a   : > { %10031 = shalt.err (!%p10028_p11)
}
 0x17b   : > { %s12121_s26 = smov 16   ;;  %s10032_s2 = scalar_lea.hbm %s12106_s6, 32 }
 0x17c   : > { %9275 = dma.hbm_to_vmem [thread:$0]  (!%p10811_p12), %s10585_s14, 32, %s1071_s10, [#allocation3], %s12121_s26, %s12121_s26, %s10498_s15  }
 0x17d   : > { %p10033_p13 = scmp.ne.s32.totalorder %s12106_s6, %s10032_s2  ;;  %p10039_p9 = scmp.lt.u32.totalorder %s10032_s2, %s12106_s6 }
 0x17f   : > { %p10035_p6 = pnand %p10033_p13, %p10823_p0 }
 0x181   : > { %p10036_p5 = pneg %p10035_p6 }
 0x183   : > { %p10041_p10 = pnand %p10039_p9, %p10036_p5 }
 0x185   : > { %10044 = shalt.err (!%p10041_p10)
}
 0x186   : > { %s10045_s20 = scalar_lea.vmem %s1103_s24, 32  ;;  %p10053_p4 = scmp.lt.s32.totalorder %s1103_s24, %s1103_s24 }
 0x187   : > { %p10046_p1 = scmp.ne.s32.totalorder %s1103_s24, %s10045_s20  ;;  %p10054_p7 = scmp.lt.s32.totalorder %s10045_s20, %s10045_s20 }
 0x189   : > { %p10048_p2 = pnand %p10046_p1, %p10823_p0  ;;  %p10055_p8 = por %p10054_p7, %p10053_p4 }
 0x18b   : > { %p10049_p3 = pneg %p10048_p2 }
 0x18d   : > { %p10056_p11 = pnand %p10055_p8, %p10049_p3 }
 0x18f   : > { %10059 = shalt.err (!%p10056_p11)
}
 0x190   : > { %9281 = dma.hbm_to_vmem [thread:$0]  (!%p10811_p12), %s12106_s6, 32, %s1103_s24, [#allocation6], %s12121_s26, %s12121_s26, %s10498_s15  }
 0x191   : > { %s10509_s0 = smov [#allocation10]   ;;  %s10510_s18 = smov [#allocation13]  }
 0x192   : > { %s1131_s10 = sshll.u32 %s10509_s0, 4  ;;  %s1157_s28 = sshll.u32 %s10510_s18, 4  ;;  %s1132_s10 = int_to_ptr.vmem [resolvable:$true] %s1131_s10  ;;  %s1158_s28 = int_to_ptr.vmem [resolvable:$true] %s1157_s28 }
 0x193   : > { %s10060_s2 = scalar_lea.hbm %s10620_s27, 32 }
 0x194   : > { %p10061_p13 = scmp.ne.s32.totalorder %s10620_s27, %s10060_s2  ;;  %p10067_p9 = scmp.lt.u32.totalorder %s10060_s2, %s10620_s27 }
 0x196   : > { %p10063_p6 = pnand %p10061_p13, %p10823_p0 }
 0x198   : > { %p10064_p5 = pneg %p10063_p6 }
 0x19a   : > { %p10069_p10 = pnand %p10067_p9, %p10064_p5 }
 0x19c   : > { %10072 = shalt.err (!%p10069_p10)
}
 0x19d   : > { %s10073_s20 = scalar_lea.vmem %s1132_s10, 32  ;;  %p10081_p4 = scmp.lt.s32.totalorder %s1132_s10, %s1132_s10 }
 0x19e   : > { %p10074_p1 = scmp.ne.s32.totalorder %s1132_s10, %s10073_s20  ;;  %p10082_p7 = scmp.lt.s32.totalorder %s10073_s20, %s10073_s20 }
 0x1a0   : > { %p10076_p2 = pnand %p10074_p1, %p10823_p0  ;;  %p10083_p8 = por %p10082_p7, %p10081_p4 }
 0x1a2   : > { %p10077_p3 = pneg %p10076_p2 }
 0x1a4   : > { %p10084_p11 = pnand %p10083_p8, %p10077_p3 }
 0x1a6   : > { %10087 = shalt.err (!%p10084_p11)
}
 0x1a7   : > { %9287 = dma.hbm_to_vmem [thread:$0]  (!%p10811_p12), %s10620_s27, 32, %s1132_s10, [#allocation9], %s12121_s26, %s12121_s26, %s10498_s15  }
 0x1a8   : > { %s10088_s24 = scalar_lea.hbm %s10630_s17, 32 }
 0x1a9   : > { %p10089_p13 = scmp.ne.s32.totalorder %s10630_s17, %s10088_s24  ;;  %p10095_p9 = scmp.lt.u32.totalorder %s10088_s24, %s10630_s17 }
 0x1ab   : > { %p10091_p6 = pnand %p10089_p13, %p10823_p0 }
 0x1ad   : > { %p10092_p5 = pneg %p10091_p6 }
 0x1af   : > { %p10097_p10 = pnand %p10095_p9, %p10092_p5 }
 0x1b1   : > { %10100 = shalt.err (!%p10097_p10)
}
 0x1b2   : > { %s10101_s0 = scalar_lea.vmem %s1158_s28, 32  ;;  %p10109_p4 = scmp.lt.s32.totalorder %s1158_s28, %s1158_s28 }
 0x1b3   : > { %p10102_p1 = scmp.ne.s32.totalorder %s1158_s28, %s10101_s0  ;;  %p10110_p7 = scmp.lt.s32.totalorder %s10101_s0, %s10101_s0 }
 0x1b5   : > { %p10104_p2 = pnand %p10102_p1, %p10823_p0  ;;  %p10111_p8 = por %p10110_p7, %p10109_p4 }
 0x1b7   : > { %p10105_p3 = pneg %p10104_p2 }
 0x1b9   : > { %p10112_p11 = pnand %p10111_p8, %p10105_p3 }
 0x1bb   : > { %10115 = shalt.err (!%p10112_p11)
}
 0x1bc   : > { %s12122_s10 = sld [smem:[#allocation70_spill]]  ;;  %s10511_s18 = smov [#allocation16]  }
 0x1bd   : > { %9293 = dma.hbm_to_vmem [thread:$0]  (!%p10811_p12), %s10630_s17, 32, %s1158_s28, [#allocation12], %s12121_s26, %s12121_s26, %s10498_s15  }
 0x1be   : > { %s1185_s2 = sshll.u32 %s10511_s18, 4  ;;  %s10512_s20 = smov [#allocation19]   ;;  %s1186_s2 = int_to_ptr.vmem [resolvable:$true] %s1185_s2 }
 0x1bf   : > { %s1214_s24 = sshll.u32 %s10512_s20, 4  ;;  %s1215_s24 = int_to_ptr.vmem [resolvable:$true] %s1214_s24 }
 0x1c2   : > { %s10116_s0 = scalar_lea.hbm %s12122_s10, 16 }
 0x1c3   : > { %p10117_p13 = scmp.ne.s32.totalorder %s12122_s10, %s10116_s0  ;;  %p10123_p9 = scmp.lt.u32.totalorder %s10116_s0, %s12122_s10 }
 0x1c5   : > { %p10119_p6 = pnand %p10117_p13, %p10823_p0 }
 0x1c7   : > { %p10120_p5 = pneg %p10119_p6 }
 0x1c9   : > { %p10125_p10 = pnand %p10123_p9, %p10120_p5 }
 0x1cb   : > { %10128 = shalt.err (!%p10125_p10)
}
 0x1cc   : > { %s10129_s4 = scalar_lea.vmem %s1186_s2, 16  ;;  %s10136_s28 = scalar_lea.vmem %s1186_s2, 32 }
 0x1cd   : > { %p10130_p1 = scmp.ne.s32.totalorder %s1186_s2, %s10129_s4  ;;  %p10137_p4 = scmp.lt.s32.totalorder %s1186_s2, %s1186_s2 }
 0x1ce   : > { %p10138_p7 = scmp.lt.s32.totalorder %s10136_s28, %s10129_s4 }
 0x1cf   : > { %p10132_p2 = pnand %p10130_p1, %p10823_p0 }
 0x1d0   : > { %p10139_p8 = por %p10138_p7, %p10137_p4 }
 0x1d1   : > { %p10133_p3 = pneg %p10132_p2 }
 0x1d3   : > { %p10140_p11 = pnand %p10139_p8, %p10133_p3 }
 0x1d5   : > { %10143 = shalt.err (!%p10140_p11)
}
 0x1d6   : > { %s12123_s18 = sld [smem:[#allocation73_spill]] }
 0x1d7   : > { %9299 = dma.hbm_to_vmem [thread:$0]  (!%p10811_p12), %s12122_s10, 16, %s1186_s2, [#allocation15]  }
 0x1dc   : > { %s12124_s20 = smov %s12123_s18  ;;  %s10144_s0 = scalar_lea.hbm %s12123_s18, 32 }
 0x1dd   : > { %p10145_p13 = scmp.ne.s32.totalorder %s12124_s20, %s10144_s0  ;;  %p10151_p9 = scmp.lt.u32.totalorder %s10144_s0, %s12124_s20 }
 0x1df   : > { %p10147_p6 = pnand %p10145_p13, %p10823_p0 }
 0x1e1   : > { %p10148_p5 = pneg %p10147_p6 }
 0x1e3   : > { %p10153_p10 = pnand %p10151_p9, %p10148_p5 }
 0x1e5   : > { %10156 = shalt.err (!%p10153_p10)
}
 0x1e6   : > { %s10157_s4 = scalar_lea.vmem %s1215_s24, 32  ;;  %p10165_p4 = scmp.lt.s32.totalorder %s1215_s24, %s1215_s24 }
 0x1e7   : > { %p10158_p1 = scmp.ne.s32.totalorder %s1215_s24, %s10157_s4  ;;  %p10166_p7 = scmp.lt.s32.totalorder %s10157_s4, %s10157_s4 }
 0x1e9   : > { %p10160_p2 = pnand %p10158_p1, %p10823_p0  ;;  %p10167_p8 = por %p10166_p7, %p10165_p4 }
 0x1eb   : > { %p10161_p3 = pneg %p10160_p2 }
 0x1ed   : > { %p10168_p11 = pnand %p10167_p8, %p10161_p3 }
 0x1ef   : > { %10171 = shalt.err (!%p10168_p11)
}
 0x1f0   : > { %s12125_s2 = sld [smem:[#allocation76_spill]]  ;;  %s10513_s28 = smov [#allocation22]  }
 0x1f1   : > { %9305 = dma.hbm_to_vmem [thread:$0]  (!%p10811_p12), %s12124_s20, 32, %s1215_s24, [#allocation18], %s12121_s26, %s12121_s26, %s10498_s15  }
 0x1f2   : > { %s1246_s18 = sshll.u32 %s10513_s28, 4  ;;  %s10514_s0 = smov [#allocation25]   ;;  %s1247_s18 = int_to_ptr.vmem [resolvable:$true] %s1246_s18 }
 0x1f3   : > { %s1278_s6 = sshll.u32 %s10514_s0, 4  ;;  %s1279_s6 = int_to_ptr.vmem [resolvable:$true] %s1278_s6 }
 0x1f6   : > { %s10172_s4 = scalar_lea.hbm %s12125_s2, 32 }
 0x1f7   : > { %p10173_p13 = scmp.ne.s32.totalorder %s12125_s2, %s10172_s4  ;;  %p10179_p9 = scmp.lt.u32.totalorder %s10172_s4, %s12125_s2 }
 0x1f9   : > { %p10175_p6 = pnand %p10173_p13, %p10823_p0 }
 0x1fb   : > { %p10176_p5 = pneg %p10175_p6 }
 0x1fd   : > { %p10181_p10 = pnand %p10179_p9, %p10176_p5 }
 0x1ff   : > { %10184 = shalt.err (!%p10181_p10)
}
 0x200   : > { %s10185_s8 = scalar_lea.vmem %s1247_s18, 32  ;;  %p10193_p4 = scmp.lt.s32.totalorder %s1247_s18, %s1247_s18 }
 0x201   : > { %p10186_p1 = scmp.ne.s32.totalorder %s1247_s18, %s10185_s8  ;;  %p10194_p7 = scmp.lt.s32.totalorder %s10185_s8, %s10185_s8 }
 0x203   : > { %p10188_p2 = pnand %p10186_p1, %p10823_p0  ;;  %p10195_p8 = por %p10194_p7, %p10193_p4 }
 0x205   : > { %p10189_p3 = pneg %p10188_p2 }
 0x207   : > { %p10196_p11 = pnand %p10195_p8, %p10189_p3 }
 0x209   : > { %10199 = shalt.err (!%p10196_p11)
}
 0x20a   : > { %s12126_s24 = sld [smem:[#allocation79_spill]] }
 0x20b   : > { %9311 = dma.hbm_to_vmem [thread:$0]  (!%p10811_p12), %s12125_s2, 32, %s1247_s18, [#allocation21], %s12121_s26, %s12121_s26, %s10498_s15  }
 0x210   : > { %s10200_s28 = scalar_lea.hbm %s12126_s24, 32 }
 0x211   : > { %p10201_p13 = scmp.ne.s32.totalorder %s12126_s24, %s10200_s28  ;;  %p10207_p9 = scmp.lt.u32.totalorder %s10200_s28, %s12126_s24 }
 0x213   : > { %p10203_p6 = pnand %p10201_p13, %p10823_p0 }
 0x215   : > { %p10204_p5 = pneg %p10203_p6 }
 0x217   : > { %p10209_p10 = pnand %p10207_p9, %p10204_p5 }
 0x219   : > { %10212 = shalt.err (!%p10209_p10)
}
 0x21a   : > { %s10213_s8 = scalar_lea.vmem %s1279_s6, 32  ;;  %p10221_p4 = scmp.lt.s32.totalorder %s1279_s6, %s1279_s6 }
 0x21b   : > { %p10214_p1 = scmp.ne.s32.totalorder %s1279_s6, %s10213_s8  ;;  %p10222_p7 = scmp.lt.s32.totalorder %s10213_s8, %s10213_s8 }
 0x21d   : > { %p10216_p2 = pnand %p10214_p1, %p10823_p0  ;;  %p10223_p8 = por %p10222_p7, %p10221_p4 }
 0x21f   : > { %p10217_p3 = pneg %p10216_p2 }
 0x221   : > { %p10224_p11 = pnand %p10223_p8, %p10217_p3 }
 0x223   : > { %10227 = shalt.err (!%p10224_p11)
}
 0x224   : > { %s12127_s18 = sld [smem:[#allocation81_spill]]  ;;  %s10515_s0 = smov [#allocation28]  }
 0x225   : > { %9317 = dma.hbm_to_vmem [thread:$0]  (!%p10811_p12), %s12126_s24, 32, %s1279_s6, [#allocation24], %s12121_s26, %s12121_s26, %s10498_s15  }
 0x226   : > { %s1304_s28 = sshll.u32 %s10515_s0, 4  ;;  %s10516_s2 = smov [#allocation31]   ;;  %s1305_s28 = int_to_ptr.vmem [resolvable:$true] %s1304_s28 }
 0x227   : > { %s1330_s9 = sshll.u32 %s10516_s2, 4  ;;  %s1331_s9 = int_to_ptr.vmem [resolvable:$true] %s1330_s9 }
 0x22a   : > { %s12128_s4 = smov %s12127_s18  ;;  %s10228_s8 = scalar_lea.hbm %s12127_s18, 32 }
 0x22b   : > { %p10229_p13 = scmp.ne.s32.totalorder %s12128_s4, %s10228_s8  ;;  %p10235_p9 = scmp.lt.u32.totalorder %s10228_s8, %s12128_s4 }
 0x22d   : > { %p10231_p6 = pnand %p10229_p13, %p10823_p0 }
 0x22f   : > { %p10232_p5 = pneg %p10231_p6 }
 0x231   : > { %p10237_p10 = pnand %p10235_p9, %p10232_p5 }
 0x233   : > { %10240 = shalt.err (!%p10237_p10)
}
 0x234   : > { %s10241_s10 = scalar_lea.vmem %s1305_s28, 32  ;;  %p10249_p4 = scmp.lt.s32.totalorder %s1305_s28, %s1305_s28 }
 0x235   : > { %p10242_p1 = scmp.ne.s32.totalorder %s1305_s28, %s10241_s10  ;;  %p10250_p7 = scmp.lt.s32.totalorder %s10241_s10, %s10241_s10 }
 0x237   : > { %p10244_p2 = pnand %p10242_p1, %p10823_p0  ;;  %p10251_p8 = por %p10250_p7, %p10249_p4 }
 0x239   : > { %p10245_p3 = pneg %p10244_p2 }
 0x23b   : > { %p10252_p11 = pnand %p10251_p8, %p10245_p3 }
 0x23d   : > { %10255 = shalt.err (!%p10252_p11)
}
 0x23e   : > { %s12129_s6 = sld [smem:[#allocation82_spill]] }
 0x23f   : > { %9323 = dma.hbm_to_vmem [thread:$0]  (!%p10811_p12), %s12128_s4, 32, %s1305_s28, [#allocation27], %s12121_s26, %s12121_s26, %s10498_s15  }
 0x244   : > { %s10256_s2 = scalar_lea.hbm %s12129_s6, 32 }
 0x245   : > { %p10257_p13 = scmp.ne.s32.totalorder %s12129_s6, %s10256_s2  ;;  %p10263_p9 = scmp.lt.u32.totalorder %s10256_s2, %s12129_s6 }
 0x247   : > { %p10259_p6 = pnand %p10257_p13, %p10823_p0 }
 0x249   : > { %p10260_p5 = pneg %p10259_p6 }
 0x24b   : > { %p10265_p10 = pnand %p10263_p9, %p10260_p5 }
 0x24d   : > { %10268 = shalt.err (!%p10265_p10)
}
 0x24e   : > { %s10269_s10 = scalar_lea.vmem %s1331_s9, 32  ;;  %p10277_p4 = scmp.lt.s32.totalorder %s1331_s9, %s1331_s9 }
 0x24f   : > { %p10270_p1 = scmp.ne.s32.totalorder %s1331_s9, %s10269_s10  ;;  %p10278_p7 = scmp.lt.s32.totalorder %s10269_s10, %s10269_s10 }
 0x251   : > { %p10272_p2 = pnand %p10270_p1, %p10823_p0  ;;  %p10279_p8 = por %p10278_p7, %p10277_p4 }
 0x253   : > { %p10273_p3 = pneg %p10272_p2 }
 0x255   : > { %p10280_p11 = pnand %p10279_p8, %p10273_p3 }
 0x257   : > { %10283 = shalt.err (!%p10280_p11)
}
 0x258   : > { %9329 = dma.hbm_to_vmem [thread:$0]  (!%p10811_p12), %s12129_s6, 32, %s1331_s9, [#allocation30], %s12121_s26, %s12121_s26, %s10498_s15  }
 0x259   : > { %s10517_s18 = smov [#allocation34]   ;;  %s10518_s28 = smov [#allocation37]  }
 0x25a   : > { %s1356_s0 = sshll.u32 %s10517_s18, 4  ;;  %s1381_s8 = sshll.u32 %s10518_s28, 4  ;;  %s1357_s0 = int_to_ptr.vmem [resolvable:$true] %s1356_s0  ;;  %s1382_s8 = int_to_ptr.vmem [resolvable:$true] %s1381_s8 }
 0x25b   : > { %s10284_s2 = scalar_lea.hbm %s12103_s5, 32 }
 0x25c   : > { %p10285_p13 = scmp.ne.s32.totalorder %s12103_s5, %s10284_s2  ;;  %p10291_p9 = scmp.lt.u32.totalorder %s10284_s2, %s12103_s5 }
 0x25e   : > { %p10287_p6 = pnand %p10285_p13, %p10823_p0 }
 0x260   : > { %p10288_p5 = pneg %p10287_p6 }
 0x262   : > { %p10293_p10 = pnand %p10291_p9, %p10288_p5 }
 0x264   : > { %10296 = shalt.err (!%p10293_p10)
}
 0x265   : > { %s10297_s10 = scalar_lea.vmem %s1357_s0, 32  ;;  %p10305_p4 = scmp.lt.s32.totalorder %s1357_s0, %s1357_s0 }
 0x266   : > { %p10298_p1 = scmp.ne.s32.totalorder %s1357_s0, %s10297_s10  ;;  %p10306_p7 = scmp.lt.s32.totalorder %s10297_s10, %s10297_s10 }
 0x268   : > { %p10300_p2 = pnand %p10298_p1, %p10823_p0  ;;  %p10307_p8 = por %p10306_p7, %p10305_p4 }
 0x26a   : > { %p10301_p3 = pneg %p10300_p2 }
 0x26c   : > { %p10308_p11 = pnand %p10307_p8, %p10301_p3 }
 0x26e   : > { %10311 = shalt.err (!%p10308_p11)
}
 0x26f   : > { %9335 = dma.hbm_to_vmem [thread:$0]  (!%p10811_p12), %s12103_s5, 32, %s1357_s0, [#allocation33], %s12121_s26, %s12121_s26, %s10498_s15  }
 0x270   : > { %s10312_s9 = scalar_lea.hbm %s10745_s29, 16 }
 0x271   : > { %p10313_p13 = scmp.ne.s32.totalorder %s10745_s29, %s10312_s9  ;;  %p10319_p9 = scmp.lt.u32.totalorder %s10312_s9, %s10745_s29 }
 0x273   : > { %p10315_p6 = pnand %p10313_p13, %p10823_p0 }
 0x275   : > { %p10316_p5 = pneg %p10315_p6 }
 0x277   : > { %p10321_p10 = pnand %p10319_p9, %p10316_p5 }
 0x279   : > { %10324 = shalt.err (!%p10321_p10)
}
 0x27a   : > { %s10325_s18 = scalar_lea.vmem %s1382_s8, 16  ;;  %s10332_s28 = scalar_lea.vmem %s1382_s8, 32 }
 0x27b   : > { %p10326_p1 = scmp.ne.s32.totalorder %s1382_s8, %s10325_s18  ;;  %p10333_p4 = scmp.lt.s32.totalorder %s1382_s8, %s1382_s8 }
 0x27c   : > { %p10334_p7 = scmp.lt.s32.totalorder %s10332_s28, %s10325_s18 }
 0x27d   : > { %p10328_p2 = pnand %p10326_p1, %p10823_p0 }
 0x27e   : > { %p10335_p8 = por %p10334_p7, %p10333_p4 }
 0x27f   : > { %p10329_p3 = pneg %p10328_p2 }
 0x281   : > { %p10336_p11 = pnand %p10335_p8, %p10329_p3 }
 0x283   : > { %10339 = shalt.err (!%p10336_p11)
}
 0x284   : > { %9341 = dma.hbm_to_vmem [thread:$0]  (!%p10811_p12), %s10745_s29, 16, %s1382_s8, [#allocation36]  }
 0x285   : > { %p12130_p13 = scmp.ne.s32.totalorder %s12118_s11, 0 }
 0x286   : > { %p12131_p6 = scmp.eq.s32.totalorder (!%p12130_p13), %s10773_s22, 0 }
 0x287   : > { %1421 = sbr.rel (%p12130_p13) target bundleno = 14992 (0x3a90), region = 188 }
 0x28e   : > { %10385 = dma.done.wait (%p12131_p6), [#allocation3], 32   ;;  %p12132_p5 = pmov %p12131_p6 }
 0x290   : > { %10387 = vsyncadd (%p12132_p5), [#allocation3], 4294967264  ;;  %p12133_p0 = pmov %p12132_p5 }
 0x292   : > { %10389 = dma.done.wait (%p12133_p0), [#allocation6], 64   ;;  %p12134_p9 = pmov %p12133_p0 }
 0x293   : > { %p12135_p10 = pmov %p12133_p0 }
 0x294   : > { %10391 = vsyncadd (%p12134_p9), [#allocation6], 4294967232 }
 0x295   : > { %10393 = dma.done.wait (%p12135_p10), [#allocation9], 64   ;;  %p12136_p12 = pmov %p12133_p0 }
 0x296   : > { %p12137_p1 = pmov %p12133_p0 }
 0x297   : > { %10395 = vsyncadd (%p12136_p12), [#allocation9], 4294967232 }
 0x298   : > { %10397 = dma.done.wait (%p12137_p1), [#allocation12], 64   ;;  %p12138_p2 = pmov %p12133_p0 }
 0x299   : > { %p12139_p3 = pmov %p12133_p0 }
 0x29a   : > { %10399 = vsyncadd (%p12138_p2), [#allocation12], 4294967232 }
 0x29b   : > { %10401 = dma.done.wait (%p12139_p3), [#allocation15], 32   ;;  %p12140_p4 = pmov %p12133_p0 }
 0x29c   : > { %p12141_p7 = pmov %p12133_p0 }
 0x29d   : > { %10403 = vsyncadd (%p12140_p4), [#allocation15], 4294967264 }
 0x29e   : > { %10405 = dma.done.wait (%p12141_p7), [#allocation18], 64   ;;  %p12142_p8 = pmov %p12133_p0 }
 0x29f   : > { %p12143_p11 = pmov %p12133_p0 }
 0x2a0   : > { %10407 = vsyncadd (%p12142_p8), [#allocation18], 4294967232 }
 0x2a1   : > { %10409 = dma.done.wait (%p12143_p11), [#allocation21], 64   ;;  %p12144_p13 = pmov %p12133_p0 }
 0x2a2   : > { %p12145_p6 = pmov %p12133_p0 }
 0x2a3   : > { %10411 = vsyncadd (%p12144_p13), [#allocation21], 4294967232 }
 0x2a4   : > { %10413 = dma.done.wait (%p12145_p6), [#allocation24], 64   ;;  %p12146_p5 = pmov %p12133_p0 }
 0x2a6   : > { %10415 = vsyncadd (%p12146_p5), [#allocation24], 4294967232 }
 0x2a7   : > { %10417 = dma.done.wait (%p12133_p0), [#allocation27], 64   ;;  %p12147_p9 = pmov %p12133_p0 }
 0x2a8   : > { %p12148_p10 = pmov %p12133_p0 }
 0x2a9   : > { %10419 = vsyncadd (%p12147_p9), [#allocation27], 4294967232 }
 0x2aa   : > { %10421 = dma.done.wait (%p12148_p10), [#allocation30], 64   ;;  %p12149_p12 = pmov %p12133_p0 }
 0x2ab   : > { %p12150_p1 = pmov %p12133_p0 }
 0x2ac   : > { %10423 = vsyncadd (%p12149_p12), [#allocation30], 4294967232 }
 0x2ad   : > { %10425 = dma.done.wait (%p12150_p1), [#allocation33], 64   ;;  %p12151_p2 = pmov %p12133_p0 }
 0x2ae   : > { %p12152_p3 = pmov %p12133_p0 }
 0x2af   : > { %10427 = vsyncadd (%p12151_p2), [#allocation33], 4294967232 }
 0x2b0   : > { %10429 = dma.done.wait (%p12152_p3), [#allocation36], 32   ;;  %p12153_p4 = pmov %p12133_p0 }
 0x2b1   : > { %s12154_s11 = sld [smem:[#allocation52_spill]]  ;;  %s12155_s1 = sld [smem:[#allocation58_spill]]  ;;  %v10519_v0 = vmov 0.0|0.0   ;;  %vm10520_vm0 = vmmov 0   ;;  %v10521_v1 = vmov 0.0   ;;  %vm1644_vm1 = vcmask 130048  }
 0x2b2   : > { %10431 = vsyncadd (%p12153_p4), [#allocation36], 4294967264  ;;  %p1621_p7 = scmp.lt.s32.totalorder %s10773_s22, 1  ;;  %9172 = vmatprep.subr.bf16.mxu0 %v10519_v0  ;;  %8730 = vmatprep.mubr.msk.f32.mxu0 %vm10520_vm0, %v10521_v1  ;;  %s12156_s23 = sld [smem:[#allocation56_spill]]  ;;  %vm1723_vm2 = vcmask 261120   ;;  %vm1840_vm5 = vcmask 64512   ;;  %v2148_v47 = vlaneseq }
 0x2b3   : > { %8733 = vmatprep.subr.bf16.mxu1 %v10521_v1  ;;  %8737 = vmatprep.mubr.msk.bf16.mxu1 %vm10520_vm0, %v10521_v1  ;;  %s12157_s8 = sld [smem:[#allocation60_spill]]  ;;  %v8310_v27 = vld [vmem:[#allocation10] ss:$0 sm:$0xff]  ;;  %v8311_v30 = vld [vmem:[#allocation11] ss:$0 sm:$0xff]  ;;  %s12051_s2 = smov 104  }
 0x2b4   : > { %s11178_s15 = scalar_select %p1621_p7, %s10773_s22, 1  ;;  %v8312_v34 = vld [vmem:[#allocation2] ss:$0 sm:$0xff]  ;;  %v2149_v49 = vshrl.u32 %v2148_v47, 7  ;;  %v10526_v51 = vmov 0   ;;  %vm2519_vm8 = vcmask 195584  }
 0x2b5   : > { %s12055_s10 = smov 120   ;;  %s12057_s9 = smov 112   ;;  %vm2728_vm11 = vcmask 523264  }
 0x2b6   : > { %s11184_s26 = sshll.u32 %s11178_s15, 3  ;;  %s12053_s18 = smov 96   ;;  %v2150_v50 = vsub.s32 0, %v2149_v49 }
 0x2b7   : > { %s1624_s0 = scalar_lea.vmem %s12154_s11, %s11184_s26  ;;  %v1642_v2 = vld [vmem:[%s12155_s1] sm:$0xff]  ;;  %v1643_v3 = vld [vmem:[%s12155_s1 + $0x8] sm:$0xff]  ;;  %s12158_s28 = sld [smem:[#allocation54_spill]] }
 0x2b8   : > { %v9173_v4 = vpack.c.bf16 %v1643_v3, %v1642_v2  ;;  %v1641_v5 = vld [vmem:[%s1624_s0] sm:$0xff]  ;;  %s12049_s0 = smov 8   ;;  %s12171_s1 = sld [smem:[#allocation59_spill]] }
 0x2b9   : > { %v1719_v7 = vld [vmem:[%s12156_s23] sm:$0xff]  ;;  %v9505_v18 = vld [vmem:[%s12157_s8 + $0x8] sm:$0xff]   ;;  %s12043_s23 = smov 64   ;;  %s12172_s4 = sld [smem:[#allocation53_spill]] }
 0x2ba   : > { %9174 = vmatpush3.bf16.msra.mxu0 %v9173_v4  ;;  %v9504_v17 = vld [vmem:[%s12157_s8] sm:$0xff]   ;;  %s12178_s6 = sld [smem:[#allocation55_spill]]  ;;  %s12183_s12 = sld [smem:[#allocation78_spill]] }
 0x2bb   : > { %8741 = vmatprep.subr.mxu0 %v10521_v1  ;;  %8734 = vmatpush3.bf16.msra.mxu1 %v9504_v17  ;;  %p12184_p11 = scmp.ne.s32.totalorder %s12115_s7, 0 }
 0x2bc   : > { %8735 = vmatprep.subr.bf16.mxu1 %v10521_v1 }
 0x2bd   : > { %8731 = vmatmul.mubr.msk.f32.vlgmr.msra.gmra.mrb[0].mxu0 %vm1644_vm1, %v1641_v5  ;;  %s1631_s11 = scalar_lea.vmem %s12158_s28, %s11178_s15  ;;  %s12159_s15 = sld [smem:[#allocation61_spill]] }
 0x2be   : > { %8743 = vmatprep.mubr.msk.f32.mxu0 %vm10520_vm0, %v10521_v1  ;;  %v1637_v48 = vld [vmem:[%s1631_s11] sm:$0x1]  ;;  %s12045_s11 = smov 16  }
 0x2bf   : > { %8736 = vmatpush3.bf16.msra.mxu1 %v9505_v18  ;;  %vm1638_vm6 = vcmp.gt.f32.partialorder %v1637_v48, 0.0  ;;  %s1628_s5 = scalar_lea.vmem %s12172_s4, %s11184_s26  ;;  %s12175_s4 = smov 112  }
 0x2c0   : > { %8756 = vmatprep.subr.mxu1 %v10521_v1  ;;  %v2147_v52 = vsel %vm1638_vm6, 1, %v10526_v51 }
 0x2c1   : > { %v11256_v53 = vrot.slane %v2147_v52, %v2150_v50 }
 0x2c3   : > { %vm2152_vm7 = vcmp.eq.s32.totalorder %v11256_v53, 1  ;;  %s12160_s28 = smov %s12159_s15  ;;  %v9506_v51 = vld [vmem:[%s12159_s15] sm:$0xff]   ;;  %s12161_s15 = sld [smem:[#allocation63_spill]] }
 0x2c4   : > { %v9507_v52 = vld [vmem:[%s12160_s28 + $0x8] sm:$0xff]  }
 0x390   : > { %v1714_v6 = vpop.f32.mrb[0].mxu0 }
 0x391   : > { %v1718_v8 = vmul.f32 5.656854, %v1714_v6  ;;  %v8732_v9 = vpop.f32.mrb[1].mxu0 }
 0x393   : > { %v11195_v10 = vadd.f32 %v1719_v7, %v1718_v8 }
 0x395   : > { %v1724_v11 = vsel %vm1723_vm2, %v11195_v10, 0.0 }
 0x396   : > { %1725 = vadd.xlane.f32.xlu0 %v1724_v11 }
 0x423   : > { %v1726_v12 = vpop.xlane.xlu0 %1725 }
 0x424   : > { %v1728_v13 = vmul.f32 0.03125, %v1726_v12 }
 0x426   : > { %v1729_v14 = vsub.f32 %v11195_v10, %v1728_v13 }
 0x428   : > { %v1730_v15 = vmul.f32 %v1729_v14, %v1729_v14  ;;  %v1750_v28 = vmul.f32 %v8310_v27, %v1729_v14 }
 0x42a   : > { %v1731_v16 = vsel %vm1723_vm2, %v1730_v15, 0.0 }
 0x42b   : > { %1732 = vadd.xlane.f32.xlu0 %v1731_v16 }
 0x4b8   : > { %v1733_v19 = vpop.xlane.xlu0 %1732 }
 0x4b9   : > { %v1734_v20 = vmul.f32 0.032258064, %v1733_v19 }
 0x4bb   : > { %9552 = vrsqrt.f32 %v1734_v20  ;;  %vm1737_vm3 = vcmp.eq.f32.partialorder %v1734_v20, inf  ;;  %v1740_v23 = vand.u32 2147483648, %v1734_v20  ;;  %vm1739_vm4 = vcmp.eq.f32.partialorder %v1734_v20, 0.0 }
 0x4c5   : > { %v9553_v21 = vpop.eup %9552 }
 0x4c6   : > { %v1736_v22 = vmul.f32 %v9553_v21, %v1734_v20 }
 0x4c8   : > { %v1738_v24 = vsel %vm1737_vm3, %v1734_v20, %v1736_v22 }
 0x4c9   : > { %v1741_v25 = vsel %vm1739_vm4, %v1740_v23, %v1738_v24 }
 0x4ca   : > { %v1742_v26 = vadd.f32 1e-06, %v1741_v25 }
 0x4cc   : > { %9554 = vrcp.f32 %v1742_v26 }
 0x4d6   : > { %v9555_v29 = vpop.eup %9554 }
 0x4d7   : > { %v1751_v31 = vmul.f32 %v9555_v29, %v1750_v28 }
 0x4d9   : > { %v1758_v32 = vadd.f32 %v8311_v30, %v1751_v31 }
 0x4db   : > { %v1769_v33 = vpack.c.bf16 %v1758_v32, %v1758_v32 }
 0x4dd   : > { %8738 = vmatmul.mubr.msk.bf16.vlgmr.msra.gmra.mrb[0].mxu1 %vm1723_vm2, %v1769_v33 }
 0x4de   : > { %8758 = vmatprep.mubr.msk.f32.mxu1 %vm10520_vm0, %v10521_v1 }
 0x5b0   : > { %v1825_v35 = vpop.f32.mrb[0].mxu1 }
 0x5b1   : > { %v11208_v36 = vadd.f32 %v8312_v34, %v1825_v35  ;;  %v8739_v37 = vpop.f32.mrb[1].mxu1 }
 0x5b2   : > { %v1828_v38 = vpop.f32.mrb[2].mxu1 }
 0x5b3   : > { %1836 = vrot.lane.b32.xlu0 %v11208_v36, %s12051_s2  ;;  %1832 = vrot.lane.b32.xlu1 %v11208_v36, %s12055_s10  ;;  %v8740_v39 = vpop.f32.mrb[3].mxu1 }
 0x5b7   : > { %1834 = vrot.lane.b32.xlu1 %v11208_v36, %s12057_s9 }
 0x5bb   : > { %1838 = vrot.lane.b32.xlu1 %v11208_v36, %s12053_s18 }
 0x625   : > { %v11218_v40 = vpop.permute.xlu1 %1832  ;;  %v11226_v42 = vpop.permute.xlu0 %1836 }
 0x626   : > { %1915 = vrot.lane.b32.xlu1 %v11218_v40, %s12053_s18 }
 0x629   : > { %v11222_v41 = vpop.permute.xlu1 %1834 }
 0x62a   : > { %1991 = vrot.lane.b32.xlu1 %v11222_v41, %s12053_s18 }
 0x62d   : > { %v1839_v43 = vpop.permute.xlu1 %1838 }
 0x62e   : > { %2067 = vrot.lane.b32.xlu1 %v11226_v42, %s12053_s18  ;;  %8742 = vmatpush3.xpose.msk.msra.mxu0 %vm1840_vm5, %v1839_v43 }
 0x62f   : > { %8746 = vmatprep.subr.mxu0 %v10521_v1 }
 0x631   : > { %8744 = vmatmul.mubr.msk.f32.vlgmr.msra.gmra.mrb[2].mxu0 %vm1840_vm5, %v11208_v36 }
 0x632   : > { %8748 = vmatprep.mubr.msk.f32.mxu0 %vm10520_vm0, %v10521_v1 }
 0x698   : > { %v1916_v44 = vpop.permute.xlu1 %1915 }
 0x699   : > { %8747 = vmatpush3.xpose.msk.msra.mxu0 %vm1840_vm5, %v1916_v44 }
 0x69a   : > { %8751 = vmatprep.subr.mxu0 %v10521_v1 }
 0x69c   : > { %8749 = vmatmul.mubr.msk.f32.vlgmr.msra.gmra.mrb[4].mxu0 %vm1840_vm5, %v11218_v40  ;;  %v1992_v45 = vpop.permute.xlu1 %1991 }
 0x69d   : > { %8752 = vmatpush3.xpose.msk.msra.mxu0 %vm1840_vm5, %v1992_v45  ;;  %8753 = vmatprep.mubr.msk.f32.mxu0 %vm10520_vm0, %v10521_v1 }
 0x69e   : > { %8761 = vmatprep.subr.mxu0 %v10521_v1 }
 0x6a0   : > { %8754 = vmatmul.mubr.msk.f32.vlgmr.msra.gmra.mrb[6].mxu0 %vm1840_vm5, %v11222_v41  ;;  %v2068_v46 = vpop.permute.xlu1 %2067 }
 0x6a1   : > { %8757 = vmatpush3.xpose.msk.msra.mxu1 %vm1840_vm5, %v2068_v46  ;;  %8763 = vmatprep.mubr.msk.f32.mxu0 %vm10520_vm0, %v10521_v1 }
 0x6a2   : > { %8766 = vmatprep.subr.mxu1 %v10521_v1 }
 0x6a4   : > { %8759 = vmatmul.mubr.msk.f32.vlgmr.msra.gmra.mrb[4].mxu1 %vm1840_vm5, %v11226_v42 }
 0x6a5   : > { %8768 = vmatprep.mubr.msk.f32.mxu1 %vm10520_vm0, %v10521_v1 }
 0x704   : > { %v1911_v54 = vpop.f32.mrb[2].mxu0 }
 0x705   : > { %v2143_v55 = vmul.f32 0.35355338, %v1911_v54  ;;  %v8745_v56 = vpop.f32.mrb[3].mxu0 }
 0x707   : > { %v2153_v57 = vsel %vm2152_vm7, %v2143_v55, -1e+09 }
 0x708   : > { %v2157_v58 = vsel %vm1840_vm5, %v2153_v57, -inf }
 0x709   : > { %2158 = vmax.xlane.f32.xlu1 %v2157_v58 }
 0x76f   : > { %v1987_v59 = vpop.f32.mrb[4].mxu0 }
 0x770   : > { %v2144_v60 = vmul.f32 0.35355338, %v1987_v59  ;;  %v8750_v61 = vpop.f32.mrb[5].mxu0 }
 0x772   : > { %v2154_v62 = vsel %vm2152_vm7, %v2144_v60, -1e+09 }
 0x773   : > { %v2063_v63 = vpop.f32.mrb[6].mxu0  ;;  %v2160_v2 = vsel %vm1840_vm5, %v2154_v62, -inf }
 0x774   : > { %v2145_v3 = vmul.f32 0.35355338, %v2063_v63  ;;  %v8755_v4 = vpop.f32.mrb[7].mxu0  ;;  %2161 = vmax.xlane.f32.xlu0 %v2160_v2 }
 0x776   : > { %v2155_v5 = vsel %vm2152_vm7, %v2145_v3, -1e+09 }
 0x777   : > { %v2139_v6 = vpop.f32.mrb[4].mxu1  ;;  %v2163_v7 = vsel %vm1840_vm5, %v2155_v5, -inf }
 0x778   : > { %v2146_v8 = vmul.f32 0.35355338, %v2139_v6  ;;  %v8760_v9 = vpop.f32.mrb[5].mxu1  ;;  %2164 = vmax.xlane.f32.xlu1 %v2163_v7 }
 0x77a   : > { %v2156_v11 = vsel %vm2152_vm7, %v2146_v8, -1e+09 }
 0x77b   : > { %v2166_v12 = vsel %vm1840_vm5, %v2156_v11, -inf }
 0x77c   : > { %2167 = vmax.xlane.f32.xlu0 %v2166_v12 }
 0x789   : > { %2201 = vrot.lane.b32.xlu1 %v11208_v36, %s12043_s23 }
 0x796   : > { %v2159_v13 = vpop.xlane.xlu1 %2158 }
 0x797   : > { %v2169_v14 = vsub.f32 %v2153_v57, %v2159_v13 }
 0x799   : > { %v2173_v15 = vmul.f32 1.442695, %v2169_v14 }
 0x79b   : > { %9556 = vpow2.f32 %v2173_v15 }
 0x7a5   : > { %v9557_v16 = vpop.eup %9556 }
 0x7a6   : > { %v2181_v17 = vsel %vm1840_vm5, %v9557_v16, 0.0 }
 0x7ad   : > { %2182 = vadd.xlane.f32.xlu1 %v2181_v17 }
 0x7be   : > { %2353 = vrot.lane.b32.xlu1 %v11222_v41, %s12043_s23 }
 0x801   : > { %v2162_v18 = vpop.xlane.xlu0 %2161 }
 0x802   : > { %v2170_v19 = vsub.f32 %v2154_v62, %v2162_v18 }
 0x804   : > { %v2175_v20 = vmul.f32 1.442695, %v2170_v19  ;;  %v9508_v19 = vld [vmem:[%s12161_s15] sm:$0xff]  }
 0x805   : > { %v2165_v21 = vpop.xlane.xlu1 %2164 }
 0x806   : > { %9558 = vpow2.f32 %v2175_v20  ;;  %v2171_v22 = vsub.f32 %v2155_v5, %v2165_v21  ;;  %v8328_v5 = vld [vmem:[#allocation5] ss:$0 sm:$0xff] }
 0x808   : > { %v2177_v23 = vmul.f32 1.442695, %v2171_v22 }
 0x809   : > { %v2168_v24 = vpop.xlane.xlu0 %2167  ;;  %v2202_v25 = vpop.permute.xlu1 %2201 }
 0x80a   : > { %9560 = vpow2.f32 %v2177_v23  ;;  %v2172_v26 = vsub.f32 %v2156_v11, %v2168_v24  ;;  %8762 = vmatpush3.msra.mxu0 %v2202_v25 }
 0x80b   : > { %8771 = vmatprep.subr.mxu0 %v10521_v1 }
 0x80c   : > { %v2179_v27 = vmul.f32 1.442695, %v2172_v26 }
 0x80e   : > { %9562 = vpow2.f32 %v2179_v27 }
 0x810   : > { %v9559_v28 = vpop.eup %9558 }
 0x811   : > { %v2184_v29 = vsel %vm1840_vm5, %v9559_v28, 0.0 }
 0x812   : > { %2185 = vadd.xlane.f32.xlu0 %v2184_v29 }
 0x814   : > { %v9561_v30 = vpop.eup %9560 }
 0x815   : > { %v2187_v31 = vsel %vm1840_vm5, %v9561_v30, 0.0 }
 0x816   : > { %2188 = vadd.xlane.f32.xlu1 %v2187_v31 }
 0x818   : > { %v9563_v32 = vpop.eup %9562 }
 0x819   : > { %v2190_v33 = vsel %vm1840_vm5, %v9563_v32, 0.0 }
 0x81a   : > { %2191 = vadd.xlane.f32.xlu0 %v2190_v33 }
 0x827   : > { %2429 = vrot.lane.b32.xlu1 %v11226_v42, %s12043_s23 }
 0x830   : > { %2277 = vrot.lane.b32.xlu0 %v11218_v40, %s12043_s23  ;;  %s12047_s23 = smov 24  }
 0x83a   : > { %v2183_v34 = vpop.xlane.xlu1 %2182 }
 0x83b   : > { %9564 = vrcp.f32 %v2183_v34 }
 0x83e   : > { %v2354_v37 = vpop.permute.xlu1 %2353 }
 0x845   : > { %v9565_v35 = vpop.eup %9564 }
 0x846   : > { %v2197_v36 = vmul.f32 %v9565_v35, %v9557_v16 }
 0x848   : > { %8764 = vmatmul.mubr.msk.f32.vlgmr.msra.gmra.mrb[8].mxu0 %vm1840_vm5, %v2197_v36 }
 0x849   : > { %8772 = vmatpush3.msra.mxu0 %v2354_v37  ;;  %8773 = vmatprep.mubr.msk.f32.mxu0 %vm10520_vm0, %v10521_v1 }
 0x84a   : > { %8797 = vmatprep.subr.bf16.mxu0 %v10521_v1 }
 0x89f   : > { %v2186_v38 = vpop.xlane.xlu0 %2185 }
 0x8a0   : > { %9566 = vrcp.f32 %v2186_v38 }
 0x8a3   : > { %v2189_v39 = vpop.xlane.xlu1 %2188 }
 0x8a4   : > { %9568 = vrcp.f32 %v2189_v39  ;;  %v8334_v39 = vld [vmem:[#allocation7] ss:$0 sm:$0xff] }
 0x8a7   : > { %v2192_v41 = vpop.xlane.xlu0 %2191  ;;  %v2430_v44 = vpop.permute.xlu1 %2429 }
 0x8a8   : > { %9570 = vrcp.f32 %v2192_v41 }
 0x8aa   : > { %v9567_v40 = vpop.eup %9566 }
 0x8ab   : > { %v2278_v42 = vpop.permute.xlu0 %2277  ;;  %v2198_v43 = vmul.f32 %v9567_v40, %v9559_v28 }
 0x8ac   : > { %8767 = vmatpush3.msra.mxu1 %v2278_v42 }
 0x8ad   : > { %8769 = vmatmul.mubr.msk.f32.vlgmr.msra.gmra.mrb[6].mxu1 %vm1840_vm5, %v2198_v43  ;;  %8776 = vmatprep.subr.mxu1 %v10521_v1 }
 0x8ae   : > { %v9569_v45 = vpop.eup %9568  ;;  %8777 = vmatpush3.msra.mxu1 %v2430_v44  ;;  %8778 = vmatprep.mubr.msk.f32.mxu1 %vm10520_vm0, %v10521_v1 }
 0x8af   : > { %v2199_v46 = vmul.f32 %v9569_v45, %v9561_v30  ;;  %8781 = vmatprep.subr.bf16.mxu1 %v10521_v1  ;;  %v8332_v30 = vld [vmem:[#allocation13] ss:$0 sm:$0xff] }
 0x8b1   : > { %8774 = vmatmul.mubr.msk.f32.vlgmr.msra.gmra.mrb[10].mxu0 %vm1840_vm5, %v2199_v46 }
 0x8b2   : > { %v9571_v47 = vpop.eup %9570  ;;  %8805 = vmatprep.mubr.msk.bf16.mxu0 %vm10520_vm0, %v10521_v1 }
 0x8b3   : > { %v2200_v48 = vmul.f32 %v9571_v47, %v9563_v32  ;;  %v8338_v47 = vld [vmem:[#allocation8] ss:$0 sm:$0xff] }
 0x8b5   : > { %8779 = vmatmul.mubr.msk.f32.vlgmr.msra.gmra.mrb[8].mxu1 %vm1840_vm5, %v2200_v48 }
 0x8b6   : > { %8785 = vmatprep.mubr.msk.bf16.mxu1 %vm10520_vm0, %v10521_v1  ;;  %8782 = vmatpush3.bf16.msra.mxu1 %v9506_v51 }
 0x8b7   : > { %8783 = vmatprep.subr.bf16.mxu1 %v10521_v1 }
 0x8ba   : > { %8784 = vmatpush3.bf16.msra.mxu1 %v9507_v52 }
 0x8bb   : > { %8789 = vmatprep.subr.bf16.mxu1 %v10521_v1 }
 0x91b   : > { %v2273_v49 = vpop.f32.mrb[8].mxu0 }
 0x91c   : > { %v8765_v50 = vpop.f32.mrb[9].mxu0 }
 0x980   : > { %v2349_v54 = vpop.f32.mrb[6].mxu1 }
 0x981   : > { %2506 = vrot.lane.b32.xlu0 %v2349_v54, %s12049_s0  ;;  %v8770_v55 = vpop.f32.mrb[7].mxu1  ;;  %s12164_s0 = sld [smem:[#allocation68_spill]] }
 0x984   : > { %v2425_v56 = vpop.f32.mrb[10].mxu0 }
 0x985   : > { %2510 = vrot.lane.b32.xlu1 %v2425_v56, %s12045_s11  ;;  %v8775_v57 = vpop.f32.mrb[11].mxu0  ;;  %s12162_s11 = smov %s12161_s15  ;;  %s12167_s15 = smov 64  }
 0x986   : > { %v9509_v20 = vld [vmem:[%s12162_s11 + $0x8] sm:$0xff]  }
 0x987   : > { %s12165_s2 = smov %s12164_s0  ;;  %v8333_v33 = vld [vmem:[%s12164_s0] ss:$0 sm:$0xff]  ;;  %s12166_s0 = smov 104  }
 0x988   : > { %v2501_v58 = vpop.f32.mrb[8].mxu1 }
 0x989   : > { %2514 = vrot.lane.b32.xlu0 %v2501_v58, %s12047_s23  ;;  %v8780_v59 = vpop.f32.mrb[9].mxu1  ;;  %s12163_s23 = sld [smem:[#allocation65_spill]] }
 0x98f   : > { %v9511_v21 = vld [vmem:[%s12163_s23 + $0x8] sm:$0xff]   ;;  %v9512_v37 = vld [vmem:[%s12163_s23 + $0x10] sm:$0xff]   ;;  %v9513_v38 = vld [vmem:[%s12163_s23 + $0x18] sm:$0xff]  }
 0x9f3   : > { %v2507_v60 = vpop.permute.xlu0 %2506 }
 0x9f4   : > { %v2517_v62 = vsel %vm1840_vm5, %v2273_v49, %v2507_v60 }
 0x9f7   : > { %v2511_v61 = vpop.permute.xlu1 %2510 }
 0x9f8   : > { %v2518_v63 = vsel %vm1644_vm1, %v2517_v62, %v2511_v61  ;;  %v9514_v61 = vld [vmem:[%s12157_s8 + $0x10] sm:$0xff]   ;;  %v9515_v62 = vld [vmem:[%s12157_s8 + $0x18] sm:$0xff]   ;;  %s1635_s8 = scalar_lea.vmem %s12178_s6, %s11184_s26  ;;  %s12179_s6 = sld [smem:[#allocation72_spill]] }
 0x9f9   : > { %s12180_s26 = sld [smem:[#allocation74_spill]] }
 0x9fb   : > { %v2515_v2 = vpop.permute.xlu0 %2514 }
 0x9fc   : > { %v2520_v3 = vsel %vm2519_vm8, %v2518_v63, %v2515_v2 }
 0x9fd   : > { %v2521_v4 = vpack.c.bf16 %v2520_v3, %v2520_v3 }
 0x9ff   : > { %8786 = vmatmul.mubr.msk.bf16.vlgmr.msra.gmra.mrb[12].mxu1 %vm1723_vm2, %v2521_v4 }
 0xa00   : > { %8793 = vmatprep.mubr.msk.bf16.mxu1 %vm10520_vm0, %v10521_v1  ;;  %8790 = vmatpush3.bf16.msra.mxu1 %v9508_v19 }
 0xa01   : > { %8791 = vmatprep.subr.bf16.mxu1 %v10521_v1 }
 0xa04   : > { %8792 = vmatpush3.bf16.msra.mxu1 %v9509_v20 }
 0xa05   : > { %8809 = vmatprep.subr.bf16.mxu1 %v10521_v1 }
 0xad2   : > { %v2577_v6 = vpop.f32.mrb[12].mxu1 }
 0xad3   : > { %v2578_v7 = vadd.f32 %v8328_v5, %v2577_v6  ;;  %v8787_v8 = vpop.f32.mrb[13].mxu1 }
 0xad4   : > { %v2580_v9 = vpop.f32.mrb[14].mxu1 }
 0xad5   : > { %v11313_v11 = vadd.f32 %v2578_v7, %v11195_v10  ;;  %v8788_v12 = vpop.f32.mrb[15].mxu1  ;;  %v9510_v10 = vld [vmem:[%s12163_s23] sm:$0xff]   ;;  %v8344_v9 = vld [vmem:[#allocation10 + $0x1] ss:$0 sm:$0xff] }
 0xad6   : > { %8798 = vmatpush3.bf16.msra.mxu0 %v9510_v10 }
 0xad7   : > { %v2586_v13 = vsel %vm1723_vm2, %v11313_v11, 0.0  ;;  %8799 = vmatprep.subr.bf16.mxu0 %v10521_v1 }
 0xad8   : > { %2587 = vadd.xlane.f32.xlu1 %v2586_v13  ;;  %v8345_v13 = vld [vmem:[#allocation11 + $0x1] ss:$0 sm:$0xff] }
 0xada   : > { %8800 = vmatpush3.bf16.msra.mxu0 %v9511_v21 }
 0xadb   : > { %8801 = vmatprep.subr.bf16.mxu0 %v10521_v1 }
 0xade   : > { %8802 = vmatpush3.bf16.msra.mxu0 %v9512_v37 }
 0xadf   : > { %8803 = vmatprep.subr.bf16.mxu0 %v10521_v1 }
 0xae2   : > { %8804 = vmatpush3.bf16.msra.mxu0 %v9513_v38 }
 0xae3   : > { %8827 = vmatprep.subr.mxu0 %v10521_v1 }
 0xb65   : > { %v2588_v14 = vpop.xlane.xlu1 %2587 }
 0xb66   : > { %v2589_v15 = vmul.f32 0.03125, %v2588_v14 }
 0xb68   : > { %v2590_v16 = vsub.f32 %v11313_v11, %v2589_v15 }
 0xb6a   : > { %v2591_v17 = vmul.f32 %v2590_v16, %v2590_v16  ;;  %v2611_v31 = vmul.f32 %v8332_v30, %v2590_v16 }
 0xb6c   : > { %v2592_v18 = vsel %vm1723_vm2, %v2591_v17, 0.0  ;;  %v8354_v17 = vld [vmem:[#allocation2 + $0x1] ss:$0 sm:$0xff] }
 0xb6d   : > { %2593 = vadd.xlane.f32.xlu0 %v2592_v18 }
 0xbfa   : > { %v2594_v22 = vpop.xlane.xlu0 %2593 }
 0xbfb   : > { %v2595_v23 = vmul.f32 0.032258064, %v2594_v22 }
 0xbfd   : > { %9572 = vrsqrt.f32 %v2595_v23  ;;  %vm2598_vm9 = vcmp.eq.f32.partialorder %v2595_v23, inf  ;;  %v2601_v26 = vand.u32 2147483648, %v2595_v23  ;;  %vm2600_vm10 = vcmp.eq.f32.partialorder %v2595_v23, 0.0 }
 0xc07   : > { %v9573_v24 = vpop.eup %9572 }
 0xc08   : > { %v2597_v25 = vmul.f32 %v9573_v24, %v2595_v23 }
 0xc0a   : > { %v2599_v27 = vsel %vm2598_vm9, %v2595_v23, %v2597_v25 }
 0xc0b   : > { %v2602_v28 = vsel %vm2600_vm10, %v2601_v26, %v2599_v27 }
 0xc0c   : > { %v2603_v29 = vadd.f32 1e-06, %v2602_v28 }
 0xc0e   : > { %9574 = vrcp.f32 %v2603_v29 }
 0xc18   : > { %v9575_v32 = vpop.eup %9574 }
 0xc19   : > { %v2612_v34 = vmul.f32 %v9575_v32, %v2611_v31 }
 0xc1b   : > { %v2619_v35 = vadd.f32 %v8333_v33, %v2612_v34 }
 0xc1d   : > { %v2634_v36 = vpack.c.bf16 %v2619_v35, %v2619_v35 }
 0xc1f   : > { %8794 = vmatmul.mubr.msk.bf16.vlgmr.msra.gmra.mrb[16].mxu1 %vm1723_vm2, %v2634_v36 }
 0xc20   : > { %8813 = vmatprep.mubr.msk.bf16.mxu1 %vm10520_vm0, %v10521_v1  ;;  %8810 = vmatpush3.bf16.msra.mxu1 %v9514_v61 }
 0xc21   : > { %8811 = vmatprep.subr.bf16.mxu1 %v10521_v1 }
 0xc24   : > { %8812 = vmatpush3.bf16.msra.mxu1 %v9515_v62 }
 0xc25   : > { %8817 = vmatprep.subr.mxu1 %v10521_v1 }
 0xcf2   : > { %v2690_v41 = vpop.f32.mrb[16].mxu1 }
 0xcf3   : > { %v2691_v40 = vadd.f32 %v8334_v39, %v2690_v41  ;;  %v8795_v42 = vpop.f32.mrb[17].mxu1 }
 0xcf4   : > { %v2693_v43 = vpop.f32.mrb[18].mxu1 }
 0xcf5   : > { %v2696_v44 = vmax.f32 %v2691_v40, 0.0  ;;  %v8796_v45 = vpop.f32.mrb[19].mxu1 }
 0xcf7   : > { %v2697_v46 = vpack.c.bf16 %v2696_v44, %v2696_v44 }
 0xcf9   : > { %8806 = vmatmul.mubr.msk.bf16.vlgmr.msra.gmra.mrb[12].mxu0 %vm2728_vm11, %v2697_v46 }
 0xcfa   : > { %8829 = vmatprep.mubr.msk.f32.mxu0 %vm10520_vm0, %v10521_v1 }
 0xdcc   : > { %v2766_v48 = vpop.f32.mrb[12].mxu0 }
 0xdcd   : > { %v2767_v49 = vadd.f32 %v8338_v47, %v2766_v48  ;;  %v8807_v50 = vpop.f32.mrb[13].mxu0 }
 0xdce   : > { %v2769_v51 = vpop.f32.mrb[14].mxu0 }
 0xdcf   : > { %v11339_v52 = vadd.f32 %v2767_v49, %v11313_v11  ;;  %v8808_v54 = vpop.f32.mrb[15].mxu0 }
 0xdd1   : > { %v2777_v55 = vsel %vm1723_vm2, %v11339_v52, 0.0 }
 0xdd2   : > { %2778 = vadd.xlane.f32.xlu0 %v2777_v55 }
 0xe5f   : > { %v2779_v56 = vpop.xlane.xlu0 %2778 }
 0xe60   : > { %v2780_v57 = vmul.f32 0.03125, %v2779_v56 }
 0xe62   : > { %v2781_v58 = vsub.f32 %v11339_v52, %v2780_v57 }
 0xe64   : > { %v2782_v59 = vmul.f32 %v2781_v58, %v2781_v58  ;;  %v2802_v11 = vmul.f32 %v8344_v9, %v2781_v58 }
 0xe66   : > { %v2783_v60 = vsel %vm1723_vm2, %v2782_v59, 0.0 }
 0xe67   : > { %2784 = vadd.xlane.f32.xlu1 %v2783_v60 }
 0xef4   : > { %v2785_v63 = vpop.xlane.xlu1 %2784 }
 0xef5   : > { %v2786_v2 = vmul.f32 0.032258064, %v2785_v63 }
 0xef7   : > { %9576 = vrsqrt.f32 %v2786_v2  ;;  %vm2789_vm12 = vcmp.eq.f32.partialorder %v2786_v2, inf  ;;  %v2792_v5 = vand.u32 2147483648, %v2786_v2  ;;  %vm2791_vm13 = vcmp.eq.f32.partialorder %v2786_v2, 0.0 }
 0xf01   : > { %v9577_v3 = vpop.eup %9576 }
 0xf02   : > { %v2788_v4 = vmul.f32 %v9577_v3, %v2786_v2 }
 0xf04   : > { %v2790_v6 = vsel %vm2789_vm12, %v2786_v2, %v2788_v4 }
 0xf05   : > { %v2793_v7 = vsel %vm2791_vm13, %v2792_v5, %v2790_v6 }
 0xf06   : > { %v2794_v8 = vadd.f32 1e-06, %v2793_v7 }
 0xf08   : > { %9578 = vrcp.f32 %v2794_v8 }
 0xf12   : > { %v9579_v12 = vpop.eup %9578 }
 0xf13   : > { %v2803_v14 = vmul.f32 %v9579_v12, %v2802_v11 }
 0xf15   : > { %v2810_v15 = vadd.f32 %v8345_v13, %v2803_v14 }
 0xf17   : > { %v2825_v16 = vpack.c.bf16 %v2810_v15, %v2810_v15 }
 0xf19   : > { %8814 = vmatmul.mubr.msk.bf16.vlgmr.msra.gmra.mrb[20].mxu1 %vm1723_vm2, %v2825_v16 }
 0xf1a   : > { %8819 = vmatprep.mubr.msk.f32.mxu1 %vm10520_vm0, %v10521_v1 }
 0xfec   : > { %v2881_v18 = vpop.f32.mrb[20].mxu1 }
 0xfed   : > { %v2882_v19 = vadd.f32 %v8354_v17, %v2881_v18  ;;  %v8815_v20 = vpop.f32.mrb[21].mxu1 }
 0xfee   : > { %v2884_v10 = vpop.f32.mrb[22].mxu1 }
 0xfef   : > { %2890 = vrot.lane.b32.xlu1 %v2882_v19, %s12057_s9  ;;  %2888 = vrot.lane.b32.xlu0 %v2882_v19, %s12055_s10  ;;  %v8816_v21 = vpop.f32.mrb[23].mxu1  ;;  %s12169_s10 = smov 8   ;;  %s12170_s9 = smov 24  }
 0xff3   : > { %2892 = vrot.lane.b32.xlu1 %v2882_v19, %s12166_s0  ;;  %2894 = vrot.lane.b32.xlu0 %v2882_v19, %s12053_s18 }
0x1061   : > { %v11356_v22 = vpop.permute.xlu1 %2890  ;;  %v11358_v23 = vpop.permute.xlu0 %2888 }
0x1062   : > { %3046 = vrot.lane.b32.xlu0 %v11356_v22, %s12053_s18  ;;  %2970 = vrot.lane.b32.xlu1 %v11358_v23, %s12053_s18 }
0x1065   : > { %v11364_v24 = vpop.permute.xlu1 %2892  ;;  %v2895_v25 = vpop.permute.xlu0 %2894 }
0x1066   : > { %3122 = vrot.lane.b32.xlu1 %v11364_v24, %s12053_s18  ;;  %8818 = vmatpush3.xpose.msk.msra.mxu1 %vm1840_vm5, %v2895_v25  ;;  %s12168_s18 = smov 16  }
0x1067   : > { %8822 = vmatprep.subr.mxu1 %v10521_v1 }
0x1069   : > { %8820 = vmatmul.mubr.msk.f32.vlgmr.msra.gmra.mrb[10].mxu1 %vm1840_vm5, %v2882_v19 }
0x106a   : > { %8824 = vmatprep.mubr.msk.f32.mxu1 %vm10520_vm0, %v10521_v1 }
0x10d4   : > { %v2971_v26 = vpop.permute.xlu1 %2970  ;;  %v3047_v27 = vpop.permute.xlu0 %3046 }
0x10d5   : > { %8823 = vmatpush3.xpose.msk.msra.mxu1 %vm1840_vm5, %v2971_v26  ;;  %8828 = vmatpush3.xpose.msk.msra.mxu0 %vm1840_vm5, %v3047_v27  ;;  %v9516_v27 = vld [vmem:[%s12160_s28 + $0x10] sm:$0xff]  }
0x10d6   : > { %8832 = vmatprep.subr.mxu1 %v10521_v1  ;;  %8837 = vmatprep.subr.mxu0 %v10521_v1 }
0x10d8   : > { %v3123_v28 = vpop.permute.xlu1 %3122  ;;  %8825 = vmatmul.mubr.msk.f32.vlgmr.msra.gmra.mrb[24].mxu1 %vm1840_vm5, %v11358_v23  ;;  %8830 = vmatmul.mubr.msk.f32.vlgmr.msra.gmra.mrb[16].mxu0 %vm1840_vm5, %v11356_v22 }
0x10d9   : > { %8833 = vmatpush3.xpose.msk.msra.mxu1 %vm1840_vm5, %v3123_v28  ;;  %8834 = vmatprep.mubr.msk.f32.mxu1 %vm10520_vm0, %v10521_v1  ;;  %v9517_v28 = vld [vmem:[%s12160_s28 + $0x18] sm:$0xff]  }
0x10da   : > { %8839 = vmatprep.mubr.msk.f32.mxu0 %vm10520_vm0, %v10521_v1  ;;  %8842 = vmatprep.subr.mxu1 %v10521_v1 }
0x10dc   : > { %8835 = vmatmul.mubr.msk.f32.vlgmr.msra.gmra.mrb[26].mxu1 %vm1840_vm5, %v11364_v24 }
0x10dd   : > { %8844 = vmatprep.mubr.msk.f32.mxu1 %vm10520_vm0, %v10521_v1 }
0x113c   : > { %v2966_v29 = vpop.f32.mrb[10].mxu1 }
0x113d   : > { %v3198_v30 = vmul.f32 0.35355338, %v2966_v29  ;;  %v8821_v31 = vpop.f32.mrb[11].mxu1 }
0x113f   : > { %v3202_v32 = vsel %vm2152_vm7, %v3198_v30, -1e+09 }
0x1140   : > { %v3206_v33 = vsel %vm1840_vm5, %v3202_v32, -inf }
0x1141   : > { %3207 = vmax.xlane.f32.xlu0 %v3206_v33 }
0x11ab   : > { %v3042_v34 = vpop.f32.mrb[24].mxu1  ;;  %v3118_v35 = vpop.f32.mrb[16].mxu0 }
0x11ac   : > { %v3199_v36 = vmul.f32 0.35355338, %v3042_v34  ;;  %v3200_v37 = vmul.f32 0.35355338, %v3118_v35  ;;  %v8826_v38 = vpop.f32.mrb[25].mxu1  ;;  %v8831_v39 = vpop.f32.mrb[17].mxu0 }
0x11ae   : > { %v3204_v41 = vsel %vm2152_vm7, %v3200_v37, -1e+09  ;;  %v3203_v40 = vsel %vm2152_vm7, %v3199_v36, -1e+09 }
0x11af   : > { %v3194_v42 = vpop.f32.mrb[26].mxu1  ;;  %v3212_v43 = vsel %vm1840_vm5, %v3204_v41, -inf  ;;  %v3209_v44 = vsel %vm1840_vm5, %v3203_v40, -inf }
0x11b0   : > { %v3201_v45 = vmul.f32 0.35355338, %v3194_v42  ;;  %3213 = vmax.xlane.f32.xlu0 %v3212_v43  ;;  %3210 = vmax.xlane.f32.xlu1 %v3209_v44  ;;  %v8836_v46 = vpop.f32.mrb[27].mxu1  ;;  %v8370_v42 = vld [vmem:[#allocation5 + $0x1] ss:$0 sm:$0xff] }
0x11b2   : > { %v3205_v47 = vsel %vm2152_vm7, %v3201_v45, -1e+09 }
0x11b3   : > { %v3215_v48 = vsel %vm1840_vm5, %v3205_v47, -inf }
0x11b4   : > { %3216 = vmax.xlane.f32.xlu0 %v3215_v48 }
0x11c1   : > { %3250 = vrot.lane.b32.xlu1 %v2882_v19, %s12167_s15 }
0x11ce   : > { %v3208_v49 = vpop.xlane.xlu0 %3207 }
0x11cf   : > { %v3218_v50 = vsub.f32 %v3202_v32, %v3208_v49 }
0x11d1   : > { %v3222_v51 = vmul.f32 1.442695, %v3218_v50 }
0x11d3   : > { %9580 = vpow2.f32 %v3222_v51 }
0x11dd   : > { %v9581_v54 = vpop.eup %9580 }
0x11de   : > { %v3230_v55 = vsel %vm1840_vm5, %v9581_v54, 0.0 }
0x11e5   : > { %3231 = vadd.xlane.f32.xlu1 %v3230_v55 }
0x123d   : > { %v3214_v56 = vpop.xlane.xlu0 %3213  ;;  %v3211_v57 = vpop.xlane.xlu1 %3210 }
0x123e   : > { %v3220_v58 = vsub.f32 %v3204_v41, %v3214_v56  ;;  %v3219_v59 = vsub.f32 %v3203_v40, %v3211_v57  ;;  %v9518_v57 = vld [vmem:[%s12162_s11 + $0x10] sm:$0xff]  }
0x1240   : > { %v3226_v60 = vmul.f32 1.442695, %v3220_v58  ;;  %v3224_v61 = vmul.f32 1.442695, %v3219_v59  ;;  %v9519_v58 = vld [vmem:[%s12162_s11 + $0x18] sm:$0xff]   ;;  %v9521_v59 = vld [vmem:[%s12163_s23 + $0x28] sm:$0xff]  }
0x1241   : > { %v3251_v62 = vpop.permute.xlu1 %3250  ;;  %v3217_v63 = vpop.xlane.xlu0 %3216  ;;  %s12182_s11 = sld [smem:[#allocation77_spill]] }
0x1242   : > { %9582 = vpow2.f32 %v3226_v60  ;;  %v3221_v2 = vsub.f32 %v3205_v47, %v3217_v63  ;;  %8838 = vmatpush3.msra.mxu0 %v3251_v62 }
0x1243   : > { %9584 = vpow2.f32 %v3224_v61  ;;  %8847 = vmatprep.subr.mxu0 %v10521_v1 }
0x1244   : > { %v3228_v3 = vmul.f32 1.442695, %v3221_v2 }
0x1246   : > { %9586 = vpow2.f32 %v3228_v3 }
0x124c   : > { %v9583_v4 = vpop.eup %9582 }
0x124d   : > { %v9585_v5 = vpop.eup %9584  ;;  %v3236_v6 = vsel %vm1840_vm5, %v9583_v4, 0.0 }
0x124e   : > { %3237 = vadd.xlane.f32.xlu1 %v3236_v6  ;;  %v3233_v7 = vsel %vm1840_vm5, %v9585_v5, 0.0 }
0x124f   : > { %3234 = vadd.xlane.f32.xlu0 %v3233_v7 }
0x1250   : > { %v9587_v8 = vpop.eup %9586 }
0x1251   : > { %v3239_v9 = vsel %vm1840_vm5, %v9587_v8, 0.0 }
0x1253   : > { %3240 = vadd.xlane.f32.xlu0 %v3239_v9 }
0x125f   : > { %3402 = vrot.lane.b32.xlu1 %v11356_v22, %s12167_s15 }
0x1263   : > { %3478 = vrot.lane.b32.xlu1 %v11364_v24, %s12167_s15 }
0x1269   : > { %3326 = vrot.lane.b32.xlu0 %v11358_v23, %s12167_s15 }
0x1272   : > { %v3232_v11 = vpop.xlane.xlu1 %3231 }
0x1273   : > { %9588 = vrcp.f32 %v3232_v11  ;;  %v3863_v11 = vld [vmem:[%s12171_s1] sm:$0xff] }
0x127d   : > { %v9589_v12 = vpop.eup %9588 }
0x127e   : > { %v3246_v13 = vmul.f32 %v9589_v12, %v9581_v54  ;;  %v3864_v12 = vld [vmem:[%s12171_s1 + $0x8] sm:$0xff]  ;;  %s12173_s1 = sld [smem:[#allocation57_spill]] }
0x1280   : > { %8840 = vmatmul.mubr.msk.f32.vlgmr.msra.gmra.mrb[18].mxu0 %vm1840_vm5, %v3246_v13 }
0x1281   : > { %8849 = vmatprep.mubr.msk.f32.mxu0 %vm10520_vm0, %v10521_v1 }
0x12db   : > { %v3238_v14 = vpop.xlane.xlu1 %3237 }
0x12dc   : > { %9590 = vrcp.f32 %v3238_v14  ;;  %v3235_v15 = vpop.xlane.xlu0 %3234  ;;  %v9176_v14 = vpack.c.bf16 %v3864_v12, %v3863_v11  ;;  %v11534_v11 = vld [vmem:[%s1635_s8] sm:$0xff]  ;;  %s12181_s8 = sld [smem:[#allocation75_spill]] }
0x12dd   : > { %9592 = vrcp.f32 %v3235_v15  ;;  %vm1640_vm6 = vcmp.gt.f32.partialorder %v11534_v11, 0.0 }
0x12df   : > { %v3403_v16 = vpop.permute.xlu1 %3402 }
0x12e0   : > { %v3241_v17 = vpop.xlane.xlu0 %3240  ;;  %8848 = vmatpush3.msra.mxu0 %v3403_v16  ;;  %v3862_v16 = vld [vmem:[%s1628_s5] sm:$0xff]  ;;  %s12174_s5 = sld [smem:[#allocation71_spill]] }
0x12e1   : > { %9594 = vrcp.f32 %v3241_v17  ;;  %8857 = vmatprep.subr.bf16.mxu0 %v10521_v1  ;;  %v9522_v17 = vld [vmem:[%s12163_s23 + $0x30] sm:$0xff]  }
0x12e3   : > { %v3479_v22 = vpop.permute.xlu1 %3478 }
0x12e4   : > { %v3327_v18 = vpop.permute.xlu0 %3326 }
0x12e5   : > { %8843 = vmatpush3.msra.mxu1 %v3327_v18  ;;  %v9523_v18 = vld [vmem:[%s12163_s23 + $0x38] sm:$0xff]  }
0x12e6   : > { %v9591_v19 = vpop.eup %9590  ;;  %8852 = vmatprep.subr.mxu1 %v10521_v1 }
0x12e7   : > { %v9593_v20 = vpop.eup %9592  ;;  %v3248_v10 = vmul.f32 %v9591_v19, %v9583_v4  ;;  %v8389_v19 = vld [vmem:[#allocation7 + $0x1] ss:$0 sm:$0xff] }
0x12e8   : > { %v3247_v21 = vmul.f32 %v9593_v20, %v9585_v5  ;;  %v8375_v5 = vld [vmem:[#allocation13 + $0x1] ss:$0 sm:$0xff] }
0x12e9   : > { %8850 = vmatmul.mubr.msk.f32.vlgmr.msra.gmra.mrb[20].mxu0 %vm1840_vm5, %v3248_v10 }
0x12ea   : > { %8845 = vmatmul.mubr.msk.f32.vlgmr.msra.gmra.mrb[28].mxu1 %vm1840_vm5, %v3247_v21  ;;  %8861 = vmatprep.mubr.msk.bf16.mxu0 %vm10520_vm0, %v10521_v1 }
0x12eb   : > { %v9595_v23 = vpop.eup %9594  ;;  %8853 = vmatpush3.msra.mxu1 %v3479_v22  ;;  %8854 = vmatprep.mubr.msk.f32.mxu1 %vm10520_vm0, %v10521_v1 }
0x12ec   : > { %v3249_v24 = vmul.f32 %v9595_v23, %v9587_v8  ;;  %8865 = vmatprep.subr.bf16.mxu1 %v10521_v1  ;;  %8858 = vmatpush3.bf16.msra.mxu0 %v9516_v27  ;;  %v8376_v8 = vld [vmem:[%s12165_s2 + $0x1] ss:$0 sm:$0xff]  ;;  %s12177_s2 = smov 96  }
0x12ed   : > { %8859 = vmatprep.subr.bf16.mxu0 %v10521_v1  ;;  %v3939_v27 = vld [vmem:[%s12173_s1] sm:$0xff]  ;;  %s12176_s1 = smov 120  }
0x12ee   : > { %8855 = vmatmul.mubr.msk.f32.vlgmr.msra.gmra.mrb[30].mxu1 %vm1840_vm5, %v3249_v24 }
0x12ef   : > { %8869 = vmatprep.mubr.msk.bf16.mxu1 %vm10520_vm0, %v10521_v1  ;;  %8866 = vmatpush3.bf16.msra.mxu1 %v9518_v57  ;;  %v8403_v57 = vld [vmem:[#allocation28] ss:$0 sm:$0xff] }
0x12f0   : > { %8860 = vmatpush3.bf16.msra.mxu0 %v9517_v28  ;;  %8867 = vmatprep.subr.bf16.mxu1 %v10521_v1 }
0x12f1   : > { %8873 = vmatprep.subr.bf16.mxu0 %v10521_v1 }
0x12f3   : > { %8868 = vmatpush3.bf16.msra.mxu1 %v9519_v58 }
0x12f4   : > { %9175 = vmatprep.subr.bf16.mxu1 %v10519_v0 }
0x1353   : > { %v3322_v25 = vpop.f32.mrb[18].mxu0 }
0x1354   : > { %v8841_v26 = vpop.f32.mrb[19].mxu0 }
0x13bc   : > { %v3474_v29 = vpop.f32.mrb[20].mxu0 }
0x13bd   : > { %v3398_v30 = vpop.f32.mrb[28].mxu1  ;;  %3559 = vrot.lane.b32.xlu1 %v3474_v29, %s12168_s18  ;;  %v8851_v31 = vpop.f32.mrb[21].mxu0 }
0x13be   : > { %3555 = vrot.lane.b32.xlu0 %v3398_v30, %s12169_s10  ;;  %v8846_v32 = vpop.f32.mrb[29].mxu1 }
0x13c1   : > { %v3550_v33 = vpop.f32.mrb[30].mxu1 }
0x13c2   : > { %3563 = vrot.lane.b32.xlu0 %v3550_v33, %s12170_s9  ;;  %v8856_v34 = vpop.f32.mrb[31].mxu1 }
0x142f   : > { %v3560_v36 = vpop.permute.xlu1 %3559 }
0x1430   : > { %v3556_v35 = vpop.permute.xlu0 %3555 }
0x1431   : > { %v3566_v37 = vsel %vm1840_vm5, %v3322_v25, %v3556_v35 }
0x1432   : > { %v3567_v38 = vsel %vm1644_vm1, %v3566_v37, %v3560_v36  ;;  %v9524_v37 = vld [vmem:[%s12174_s5] sm:$0xff]  }
0x1434   : > { %v3564_v39 = vpop.permute.xlu0 %3563 }
0x1435   : > { %v3568_v41 = vsel %vm2519_vm8, %v3567_v38, %v3564_v39  ;;  %v9525_v38 = vld [vmem:[%s12174_s5 + $0x8] sm:$0xff]  }
0x1436   : > { %v3569_v40 = vpack.c.bf16 %v3568_v41, %v3568_v41 }
0x1438   : > { %8862 = vmatmul.mubr.msk.bf16.vlgmr.msra.gmra.mrb[24].mxu0 %vm1723_vm2, %v3569_v40 }
0x1439   : > { %8881 = vmatprep.mubr.msk.bf16.mxu0 %vm10520_vm0, %v10521_v1 }
0x150b   : > { %v3625_v43 = vpop.f32.mrb[24].mxu0 }
0x150c   : > { %v3626_v44 = vadd.f32 %v8370_v42, %v3625_v43  ;;  %v8863_v45 = vpop.f32.mrb[25].mxu0 }
0x150d   : > { %v3628_v46 = vpop.f32.mrb[26].mxu0 }
0x150e   : > { %v11444_v47 = vadd.f32 %v3626_v44, %v11339_v52  ;;  %v8864_v48 = vpop.f32.mrb[27].mxu0  ;;  %v9520_v52 = vld [vmem:[%s12163_s23 + $0x20] sm:$0xff]  }
0x150f   : > { %8874 = vmatpush3.bf16.msra.mxu0 %v9520_v52 }
0x1510   : > { %v3636_v49 = vsel %vm1723_vm2, %v11444_v47, 0.0  ;;  %8875 = vmatprep.subr.bf16.mxu0 %v10521_v1 }
0x1511   : > { %3637 = vadd.xlane.f32.xlu1 %v3636_v49 }
0x1513   : > { %8876 = vmatpush3.bf16.msra.mxu0 %v9521_v59 }
0x1514   : > { %8877 = vmatprep.subr.bf16.mxu0 %v10521_v1 }
0x1517   : > { %8878 = vmatpush3.bf16.msra.mxu0 %v9522_v17 }
0x1518   : > { %8879 = vmatprep.subr.bf16.mxu0 %v10521_v1 }
0x151b   : > { %8880 = vmatpush3.bf16.msra.mxu0 %v9523_v18 }
0x151c   : > { %8900 = vmatprep.subr.mxu0 %v10521_v1 }
0x159e   : > { %v3638_v50 = vpop.xlane.xlu1 %3637 }
0x159f   : > { %v3639_v51 = vmul.f32 0.03125, %v3638_v50 }
0x15a1   : > { %v3640_v54 = vsub.f32 %v11444_v47, %v3639_v51 }
0x15a3   : > { %v3641_v55 = vmul.f32 %v3640_v54, %v3640_v54  ;;  %v3661_v6 = vmul.f32 %v8375_v5, %v3640_v54  ;;  %v8402_v54 = vld [vmem:[#allocation26] ss:$0 sm:$0xff] }
0x15a5   : > { %v3642_v56 = vsel %vm1723_vm2, %v3641_v55, 0.0 }
0x15a6   : > { %3643 = vadd.xlane.f32.xlu0 %v3642_v56 }
0x1633   : > { %v3644_v60 = vpop.xlane.xlu0 %3643 }
0x1634   : > { %v3645_v61 = vmul.f32 0.032258064, %v3644_v60  ;;  %v8404_v60 = vld [vmem:[#allocation17] ss:$0 sm:$0xff] }
0x1636   : > { %9596 = vrsqrt.f32 %v3645_v61  ;;  %vm3648_vm14 = vcmp.eq.f32.partialorder %v3645_v61, inf  ;;  %v3651_v2 = vand.u32 2147483648, %v3645_v61  ;;  %vm3650_vm15 = vcmp.eq.f32.partialorder %v3645_v61, 0.0 }
0x1640   : > { %v9597_v62 = vpop.eup %9596 }
0x1641   : > { %v3647_v63 = vmul.f32 %v9597_v62, %v3645_v61 }
0x1643   : > { %v3649_v3 = vsel %vm3648_vm14, %v3645_v61, %v3647_v63 }
0x1644   : > { %v3652_v0 = vsel %vm3650_vm15, %v3651_v2, %v3649_v3 }
0x1645   : > { %v3653_v4 = vadd.f32 1e-06, %v3652_v0 }
0x1647   : > { %9598 = vrcp.f32 %v3653_v4 }
0x1651   : > { %v9599_v7 = vpop.eup %9598 }
0x1652   : > { %v3662_v9 = vmul.f32 %v9599_v7, %v3661_v6 }
0x1654   : > { %v3669_v13 = vadd.f32 %v8376_v8, %v3662_v9 }
0x1656   : > { %v3688_v15 = vpack.c.bf16 %v3669_v13, %v3669_v13 }
0x1658   : > { %8870 = vmatmul.mubr.msk.bf16.vlgmr.msra.gmra.mrb[32].mxu1 %vm1723_vm2, %v3688_v15 }
0x1659   : > { %9177 = vmatpush3.bf16.msra.mxu1 %v9176_v14  ;;  %8889 = vmatprep.mubr.msk.f32.mxu1 %vm10520_vm0, %v10521_v1 }
0x165a   : > { %8892 = vmatprep.subr.bf16.mxu1 %v10521_v1 }
0x1660   : > { %8890 = vmatmul.mubr.msk.f32.vlgmr.msra.gmra.mrb[36].mxu1 %vm1644_vm1, %v3862_v16 }
0x1661   : > { %8896 = vmatprep.mubr.msk.bf16.mxu1 %vm10520_vm0, %v10521_v1  ;;  %8893 = vmatpush3.bf16.msra.mxu1 %v9524_v37 }
0x1662   : > { %8894 = vmatprep.subr.bf16.mxu1 %v10521_v1 }
0x1665   : > { %8895 = vmatpush3.bf16.msra.mxu1 %v9525_v38 }
0x1666   : > { %8905 = vmatprep.subr.mxu1 %v10521_v1 }
0x172b   : > { %v3744_v20 = vpop.f32.mrb[32].mxu1 }
0x172c   : > { %v3745_v10 = vadd.f32 %v8389_v19, %v3744_v20  ;;  %v8871_v21 = vpop.f32.mrb[33].mxu1 }
0x172d   : > { %v3747_v22 = vpop.f32.mrb[34].mxu1 }
0x172e   : > { %v3750_v23 = vmax.f32 %v3745_v10, 0.0  ;;  %v8872_v24 = vpop.f32.mrb[35].mxu1 }
0x1730   : > { %v3751_v25 = vpack.c.bf16 %v3750_v23, %v3750_v23 }
0x1732   : > { %8882 = vmatmul.mubr.msk.bf16.vlgmr.msra.gmra.mrb[28].mxu0 %vm2728_vm11, %v3751_v25 }
0x1733   : > { %v3934_v26 = vpop.f32.mrb[36].mxu1  ;;  %8902 = vmatprep.mubr.msk.f32.mxu0 %vm10520_vm0, %v10521_v1 }
0x1734   : > { %v3938_v28 = vmul.f32 5.656854, %v3934_v26  ;;  %v8891_v29 = vpop.f32.mrb[37].mxu1 }
0x1736   : > { %v11478_v30 = vadd.f32 %v3939_v27, %v3938_v28 }
0x1738   : > { %v3943_v31 = vsel %vm1723_vm2, %v11478_v30, 0.0 }
0x1739   : > { %3944 = vadd.xlane.f32.xlu0 %v3943_v31 }
0x17c6   : > { %v3945_v32 = vpop.xlane.xlu0 %3944 }
0x17c7   : > { %v3946_v33 = vmul.f32 0.03125, %v3945_v32 }
0x17c9   : > { %v3947_v34 = vsub.f32 %v11478_v30, %v3946_v33 }
0x17cb   : > { %v3948_v35 = vmul.f32 %v3947_v34, %v3947_v34  ;;  %v3968_v55 = vmul.f32 %v8402_v54, %v3947_v34 }
0x17cd   : > { %v3949_v36 = vsel %vm1723_vm2, %v3948_v35, 0.0 }
0x17ce   : > { %3950 = vadd.xlane.f32.xlu1 %v3949_v36 }
0x1805   : > { %v11488_v39 = vpop.f32.mrb[28].mxu0 }
0x1806   : > { %v8883_v41 = vpop.f32.mrb[29].mxu0 }
0x1807   : > { %v3822_v40 = vpop.f32.mrb[30].mxu0 }
0x1808   : > { %v8884_v42 = vpop.f32.mrb[31].mxu0 }
0x185b   : > { %v3951_v43 = vpop.xlane.xlu1 %3950 }
0x185c   : > { %v3952_v44 = vmul.f32 0.032258064, %v3951_v43 }
0x185e   : > { %9600 = vrsqrt.f32 %v3952_v44  ;;  %vm3955_vm3 = vcmp.eq.f32.partialorder %v3952_v44, inf  ;;  %v3958_v48 = vand.u32 2147483648, %v3952_v44  ;;  %vm3957_vm4 = vcmp.eq.f32.partialorder %v3952_v44, 0.0 }
0x1868   : > { %v9601_v45 = vpop.eup %9600 }
0x1869   : > { %v3954_v46 = vmul.f32 %v9601_v45, %v3952_v44 }
0x186b   : > { %v3956_v49 = vsel %vm3955_vm3, %v3952_v44, %v3954_v46 }
0x186c   : > { %v3959_v50 = vsel %vm3957_vm4, %v3958_v48, %v3956_v49 }
0x186d   : > { %v3960_v51 = vadd.f32 1e-06, %v3959_v50 }
0x186f   : > { %9602 = vrcp.f32 %v3960_v51 }
0x1879   : > { %v9603_v56 = vpop.eup %9602 }
0x187a   : > { %v3969_v58 = vmul.f32 %v9603_v56, %v3968_v55 }
0x187c   : > { %v3976_v52 = vadd.f32 %v8403_v57, %v3969_v58 }
0x187e   : > { %v3987_v59 = vpack.c.bf16 %v3976_v52, %v3976_v52 }
0x1880   : > { %8897 = vmatmul.mubr.msk.bf16.vlgmr.msra.gmra.mrb[40].mxu1 %vm1723_vm2, %v3987_v59 }
0x1881   : > { %8907 = vmatprep.mubr.msk.f32.mxu1 %vm10520_vm0, %v10521_v1 }
0x1953   : > { %v4043_v61 = vpop.f32.mrb[40].mxu1 }
0x1954   : > { %v4044_v62 = vadd.f32 %v8404_v60, %v4043_v61  ;;  %v8898_v63 = vpop.f32.mrb[41].mxu1 }
0x1955   : > { %v4046_v2 = vpop.f32.mrb[42].mxu1 }
0x1956   : > { %4052 = vrot.lane.b32.xlu1 %v4044_v62, %s12175_s4  ;;  %4050 = vrot.lane.b32.xlu0 %v4044_v62, %s12176_s1  ;;  %v8899_v3 = vpop.f32.mrb[43].mxu1 }
0x195a   : > { %4054 = vrot.lane.b32.xlu1 %v4044_v62, %s12166_s0  ;;  %4056 = vrot.lane.b32.xlu0 %v4044_v62, %s12177_s2 }
0x19c8   : > { %v11497_v0 = vpop.permute.xlu1 %4052  ;;  %v11499_v4 = vpop.permute.xlu0 %4050 }
0x19c9   : > { %4208 = vrot.lane.b32.xlu0 %v11497_v0, %s12177_s2  ;;  %4132 = vrot.lane.b32.xlu1 %v11499_v4, %s12177_s2 }
0x19cc   : > { %v11505_v5 = vpop.permute.xlu1 %4054  ;;  %v4057_v6 = vpop.permute.xlu0 %4056 }
0x19cd   : > { %4284 = vrot.lane.b32.xlu1 %v11505_v5, %s12177_s2  ;;  %8901 = vmatpush3.xpose.msk.msra.mxu0 %vm1840_vm5, %v4057_v6 }
0x19ce   : > { %8910 = vmatprep.subr.mxu0 %v10521_v1 }
0x19d0   : > { %8903 = vmatmul.mubr.msk.f32.vlgmr.msra.gmra.mrb[22].mxu0 %vm1840_vm5, %v4044_v62 }
0x19d1   : > { %8912 = vmatprep.mubr.msk.f32.mxu0 %vm10520_vm0, %v10521_v1 }
0x1a3b   : > { %v4133_v7 = vpop.permute.xlu1 %4132  ;;  %v4209_v8 = vpop.permute.xlu0 %4208 }
0x1a3c   : > { %8906 = vmatpush3.xpose.msk.msra.mxu1 %vm1840_vm5, %v4133_v7  ;;  %8911 = vmatpush3.xpose.msk.msra.mxu0 %vm1840_vm5, %v4209_v8 }
0x1a3d   : > { %8915 = vmatprep.subr.mxu1 %v10521_v1  ;;  %8920 = vmatprep.subr.mxu0 %v10521_v1 }
0x1a3f   : > { %8908 = vmatmul.mubr.msk.f32.vlgmr.msra.gmra.mrb[38].mxu1 %vm1840_vm5, %v11499_v4  ;;  %v4285_v9 = vpop.permute.xlu1 %4284  ;;  %8913 = vmatmul.mubr.msk.f32.vlgmr.msra.gmra.mrb[32].mxu0 %vm1840_vm5, %v11497_v0 }
0x1a40   : > { %8916 = vmatpush3.xpose.msk.msra.mxu1 %vm1840_vm5, %v4285_v9  ;;  %8917 = vmatprep.mubr.msk.f32.mxu1 %vm10520_vm0, %v10521_v1 }
0x1a41   : > { %8922 = vmatprep.mubr.msk.f32.mxu0 %vm10520_vm0, %v10521_v1  ;;  %8925 = vmatprep.subr.mxu1 %v10521_v1 }
0x1a43   : > { %8918 = vmatmul.mubr.msk.f32.vlgmr.msra.gmra.mrb[44].mxu1 %vm1840_vm5, %v11505_v5 }
0x1a44   : > { %8927 = vmatprep.mubr.msk.f32.mxu1 %vm10520_vm0, %v10521_v1 }
0x1aa3   : > { %v4128_v12 = vpop.f32.mrb[22].mxu0 }
0x1aa4   : > { %v4360_v13 = vmul.f32 0.35355338, %v4128_v12  ;;  %v8904_v14 = vpop.f32.mrb[23].mxu0  ;;  %v9526_v12 = vld [vmem:[%s12179_s6] sm:$0xff]  }
0x1aa6   : > { %v4366_v15 = vsel %vm1640_vm6, %v4360_v13, -1e+09  ;;  %v9527_v13 = vld [vmem:[%s12179_s6 + $0x8] sm:$0xff]  }
0x1aa7   : > { %v4370_v16 = vsel %vm1840_vm5, %v4366_v15, -inf }
0x1aa8   : > { %4371 = vmax.xlane.f32.xlu0 %v4370_v16 }
0x1b12   : > { %v4204_v17 = vpop.f32.mrb[38].mxu1  ;;  %v4280_v18 = vpop.f32.mrb[32].mxu0 }
0x1b13   : > { %v4361_v19 = vmul.f32 0.35355338, %v4204_v17  ;;  %v4362_v20 = vmul.f32 0.35355338, %v4280_v18  ;;  %v8909_v10 = vpop.f32.mrb[39].mxu1  ;;  %v8914_v21 = vpop.f32.mrb[33].mxu0 }
0x1b15   : > { %v4368_v22 = vsel %vm1640_vm6, %v4362_v20, -1e+09  ;;  %v4367_v23 = vsel %vm1640_vm6, %v4361_v19, -1e+09  ;;  %v8393_v20 = vld [vmem:[#allocation8 + $0x1] ss:$0 sm:$0xff] }
0x1b16   : > { %v4356_v24 = vpop.f32.mrb[44].mxu1  ;;  %v4376_v25 = vsel %vm1840_vm5, %v4368_v22, -inf  ;;  %v4373_v26 = vsel %vm1840_vm5, %v4367_v23, -inf  ;;  %v3820_v10 = vadd.f32 %v8393_v20, %v11488_v39 }
0x1b17   : > { %v4363_v27 = vmul.f32 0.35355338, %v4356_v24  ;;  %4377 = vmax.xlane.f32.xlu0 %v4376_v25  ;;  %4374 = vmax.xlane.f32.xlu1 %v4373_v26  ;;  %v8919_v28 = vpop.f32.mrb[45].mxu1 }
0x1b18   : > { %v3825_v21 = vadd.f32 %v3820_v10, %v11444_v47 }
0x1b19   : > { %v4369_v29 = vsel %vm1640_vm6, %v4363_v27, -1e+09 }
0x1b1a   : > { %v4379_v31 = vsel %vm1840_vm5, %v4369_v29, -inf }
0x1b1b   : > { %4380 = vmax.xlane.f32.xlu0 %v4379_v31  ;;  %v8420_v31 = vld [vmem:[#allocation19] ss:$0 sm:$0xff] }
0x1b28   : > { %4414 = vrot.lane.b32.xlu1 %v4044_v62, %s12167_s15 }
0x1b35   : > { %v4372_v32 = vpop.xlane.xlu0 %4371 }
0x1b36   : > { %v4382_v33 = vsub.f32 %v4366_v15, %v4372_v32 }
0x1b38   : > { %v4386_v34 = vmul.f32 1.442695, %v4382_v33 }
0x1b3a   : > { %9604 = vpow2.f32 %v4386_v34 }
0x1b44   : > { %v9605_v35 = vpop.eup %9604 }
0x1b45   : > { %v4394_v36 = vsel %vm1840_vm5, %v9605_v35, 0.0 }
0x1b4c   : > { %4395 = vadd.xlane.f32.xlu1 %v4394_v36 }
0x1ba4   : > { %v4378_v37 = vpop.xlane.xlu0 %4377  ;;  %v4375_v38 = vpop.xlane.xlu1 %4374 }
0x1ba5   : > { %v4384_v41 = vsub.f32 %v4368_v22, %v4378_v37  ;;  %v4383_v40 = vsub.f32 %v4367_v23, %v4375_v38  ;;  %v3828_v22 = vsel %vm1723_vm2, %v3825_v21, 0.0 }
0x1ba7   : > { %v4390_v42 = vmul.f32 1.442695, %v4384_v41  ;;  %v4388_v43 = vmul.f32 1.442695, %v4383_v40 }
0x1ba8   : > { %v4415_v44 = vpop.permute.xlu1 %4414  ;;  %v4381_v45 = vpop.xlane.xlu0 %4380 }
0x1ba9   : > { %9606 = vpow2.f32 %v4390_v42  ;;  %v4385_v46 = vsub.f32 %v4369_v29, %v4381_v45  ;;  %8921 = vmatpush3.msra.mxu0 %v4415_v44  ;;  %v9529_v44 = vld [vmem:[%s12180_s26 + $0x8] sm:$0xff]  }
0x1baa   : > { %9608 = vpow2.f32 %v4388_v43  ;;  %8930 = vmatprep.subr.mxu0 %v10521_v1  ;;  %v9528_v43 = vld [vmem:[%s12180_s26] sm:$0xff]  }
0x1bab   : > { %v4392_v48 = vmul.f32 1.442695, %v4385_v46 }
0x1bad   : > { %9610 = vpow2.f32 %v4392_v48 }
0x1bb3   : > { %v9607_v49 = vpop.eup %9606 }
0x1bb4   : > { %v9609_v50 = vpop.eup %9608  ;;  %v4400_v51 = vsel %vm1840_vm5, %v9607_v49, 0.0 }
0x1bb5   : > { %4401 = vadd.xlane.f32.xlu1 %v4400_v51  ;;  %v4397_v54 = vsel %vm1840_vm5, %v9609_v50, 0.0 }
0x1bb6   : > { %4398 = vadd.xlane.f32.xlu0 %v4397_v54 }
0x1bb7   : > { %v9611_v55 = vpop.eup %9610 }
0x1bb8   : > { %v4403_v56 = vsel %vm1840_vm5, %v9611_v55, 0.0 }
0x1bba   : > { %4404 = vadd.xlane.f32.xlu0 %v4403_v56 }
0x1bc6   : > { %4566 = vrot.lane.b32.xlu1 %v11497_v0, %s12167_s15 }
0x1bca   : > { %4642 = vrot.lane.b32.xlu1 %v11505_v5, %s12167_s15 }
0x1bd0   : > { %4490 = vrot.lane.b32.xlu0 %v11499_v4, %s12167_s15 }
0x1bd9   : > { %v4396_v57 = vpop.xlane.xlu1 %4395 }
0x1bda   : > { %9612 = vrcp.f32 %v4396_v57 }
0x1be4   : > { %v9613_v58 = vpop.eup %9612 }
0x1be5   : > { %v4410_v52 = vmul.f32 %v9613_v58, %v9605_v35 }
0x1be7   : > { %8923 = vmatmul.mubr.msk.f32.vlgmr.msra.gmra.mrb[34].mxu0 %vm1840_vm5, %v4410_v52 }
0x1be8   : > { %8932 = vmatprep.mubr.msk.f32.mxu0 %vm10520_vm0, %v10521_v1 }
0x1c42   : > { %v4402_v59 = vpop.xlane.xlu1 %4401 }
0x1c43   : > { %9614 = vrcp.f32 %v4402_v59  ;;  %v4399_v60 = vpop.xlane.xlu0 %4398 }
0x1c44   : > { %9616 = vrcp.f32 %v4399_v60  ;;  %v8399_v60 = vld [vmem:[#allocation14] ss:$0 sm:$0xff] }
0x1c46   : > { %v4567_v61 = vpop.permute.xlu1 %4566 }
0x1c47   : > { %v4405_v62 = vpop.xlane.xlu0 %4404  ;;  %8931 = vmatpush3.msra.mxu0 %v4567_v61 }
0x1c48   : > { %9618 = vrcp.f32 %v4405_v62  ;;  %8940 = vmatprep.subr.bf16.mxu0 %v10521_v1 }
0x1c4a   : > { %v4643_v5 = vpop.permute.xlu1 %4642 }
0x1c4b   : > { %v4491_v63 = vpop.permute.xlu0 %4490 }
0x1c4c   : > { %8926 = vmatpush3.msra.mxu1 %v4491_v63 }
0x1c4d   : > { %v9615_v2 = vpop.eup %9614  ;;  %8935 = vmatprep.subr.mxu1 %v10521_v1 }
0x1c4e   : > { %v9617_v3 = vpop.eup %9616  ;;  %v4412_v0 = vmul.f32 %v9615_v2, %v9607_v49  ;;  %v8426_v2 = vld [vmem:[#allocation20] ss:$0 sm:$0xff] }
0x1c4f   : > { %v4411_v4 = vmul.f32 %v9617_v3, %v9609_v50  ;;  %v8400_v3 = vld [vmem:[#allocation16] ss:$0 sm:$0xff] }
0x1c50   : > { %8933 = vmatmul.mubr.msk.f32.vlgmr.msra.gmra.mrb[36].mxu0 %vm1840_vm5, %v4412_v0 }
0x1c51   : > { %8928 = vmatmul.mubr.msk.f32.vlgmr.msra.gmra.mrb[46].mxu1 %vm1840_vm5, %v4411_v4  ;;  %8944 = vmatprep.mubr.msk.bf16.mxu0 %vm10520_vm0, %v10521_v1 }
0x1c52   : > { %v9619_v6 = vpop.eup %9618  ;;  %8936 = vmatpush3.msra.mxu1 %v4643_v5  ;;  %8937 = vmatprep.mubr.msk.f32.mxu1 %vm10520_vm0, %v10521_v1 }
0x1c53   : > { %v4413_v7 = vmul.f32 %v9619_v6, %v9611_v55  ;;  %8948 = vmatprep.subr.bf16.mxu1 %v10521_v1  ;;  %8941 = vmatpush3.bf16.msra.mxu0 %v9526_v12 }
0x1c54   : > { %8942 = vmatprep.subr.bf16.mxu0 %v10521_v1 }
0x1c55   : > { %8938 = vmatmul.mubr.msk.f32.vlgmr.msra.gmra.mrb[48].mxu1 %vm1840_vm5, %v4413_v7 }
0x1c56   : > { %8952 = vmatprep.mubr.msk.bf16.mxu1 %vm10520_vm0, %v10521_v1  ;;  %8949 = vmatpush3.bf16.msra.mxu1 %v9528_v43 }
0x1c57   : > { %8943 = vmatpush3.bf16.msra.mxu0 %v9527_v13  ;;  %8950 = vmatprep.subr.bf16.mxu1 %v10521_v1 }
0x1c58   : > { %8956 = vmatprep.subr.bf16.mxu0 %v10521_v1 }
0x1c5a   : > { %8951 = vmatpush3.bf16.msra.mxu1 %v9529_v44 }
0x1c5b   : > { %8964 = vmatprep.subr.mxu1 %v10521_v1 }
0x1cba   : > { %v4486_v8 = vpop.f32.mrb[34].mxu0 }
0x1cbb   : > { %v8924_v9 = vpop.f32.mrb[35].mxu0 }
0x1d23   : > { %v4638_v14 = vpop.f32.mrb[36].mxu0 }
0x1d24   : > { %v4562_v15 = vpop.f32.mrb[46].mxu1  ;;  %4723 = vrot.lane.b32.xlu1 %v4638_v14, %s12168_s18  ;;  %v8934_v16 = vpop.f32.mrb[37].mxu0 }
0x1d25   : > { %4719 = vrot.lane.b32.xlu0 %v4562_v15, %s12169_s10  ;;  %v8929_v17 = vpop.f32.mrb[47].mxu1  ;;  %v8424_v16 = vld [vmem:[#allocation29] ss:$0 sm:$0xff] }
0x1d28   : > { %v4714_v18 = vpop.f32.mrb[48].mxu1 }
0x1d29   : > { %4727 = vrot.lane.b32.xlu0 %v4714_v18, %s12170_s9  ;;  %v8939_v19 = vpop.f32.mrb[49].mxu1 }
0x1d2a   : > { %v8425_v19 = vld [vmem:[#allocation31] ss:$0 sm:$0xff] }
0x1d48   : > { %3829 = vadd.xlane.f32.xlu1 %v3828_v22 }
0x1d96   : > { %v4724_v24 = vpop.permute.xlu1 %4723 }
0x1d97   : > { %v4720_v23 = vpop.permute.xlu0 %4719 }
0x1d98   : > { %v4730_v25 = vsel %vm1840_vm5, %v4486_v8, %v4720_v23 }
0x1d99   : > { %v4731_v26 = vsel %vm1644_vm1, %v4730_v25, %v4724_v24 }
0x1d9b   : > { %v4728_v27 = vpop.permute.xlu0 %4727 }
0x1d9c   : > { %v4732_v28 = vsel %vm2519_vm8, %v4731_v26, %v4728_v27 }
0x1d9d   : > { %v4733_v29 = vpack.c.bf16 %v4732_v28, %v4732_v28 }
0x1d9f   : > { %8945 = vmatmul.mubr.msk.bf16.vlgmr.msra.gmra.mrb[40].mxu0 %vm1723_vm2, %v4733_v29 }
0x1da0   : > { %8960 = vmatprep.mubr.msk.bf16.mxu0 %vm10520_vm0, %v10521_v1 }
0x1dd5   : > { %v3830_v47 = vpop.xlane.xlu1 %3829 }
0x1dd6   : > { %v3831_v39 = vmul.f32 0.03125, %v3830_v47 }
0x1dd8   : > { %v3832_v33 = vsub.f32 %v3825_v21, %v3831_v39 }
0x1dda   : > { %v3833_v40 = vmul.f32 %v3832_v33, %v3832_v33  ;;  %v3853_v61 = vmul.f32 %v8399_v60, %v3832_v33 }
0x1ddc   : > { %v3834_v42 = vsel %vm1723_vm2, %v3833_v40, 0.0 }
0x1e72   : > { %v4789_v32 = vpop.f32.mrb[40].mxu0 }
0x1e73   : > { %v4790_v34 = vadd.f32 %v8420_v31, %v4789_v32  ;;  %v8946_v35 = vpop.f32.mrb[41].mxu0 }
0x1e74   : > { %v4792_v36 = vpop.f32.mrb[42].mxu0 }
0x1e75   : > { %v11593_v37 = vadd.f32 %v4790_v34, %v11478_v30  ;;  %v8947_v38 = vpop.f32.mrb[43].mxu0 }
0x1e77   : > { %v4798_v41 = vsel %vm1723_vm2, %v11593_v37, 0.0 }
0x1e78   : > { %4799 = vadd.xlane.f32.xlu0 %v4798_v41 }
0x1e7c   : > { %3835 = vadd.xlane.f32.xlu0 %v3834_v42 }
0x1e92   : > { %4905 = vrot.lane.b32.xlu0 %v9528_v43, %s12177_s2 }
0x1f05   : > { %v4800_v30 = vpop.xlane.xlu0 %4799 }
0x1f06   : > { %v4801_v45 = vmul.f32 0.03125, %v4800_v30 }
0x1f08   : > { %v4802_v46 = vsub.f32 %v11593_v37, %v4801_v45 }
0x1f09   : > { %v3836_v48 = vpop.xlane.xlu0 %3835 }
0x1f0a   : > { %v3837_v49 = vmul.f32 0.032258064, %v3836_v48  ;;  %v4803_v50 = vmul.f32 %v4802_v46, %v4802_v46  ;;  %v4823_v17 = vmul.f32 %v8424_v16, %v4802_v46 }
0x1f0c   : > { %9620 = vrsqrt.f32 %v3837_v49  ;;  %v4804_v51 = vsel %vm1723_vm2, %v4803_v50, 0.0  ;;  %vm3840_vm9 = vcmp.eq.f32.partialorder %v3837_v49, inf  ;;  %v3843_v56 = vand.u32 2147483648, %v3837_v49 }
0x1f0d   : > { %4805 = vadd.xlane.f32.xlu1 %v4804_v51  ;;  %vm3842_vm10 = vcmp.eq.f32.partialorder %v3837_v49, 0.0  ;;  %v4906_v59 = vpop.permute.xlu0 %4905 }
0x1f0e   : > { %8957 = vmatpush3.bf16.msra.mxu0 %v4906_v59 }
0x1f0f   : > { %8958 = vmatprep.subr.bf16.mxu0 %v10521_v1 }
0x1f16   : > { %v9621_v54 = vpop.eup %9620 }
0x1f17   : > { %v3839_v55 = vmul.f32 %v9621_v54, %v3837_v49 }
0x1f19   : > { %v3841_v57 = vsel %vm3840_vm9, %v3837_v49, %v3839_v55 }
0x1f1a   : > { %v3844_v58 = vsel %vm3842_vm10, %v3843_v56, %v3841_v57 }
0x1f1b   : > { %v3845_v52 = vadd.f32 1e-06, %v3844_v58 }
0x1f1d   : > { %9622 = vrcp.f32 %v3845_v52 }
0x1f1e   : > { %4907 = vrot.lane.b32.xlu1 %v9529_v44, %s12177_s2 }
0x1f22   : > { %4911 = vrot.lane.b32.xlu1 %v8426_v2, %s12177_s2 }
0x1f27   : > { %v9623_v62 = vpop.eup %9622 }
0x1f28   : > { %v3854_v63 = vmul.f32 %v9623_v62, %v3853_v61 }
0x1f2a   : > { %v3861_v5 = vadd.f32 %v8400_v3, %v3854_v63 }
0x1f2c   : > { %v11608_v7 = vpack.c.bf16 %v3861_v5, %v3861_v5 }
0x1f9a   : > { %v4806_v0 = vpop.xlane.xlu1 %4805 }
0x1f9b   : > { %v4807_v4 = vmul.f32 0.032258064, %v4806_v0 }
0x1f9d   : > { %9624 = vrsqrt.f32 %v4807_v4  ;;  %vm4810_vm12 = vcmp.eq.f32.partialorder %v4807_v4, inf  ;;  %v4813_v12 = vand.u32 2147483648, %v4807_v4  ;;  %vm4812_vm13 = vcmp.eq.f32.partialorder %v4807_v4, 0.0 }
0x1f9e   : > { %v4908_v6 = vpop.permute.xlu1 %4907 }
0x1f9f   : > { %8959 = vmatpush3.bf16.msra.mxu0 %v4908_v6 }
0x1fa0   : > { %8974 = vmatprep.subr.mxu0 %v10521_v1 }
0x1fa2   : > { %8961 = vmatmul.mubr.msk.bf16.vlgmr.msra.gmra.mrb[44].mxu0 %vm1723_vm2, %v11608_v7  ;;  %v4912_v22 = vpop.permute.xlu1 %4911 }
0x1fa3   : > { %8976 = vmatprep.mubr.msk.f32.mxu0 %vm10520_vm0, %v10521_v1 }
0x1fa7   : > { %v9625_v8 = vpop.eup %9624 }
0x1fa8   : > { %v4809_v9 = vmul.f32 %v9625_v8, %v4807_v4 }
0x1faa   : > { %v4811_v13 = vsel %vm4810_vm12, %v4807_v4, %v4809_v9 }
0x1fab   : > { %v4814_v14 = vsel %vm4812_vm13, %v4813_v12, %v4811_v13 }
0x1fac   : > { %v4815_v15 = vadd.f32 1e-06, %v4814_v14 }
0x1fae   : > { %9626 = vrcp.f32 %v4815_v15 }
0x1fb8   : > { %v9627_v18 = vpop.eup %9626 }
0x1fb9   : > { %v4824_v20 = vmul.f32 %v9627_v18, %v4823_v17 }
0x1fbb   : > { %v4831_v10 = vadd.f32 %v8425_v19, %v4824_v20 }
0x1fbd   : > { %v4842_v21 = vpack.c.bf16 %v4831_v10, %v4831_v10 }
0x1fbf   : > { %8953 = vmatmul.mubr.msk.bf16.vlgmr.msra.gmra.mrb[52].mxu1 %vm1723_vm2, %v4842_v21 }
0x1fc0   : > { %8966 = vmatprep.mubr.msk.f32.mxu1 %vm10520_vm0, %v10521_v1 }
0x2075   : > { %v4951_v23 = vpop.f32.mrb[44].mxu0 }
0x2076   : > { %v4952_v24 = vadd.f32 %v4951_v23, %v4912_v22  ;;  %v8962_v25 = vpop.f32.mrb[45].mxu0 }
0x2077   : > { %v4954_v26 = vpop.f32.mrb[46].mxu0 }
0x2078   : > { %4969 = vrot.lane.b32.xlu1 %v4952_v24, %s12166_s0  ;;  %4965 = vrot.lane.b32.xlu0 %v4952_v24, %s12176_s1  ;;  %v8963_v27 = vpop.f32.mrb[47].mxu0 }
0x2079   : > { %8965 = vmatpush3.xpose.msk.msra.mxu1 %vm1840_vm5, %v4952_v24 }
0x207a   : > { %8969 = vmatprep.subr.mxu1 %v10521_v1 }
0x207c   : > { %4967 = vrot.lane.b32.xlu0 %v4952_v24, %s12175_s4 }
0x2092   : > { %v4898_v28 = vpop.f32.mrb[52].mxu1 }
0x2093   : > { %v4899_v29 = vadd.f32 %v8426_v2, %v4898_v28  ;;  %v8954_v47 = vpop.f32.mrb[53].mxu1 }
0x2094   : > { %v4901_v39 = vpop.f32.mrb[54].mxu1 }
0x2095   : > { %4960 = vrot.lane.b32.xlu0 %v4899_v29, %s12175_s4  ;;  %4958 = vrot.lane.b32.xlu1 %v4899_v29, %s12176_s1  ;;  %v8955_v31 = vpop.f32.mrb[55].mxu1 }
0x2096   : > { %8967 = vmatmul.mubr.msk.f32.vlgmr.msra.gmra.mrb[50].mxu1 %vm1840_vm5, %v4899_v29 }
0x2097   : > { %8971 = vmatprep.mubr.msk.f32.mxu1 %vm10520_vm0, %v10521_v1 }
0x2099   : > { %4962 = vrot.lane.b32.xlu1 %v4899_v29, %s12166_s0 }
0x20ea   : > { %v11629_v32 = vpop.permute.xlu0 %4965  ;;  %v11639_v34 = vpop.permute.xlu1 %4969 }
0x20eb   : > { %8970 = vmatpush3.xpose.msk.msra.mxu1 %vm1840_vm5, %v11629_v32 }
0x20ec   : > { %8979 = vmatprep.subr.mxu1 %v10521_v1 }
0x20ee   : > { %v11634_v33 = vpop.permute.xlu0 %4967 }
0x20ef   : > { %8975 = vmatpush3.xpose.msk.msra.mxu0 %vm1840_vm5, %v11634_v33 }
0x20f0   : > { %8984 = vmatprep.subr.mxu0 %v10521_v1 }
0x2107   : > { %v4961_v35 = vpop.permute.xlu0 %4960  ;;  %v4959_v36 = vpop.permute.xlu1 %4958 }
0x2108   : > { %8972 = vmatmul.mubr.msk.f32.vlgmr.msra.gmra.mrb[56].mxu1 %vm1840_vm5, %v4959_v36  ;;  %8977 = vmatmul.mubr.msk.f32.vlgmr.msra.gmra.mrb[38].mxu0 %vm1840_vm5, %v4961_v35 }
0x2109   : > { %8980 = vmatpush3.xpose.msk.msra.mxu1 %vm1840_vm5, %v11639_v34  ;;  %8981 = vmatprep.mubr.msk.f32.mxu1 %vm10520_vm0, %v10521_v1 }
0x210a   : > { %8986 = vmatprep.mubr.msk.f32.mxu0 %vm10520_vm0, %v10521_v1  ;;  %8989 = vmatprep.subr.mxu1 %v10521_v1 }
0x210b   : > { %v4963_v38 = vpop.permute.xlu1 %4962 }
0x210c   : > { %8982 = vmatmul.mubr.msk.f32.vlgmr.msra.gmra.mrb[58].mxu1 %vm1840_vm5, %v4963_v38  ;;  %v9530_v38 = vld [vmem:[%s12181_s8] sm:$0xff]  }
0x210d   : > { %8991 = vmatprep.mubr.msk.f32.mxu1 %vm10520_vm0, %v10521_v1 }
0x2169   : > { %v5041_v41 = vpop.f32.mrb[50].mxu1 }
0x216a   : > { %v5267_v40 = vmul.f32 0.35355338, %v5041_v41  ;;  %v8968_v42 = vpop.f32.mrb[51].mxu1  ;;  %v9531_v41 = vld [vmem:[%s12181_s8 + $0x8] sm:$0xff]  }
0x216c   : > { %v5271_v43 = vsel %vm2152_vm7, %v5267_v40, -1e+09 }
0x216d   : > { %v5275_v44 = vsel %vm1840_vm5, %v5271_v43, -inf }
0x216e   : > { %5276 = vmax.xlane.f32.xlu0 %v5275_v44 }
0x21db   : > { %v5115_v30 = vpop.f32.mrb[56].mxu1  ;;  %v5189_v45 = vpop.f32.mrb[38].mxu0 }
0x21dc   : > { %v5268_v46 = vmul.f32 0.35355338, %v5115_v30  ;;  %v5269_v48 = vmul.f32 0.35355338, %v5189_v45  ;;  %v8973_v49 = vpop.f32.mrb[57].mxu1  ;;  %v8978_v50 = vpop.f32.mrb[39].mxu0 }
0x21de   : > { %v5273_v51 = vsel %vm2152_vm7, %v5269_v48, -1e+09  ;;  %v5272_v54 = vsel %vm2152_vm7, %v5268_v46, -1e+09 }
0x21df   : > { %v5263_v55 = vpop.f32.mrb[58].mxu1  ;;  %v5281_v56 = vsel %vm1840_vm5, %v5273_v51, -inf  ;;  %v5278_v57 = vsel %vm1840_vm5, %v5272_v54, -inf }
0x21e0   : > { %v5270_v58 = vmul.f32 0.35355338, %v5263_v55  ;;  %5282 = vmax.xlane.f32.xlu0 %v5281_v56  ;;  %5279 = vmax.xlane.f32.xlu1 %v5278_v57  ;;  %v8983_v52 = vpop.f32.mrb[59].mxu1  ;;  %v8443_v56 = vld [vmem:[#allocation22] ss:$0 sm:$0xff] }
0x21e2   : > { %v5274_v59 = vsel %vm2152_vm7, %v5270_v58, -1e+09 }
0x21e3   : > { %v5284_v60 = vsel %vm1840_vm5, %v5274_v59, -inf }
0x21e4   : > { %5285 = vmax.xlane.f32.xlu0 %v5284_v60 }
0x21f1   : > { %5319 = vrot.lane.b32.xlu1 %v4952_v24, %s12177_s2 }
0x21fb   : > { %v5277_v61 = vpop.xlane.xlu0 %5276 }
0x21fc   : > { %v5287_v62 = vsub.f32 %v5271_v43, %v5277_v61 }
0x21fe   : > { %v5291_v63 = vmul.f32 1.442695, %v5287_v62 }
0x2200   : > { %9628 = vpow2.f32 %v5291_v63 }
0x220a   : > { %v9629_v2 = vpop.eup %9628 }
0x220b   : > { %v5299_v3 = vsel %vm1840_vm5, %v9629_v2, 0.0 }
0x2215   : > { %5300 = vadd.xlane.f32.xlu1 %v5299_v3 }
0x226d   : > { %v5283_v0 = vpop.xlane.xlu0 %5282  ;;  %v5280_v4 = vpop.xlane.xlu1 %5279 }
0x226e   : > { %v5289_v5 = vsub.f32 %v5273_v51, %v5283_v0  ;;  %v5288_v6 = vsub.f32 %v5272_v54, %v5280_v4 }
0x2270   : > { %v5295_v8 = vmul.f32 1.442695, %v5289_v5  ;;  %v5293_v9 = vmul.f32 1.442695, %v5288_v6  ;;  %v9532_v5 = vld [vmem:[%s12182_s11] sm:$0xff]   ;;  %v9533_v6 = vld [vmem:[%s12182_s11 + $0x8] sm:$0xff]  }
0x2271   : > { %v5320_v12 = vpop.permute.xlu1 %5319  ;;  %v5286_v13 = vpop.xlane.xlu0 %5285 }
0x2272   : > { %9630 = vpow2.f32 %v5295_v8  ;;  %v5290_v14 = vsub.f32 %v5274_v59, %v5286_v13  ;;  %8985 = vmatpush3.msra.mxu0 %v5320_v12  ;;  %v9535_v8 = vld [vmem:[%s12183_s12 + $0x8] sm:$0xff]  }
0x2273   : > { %9632 = vpow2.f32 %v5293_v9  ;;  %8994 = vmatprep.subr.mxu0 %v10521_v1 }
0x2274   : > { %v5297_v15 = vmul.f32 1.442695, %v5290_v14 }
0x2276   : > { %9634 = vpow2.f32 %v5297_v15 }
0x227c   : > { %v9631_v16 = vpop.eup %9630 }
0x227d   : > { %v9633_v17 = vpop.eup %9632  ;;  %v5305_v18 = vsel %vm1840_vm5, %v9631_v16, 0.0 }
0x227e   : > { %5306 = vadd.xlane.f32.xlu1 %v5305_v18  ;;  %v5302_v19 = vsel %vm1840_vm5, %v9633_v17, 0.0 }
0x227f   : > { %5303 = vadd.xlane.f32.xlu0 %v5302_v19  ;;  %v8447_v19 = vld [vmem:[#allocation32] ss:$0 sm:$0xff] }
0x2280   : > { %v9635_v20 = vpop.eup %9634 }
0x2281   : > { %v5308_v10 = vsel %vm1840_vm5, %v9635_v20, 0.0 }
0x2283   : > { %5309 = vadd.xlane.f32.xlu0 %v5308_v10 }
0x228f   : > { %5471 = vrot.lane.b32.xlu1 %v11634_v33, %s12177_s2 }
0x2293   : > { %5547 = vrot.lane.b32.xlu1 %v11639_v34, %s12177_s2 }
0x2299   : > { %5395 = vrot.lane.b32.xlu0 %v11629_v32, %s12177_s2 }
0x22a2   : > { %v5301_v21 = vpop.xlane.xlu1 %5300 }
0x22a3   : > { %9636 = vrcp.f32 %v5301_v21  ;;  %v8448_v21 = vld [vmem:[#allocation34] ss:$0 sm:$0xff] }
0x22ad   : > { %v9637_v22 = vpop.eup %9636 }
0x22ae   : > { %v5315_v23 = vmul.f32 %v9637_v22, %v9629_v2 }
0x22b0   : > { %8987 = vmatmul.mubr.msk.f32.vlgmr.msra.gmra.mrb[48].mxu0 %vm1840_vm5, %v5315_v23 }
0x22b1   : > { %8996 = vmatprep.mubr.msk.f32.mxu0 %vm10520_vm0, %v10521_v1 }
0x230b   : > { %v5307_v24 = vpop.xlane.xlu1 %5306 }
0x230c   : > { %9638 = vrcp.f32 %v5307_v24  ;;  %v5304_v25 = vpop.xlane.xlu0 %5303 }
0x230d   : > { %9640 = vrcp.f32 %v5304_v25  ;;  %v9536_v25 = vld [vmem:[%s12183_s12 + $0x10] sm:$0xff]  }
0x230f   : > { %v5472_v26 = vpop.permute.xlu1 %5471 }
0x2310   : > { %v5310_v27 = vpop.xlane.xlu0 %5309  ;;  %8995 = vmatpush3.msra.mxu0 %v5472_v26  ;;  %v9537_v26 = vld [vmem:[%s12183_s12 + $0x18] sm:$0xff]  }
0x2311   : > { %9642 = vrcp.f32 %v5310_v27  ;;  %9004 = vmatprep.subr.bf16.mxu0 %v10521_v1  ;;  %v8449_v27 = vld [vmem:[#allocation23] ss:$0 sm:$0xff] }
0x2313   : > { %v5548_v32 = vpop.permute.xlu1 %5547 }
0x2314   : > { %v5396_v28 = vpop.permute.xlu0 %5395 }
0x2315   : > { %8990 = vmatpush3.msra.mxu1 %v5396_v28 }
0x2316   : > { %v9639_v29 = vpop.eup %9638  ;;  %8999 = vmatprep.subr.mxu1 %v10521_v1 }
0x2317   : > { %v9641_v47 = vpop.eup %9640  ;;  %v5317_v39 = vmul.f32 %v9639_v29, %v9631_v16 }
0x2318   : > { %v5316_v31 = vmul.f32 %v9641_v47, %v9633_v17 }
0x2319   : > { %8997 = vmatmul.mubr.msk.f32.vlgmr.msra.gmra.mrb[50].mxu0 %vm1840_vm5, %v5317_v39 }
0x231a   : > { %8992 = vmatmul.mubr.msk.f32.vlgmr.msra.gmra.mrb[60].mxu1 %vm1840_vm5, %v5316_v31  ;;  %9008 = vmatprep.mubr.msk.bf16.mxu0 %vm10520_vm0, %v10521_v1 }
0x231b   : > { %v9643_v33 = vpop.eup %9642  ;;  %9000 = vmatpush3.msra.mxu1 %v5548_v32  ;;  %9001 = vmatprep.mubr.msk.f32.mxu1 %vm10520_vm0, %v10521_v1 }
0x231c   : > { %v5318_v34 = vmul.f32 %v9643_v33, %v9635_v20  ;;  %9012 = vmatprep.subr.bf16.mxu1 %v10521_v1  ;;  %9005 = vmatpush3.bf16.msra.mxu0 %v9530_v38 }
0x231d   : > { %9006 = vmatprep.subr.bf16.mxu0 %v10521_v1 }
0x231e   : > { %9002 = vmatmul.mubr.msk.f32.vlgmr.msra.gmra.mrb[62].mxu1 %vm1840_vm5, %v5318_v34  ;;  %v8453_v34 = vld [vmem:[#allocation25] ss:$0 sm:$0xff] }
0x231f   : > { %9016 = vmatprep.mubr.msk.bf16.mxu1 %vm10520_vm0, %v10521_v1  ;;  %9013 = vmatpush3.bf16.msra.mxu1 %v9532_v5 }
0x2320   : > { %9007 = vmatpush3.bf16.msra.mxu0 %v9531_v41  ;;  %9014 = vmatprep.subr.bf16.mxu1 %v10521_v1 }
0x2321   : > { %9020 = vmatprep.subr.bf16.mxu0 %v10521_v1 }
0x2323   : > { %9015 = vmatpush3.bf16.msra.mxu1 %v9533_v6 }
0x2324   : > { %9032 = vmatprep.subr.bf16.mxu1 %v10521_v1 }
0x2383   : > { %v5391_v35 = vpop.f32.mrb[48].mxu0 }
0x2384   : > { %v8988_v36 = vpop.f32.mrb[49].mxu0 }
0x23ec   : > { %v5543_v40 = vpop.f32.mrb[50].mxu0 }
0x23ed   : > { %v5467_v42 = vpop.f32.mrb[60].mxu1  ;;  %5628 = vrot.lane.b32.xlu1 %v5543_v40, %s12168_s18  ;;  %v8998_v43 = vpop.f32.mrb[51].mxu0 }
0x23ee   : > { %5624 = vrot.lane.b32.xlu0 %v5467_v42, %s12169_s10  ;;  %v8993_v44 = vpop.f32.mrb[61].mxu1 }
0x23f1   : > { %v5619_v30 = vpop.f32.mrb[62].mxu1 }
0x23f2   : > { %5632 = vrot.lane.b32.xlu0 %v5619_v30, %s12170_s9  ;;  %v9003_v45 = vpop.f32.mrb[63].mxu1 }
0x245f   : > { %v5629_v48 = vpop.permute.xlu1 %5628 }
0x2460   : > { %v5625_v46 = vpop.permute.xlu0 %5624 }
0x2461   : > { %v5635_v49 = vsel %vm1840_vm5, %v5391_v35, %v5625_v46 }
0x2462   : > { %v5636_v50 = vsel %vm1644_vm1, %v5635_v49, %v5629_v48  ;;  %v9538_v49 = vld [vmem:[%s12174_s5 + $0x10] sm:$0xff]  }
0x2464   : > { %v5633_v51 = vpop.permute.xlu0 %5632 }
0x2465   : > { %v5637_v54 = vsel %vm2519_vm8, %v5636_v50, %v5633_v51  ;;  %v9539_v50 = vld [vmem:[%s12174_s5 + $0x18] sm:$0xff]  }
0x2466   : > { %v5638_v55 = vpack.c.bf16 %v5637_v54, %v5637_v54 }
0x2468   : > { %9009 = vmatmul.mubr.msk.bf16.vlgmr.msra.gmra.mrb[52].mxu0 %vm1723_vm2, %v5638_v55 }
0x2469   : > { %9028 = vmatprep.mubr.msk.bf16.mxu0 %vm10520_vm0, %v10521_v1 }
0x253b   : > { %v5694_v57 = vpop.f32.mrb[52].mxu0 }
0x253c   : > { %v5695_v58 = vadd.f32 %v8443_v56, %v5694_v57  ;;  %v9010_v52 = vpop.f32.mrb[53].mxu0 }
0x253d   : > { %v5697_v59 = vpop.f32.mrb[54].mxu0 }
0x253e   : > { %v11706_v60 = vadd.f32 %v5695_v58, %v11593_v37  ;;  %v9011_v61 = vpop.f32.mrb[55].mxu0  ;;  %v9534_v37 = vld [vmem:[%s12183_s12] sm:$0xff]  }
0x253f   : > { %9021 = vmatpush3.bf16.msra.mxu0 %v9534_v37 }
0x2540   : > { %v5703_v62 = vsel %vm1723_vm2, %v11706_v60, 0.0  ;;  %9022 = vmatprep.subr.bf16.mxu0 %v10521_v1 }
0x2541   : > { %5704 = vadd.xlane.f32.xlu1 %v5703_v62 }
0x2543   : > { %9023 = vmatpush3.bf16.msra.mxu0 %v9535_v8 }
0x2544   : > { %9024 = vmatprep.subr.bf16.mxu0 %v10521_v1 }
0x2547   : > { %9025 = vmatpush3.bf16.msra.mxu0 %v9536_v25 }
0x2548   : > { %9026 = vmatprep.subr.bf16.mxu0 %v10521_v1 }
0x254b   : > { %9027 = vmatpush3.bf16.msra.mxu0 %v9537_v26 }
0x254c   : > { %9050 = vmatprep.subr.mxu0 %v10521_v1 }
0x25ce   : > { %v5705_v63 = vpop.xlane.xlu1 %5704 }
0x25cf   : > { %v5706_v2 = vmul.f32 0.03125, %v5705_v63  ;;  %v8460_v63 = vld [vmem:[#allocation28 + $0x1] ss:$0 sm:$0xff] }
0x25d1   : > { %v5707_v3 = vsub.f32 %v11706_v60, %v5706_v2 }
0x25d3   : > { %v5708_v0 = vmul.f32 %v5707_v3, %v5707_v3  ;;  %v5728_v20 = vmul.f32 %v8447_v19, %v5707_v3 }
0x25d5   : > { %v5709_v4 = vsel %vm1723_vm2, %v5708_v0, 0.0 }
0x25d6   : > { %5710 = vadd.xlane.f32.xlu0 %v5709_v4  ;;  %v8469_v4 = vld [vmem:[#allocation17 + $0x1] ss:$0 sm:$0xff] }
0x2663   : > { %v5711_v9 = vpop.xlane.xlu0 %5710 }
0x2664   : > { %v5712_v12 = vmul.f32 0.032258064, %v5711_v9 }
0x2666   : > { %9644 = vrsqrt.f32 %v5712_v12  ;;  %vm5715_vm14 = vcmp.eq.f32.partialorder %v5712_v12, inf  ;;  %v5718_v15 = vand.u32 2147483648, %v5712_v12  ;;  %vm5717_vm15 = vcmp.eq.f32.partialorder %v5712_v12, 0.0 }
0x2670   : > { %v9645_v13 = vpop.eup %9644 }
0x2671   : > { %v5714_v14 = vmul.f32 %v9645_v13, %v5712_v12 }
0x2673   : > { %v5716_v16 = vsel %vm5715_vm14, %v5712_v12, %v5714_v14 }
0x2674   : > { %v5719_v17 = vsel %vm5717_vm15, %v5718_v15, %v5716_v16 }
0x2675   : > { %v5720_v18 = vadd.f32 1e-06, %v5719_v17 }
0x2677   : > { %9646 = vrcp.f32 %v5720_v18 }
0x2681   : > { %v9647_v10 = vpop.eup %9646 }
0x2682   : > { %v5729_v22 = vmul.f32 %v9647_v10, %v5728_v20 }
0x2684   : > { %v5736_v23 = vadd.f32 %v8448_v21, %v5729_v22 }
0x2686   : > { %v5751_v24 = vpack.c.bf16 %v5736_v23, %v5736_v23 }
0x2688   : > { %9017 = vmatmul.mubr.msk.bf16.vlgmr.msra.gmra.mrb[64].mxu1 %vm1723_vm2, %v5751_v24 }
0x2689   : > { %9036 = vmatprep.mubr.msk.bf16.mxu1 %vm10520_vm0, %v10521_v1  ;;  %9033 = vmatpush3.bf16.msra.mxu1 %v9538_v49 }
0x268a   : > { %9034 = vmatprep.subr.bf16.mxu1 %v10521_v1 }
0x268d   : > { %9035 = vmatpush3.bf16.msra.mxu1 %v9539_v50 }
0x268e   : > { %9040 = vmatprep.subr.mxu1 %v10521_v1 }
0x275b   : > { %v5807_v28 = vpop.f32.mrb[64].mxu1 }
0x275c   : > { %v5808_v29 = vadd.f32 %v8449_v27, %v5807_v28  ;;  %v9018_v47 = vpop.f32.mrb[65].mxu1 }
0x275d   : > { %v5810_v39 = vpop.f32.mrb[66].mxu1 }
0x275e   : > { %v5813_v31 = vmax.f32 %v5808_v29, 0.0  ;;  %v9019_v32 = vpop.f32.mrb[67].mxu1 }
0x2760   : > { %v5814_v33 = vpack.c.bf16 %v5813_v31, %v5813_v31 }
0x2762   : > { %9029 = vmatmul.mubr.msk.bf16.vlgmr.msra.gmra.mrb[56].mxu0 %vm2728_vm11, %v5814_v33 }
0x2763   : > { %9052 = vmatprep.mubr.msk.f32.mxu0 %vm10520_vm0, %v10521_v1 }
0x2835   : > { %v5882_v35 = vpop.f32.mrb[56].mxu0 }
0x2836   : > { %v5883_v36 = vadd.f32 %v8453_v34, %v5882_v35  ;;  %v9030_v38 = vpop.f32.mrb[57].mxu0 }
0x2837   : > { %v5885_v41 = vpop.f32.mrb[58].mxu0 }
0x2838   : > { %v11731_v40 = vadd.f32 %v5883_v36, %v11706_v60  ;;  %v9031_v42 = vpop.f32.mrb[59].mxu0  ;;  %v8459_v60 = vld [vmem:[#allocation26 + $0x1] ss:$0 sm:$0xff] }
0x283a   : > { %v5893_v43 = vsel %vm1723_vm2, %v11731_v40, 0.0 }
0x283b   : > { %5894 = vadd.xlane.f32.xlu0 %v5893_v43 }
0x28c8   : > { %v5895_v44 = vpop.xlane.xlu0 %5894 }
0x28c9   : > { %v5896_v30 = vmul.f32 0.03125, %v5895_v44 }
0x28cb   : > { %v5897_v45 = vsub.f32 %v11731_v40, %v5896_v30 }
0x28cd   : > { %v5898_v46 = vmul.f32 %v5897_v45, %v5897_v45  ;;  %v5918_v61 = vmul.f32 %v8459_v60, %v5897_v45 }
0x28cf   : > { %v5899_v48 = vsel %vm1723_vm2, %v5898_v46, 0.0 }
0x28d0   : > { %5900 = vadd.xlane.f32.xlu1 %v5899_v48 }
0x295d   : > { %v5901_v51 = vpop.xlane.xlu1 %5900 }
0x295e   : > { %v5902_v54 = vmul.f32 0.032258064, %v5901_v51 }
0x2960   : > { %9648 = vrsqrt.f32 %v5902_v54  ;;  %vm5905_vm3 = vcmp.eq.f32.partialorder %v5902_v54, inf  ;;  %v5908_v57 = vand.u32 2147483648, %v5902_v54  ;;  %vm5907_vm4 = vcmp.eq.f32.partialorder %v5902_v54, 0.0 }
0x296a   : > { %v9649_v55 = vpop.eup %9648 }
0x296b   : > { %v5904_v56 = vmul.f32 %v9649_v55, %v5902_v54 }
0x296d   : > { %v5906_v58 = vsel %vm5905_vm3, %v5902_v54, %v5904_v56 }
0x296e   : > { %v5909_v52 = vsel %vm5907_vm4, %v5908_v57, %v5906_v58 }
0x296f   : > { %v5910_v59 = vadd.f32 1e-06, %v5909_v52 }
0x2971   : > { %9650 = vrcp.f32 %v5910_v59 }
0x297b   : > { %v9651_v62 = vpop.eup %9650 }
0x297c   : > { %v5919_v2 = vmul.f32 %v9651_v62, %v5918_v61 }
0x297e   : > { %v5926_v3 = vadd.f32 %v8460_v63, %v5919_v2 }
0x2980   : > { %v5941_v0 = vpack.c.bf16 %v5926_v3, %v5926_v3 }
0x2982   : > { %9037 = vmatmul.mubr.msk.bf16.vlgmr.msra.gmra.mrb[68].mxu1 %vm1723_vm2, %v5941_v0 }
0x2983   : > { %9042 = vmatprep.mubr.msk.f32.mxu1 %vm10520_vm0, %v10521_v1 }
0x2a55   : > { %v5997_v5 = vpop.f32.mrb[68].mxu1 }
0x2a56   : > { %v5998_v6 = vadd.f32 %v8469_v4, %v5997_v5  ;;  %v9038_v37 = vpop.f32.mrb[69].mxu1 }
0x2a57   : > { %v6000_v8 = vpop.f32.mrb[70].mxu1 }
0x2a58   : > { %6006 = vrot.lane.b32.xlu1 %v5998_v6, %s12175_s4  ;;  %6004 = vrot.lane.b32.xlu0 %v5998_v6, %s12176_s1  ;;  %v9039_v9 = vpop.f32.mrb[71].mxu1 }
0x2a5c   : > { %6008 = vrot.lane.b32.xlu1 %v5998_v6, %s12166_s0  ;;  %6010 = vrot.lane.b32.xlu0 %v5998_v6, %s12177_s2 }
0x2aca   : > { %v11748_v12 = vpop.permute.xlu1 %6006  ;;  %v11750_v13 = vpop.permute.xlu0 %6004 }
0x2acb   : > { %6162 = vrot.lane.b32.xlu0 %v11748_v12, %s12177_s2  ;;  %6086 = vrot.lane.b32.xlu1 %v11750_v13, %s12177_s2 }
0x2ace   : > { %v11756_v14 = vpop.permute.xlu1 %6008  ;;  %v6011_v15 = vpop.permute.xlu0 %6010 }
0x2acf   : > { %6238 = vrot.lane.b32.xlu1 %v11756_v14, %s12177_s2  ;;  %9041 = vmatpush3.xpose.msk.msra.mxu1 %vm1840_vm5, %v6011_v15 }
0x2ad0   : > { %9045 = vmatprep.subr.mxu1 %v10521_v1 }
0x2ad2   : > { %9043 = vmatmul.mubr.msk.f32.vlgmr.msra.gmra.mrb[72].mxu1 %vm1840_vm5, %v5998_v6 }
0x2ad3   : > { %9047 = vmatprep.mubr.msk.f32.mxu1 %vm10520_vm0, %v10521_v1 }
0x2b3d   : > { %v6087_v16 = vpop.permute.xlu1 %6086  ;;  %v6163_v17 = vpop.permute.xlu0 %6162 }
0x2b3e   : > { %9046 = vmatpush3.xpose.msk.msra.mxu1 %vm1840_vm5, %v6087_v16  ;;  %9051 = vmatpush3.xpose.msk.msra.mxu0 %vm1840_vm5, %v6163_v17  ;;  %v9540_v17 = vld [vmem:[%s12179_s6 + $0x10] sm:$0xff]  }
0x2b3f   : > { %9055 = vmatprep.subr.mxu1 %v10521_v1  ;;  %9060 = vmatprep.subr.mxu0 %v10521_v1 }
0x2b41   : > { %v6239_v18 = vpop.permute.xlu1 %6238  ;;  %9048 = vmatmul.mubr.msk.f32.vlgmr.msra.gmra.mrb[74].mxu1 %vm1840_vm5, %v11750_v13  ;;  %9053 = vmatmul.mubr.msk.f32.vlgmr.msra.gmra.mrb[60].mxu0 %vm1840_vm5, %v11748_v12 }
0x2b42   : > { %9056 = vmatpush3.xpose.msk.msra.mxu1 %vm1840_vm5, %v6239_v18  ;;  %9057 = vmatprep.mubr.msk.f32.mxu1 %vm10520_vm0, %v10521_v1  ;;  %v9541_v18 = vld [vmem:[%s12179_s6 + $0x18] sm:$0xff]  }
0x2b43   : > { %9062 = vmatprep.mubr.msk.f32.mxu0 %vm10520_vm0, %v10521_v1  ;;  %9065 = vmatprep.subr.mxu1 %v10521_v1 }
0x2b45   : > { %9058 = vmatmul.mubr.msk.f32.vlgmr.msra.gmra.mrb[76].mxu1 %vm1840_vm5, %v11756_v14 }
0x2b46   : > { %9067 = vmatprep.mubr.msk.f32.mxu1 %vm10520_vm0, %v10521_v1 }
0x2ba5   : > { %v6082_v19 = vpop.f32.mrb[72].mxu1 }
0x2ba6   : > { %v6314_v20 = vmul.f32 0.35355338, %v6082_v19  ;;  %v9044_v10 = vpop.f32.mrb[73].mxu1 }
0x2ba8   : > { %v6318_v21 = vsel %vm1640_vm6, %v6314_v20, -1e+09 }
0x2ba9   : > { %v6322_v22 = vsel %vm1840_vm5, %v6318_v21, -inf }
0x2baa   : > { %6323 = vmax.xlane.f32.xlu0 %v6322_v22 }
0x2c14   : > { %v6158_v23 = vpop.f32.mrb[74].mxu1  ;;  %v6234_v24 = vpop.f32.mrb[60].mxu0 }
0x2c15   : > { %v6315_v25 = vmul.f32 0.35355338, %v6158_v23  ;;  %v6316_v26 = vmul.f32 0.35355338, %v6234_v24  ;;  %v9049_v27 = vpop.f32.mrb[75].mxu1  ;;  %v9054_v28 = vpop.f32.mrb[61].mxu0 }
0x2c17   : > { %v6319_v29 = vsel %vm1640_vm6, %v6315_v25, -1e+09  ;;  %v6320_v47 = vsel %vm1640_vm6, %v6316_v26, -1e+09 }
0x2c18   : > { %v6310_v39 = vpop.f32.mrb[76].mxu1  ;;  %v6328_v31 = vsel %vm1840_vm5, %v6320_v47, -inf  ;;  %v6325_v32 = vsel %vm1840_vm5, %v6319_v29, -inf }
0x2c19   : > { %v6317_v33 = vmul.f32 0.35355338, %v6310_v39  ;;  %6329 = vmax.xlane.f32.xlu0 %v6328_v31  ;;  %6326 = vmax.xlane.f32.xlu1 %v6325_v32  ;;  %v9059_v34 = vpop.f32.mrb[77].mxu1  ;;  %v8485_v39 = vld [vmem:[#allocation19 + $0x1] ss:$0 sm:$0xff] }
0x2c1b   : > { %v6321_v35 = vsel %vm1640_vm6, %v6317_v33, -1e+09 }
0x2c1c   : > { %v6331_v36 = vsel %vm1840_vm5, %v6321_v35, -inf }
0x2c1d   : > { %6332 = vmax.xlane.f32.xlu0 %v6331_v36 }
0x2c2a   : > { %6366 = vrot.lane.b32.xlu1 %v5998_v6, %s12167_s15 }
0x2c37   : > { %v6324_v38 = vpop.xlane.xlu0 %6323 }
0x2c38   : > { %v6334_v41 = vsub.f32 %v6318_v21, %v6324_v38 }
0x2c3a   : > { %v6338_v42 = vmul.f32 1.442695, %v6334_v41  ;;  %v9542_v41 = vld [vmem:[%s12180_s26 + $0x10] sm:$0xff]  }
0x2c3c   : > { %9652 = vpow2.f32 %v6338_v42  ;;  %v9543_v42 = vld [vmem:[%s12180_s26 + $0x18] sm:$0xff]  }
0x2c46   : > { %v9653_v43 = vpop.eup %9652 }
0x2c47   : > { %v6346_v44 = vsel %vm1840_vm5, %v9653_v43, 0.0 }
0x2c4e   : > { %6347 = vadd.xlane.f32.xlu1 %v6346_v44 }
0x2ca6   : > { %v6330_v30 = vpop.xlane.xlu0 %6329  ;;  %v6327_v45 = vpop.xlane.xlu1 %6326 }
0x2ca7   : > { %v6336_v46 = vsub.f32 %v6320_v47, %v6330_v30  ;;  %v6335_v48 = vsub.f32 %v6319_v29, %v6327_v45 }
0x2ca9   : > { %v6342_v49 = vmul.f32 1.442695, %v6336_v46  ;;  %v6340_v11 = vmul.f32 1.442695, %v6335_v48  ;;  %v8499_v46 = vld [vmem:[#allocation20 + $0x1] ss:$0 sm:$0xff] }
0x2caa   : > { %v6367_v50 = vpop.permute.xlu1 %6366  ;;  %v6333_v51 = vpop.xlane.xlu0 %6332 }
0x2cab   : > { %9654 = vpow2.f32 %v6342_v49  ;;  %v6337_v54 = vsub.f32 %v6321_v35, %v6333_v51  ;;  %9061 = vmatpush3.msra.mxu0 %v6367_v50 }
0x2cac   : > { %9656 = vpow2.f32 %v6340_v11  ;;  %9070 = vmatprep.subr.mxu0 %v10521_v1 }
0x2cad   : > { %v6344_v55 = vmul.f32 1.442695, %v6337_v54 }
0x2caf   : > { %9658 = vpow2.f32 %v6344_v55 }
0x2cb5   : > { %v9655_v56 = vpop.eup %9654 }
0x2cb6   : > { %v9657_v57 = vpop.eup %9656  ;;  %v6352_v58 = vsel %vm1840_vm5, %v9655_v56, 0.0 }
0x2cb7   : > { %6353 = vadd.xlane.f32.xlu1 %v6352_v58  ;;  %v6349_v52 = vsel %vm1840_vm5, %v9657_v57, 0.0 }
0x2cb8   : > { %6350 = vadd.xlane.f32.xlu0 %v6349_v52  ;;  %v8489_v52 = vld [vmem:[#allocation29 + $0x1] ss:$0 sm:$0xff] }
0x2cb9   : > { %v9659_v59 = vpop.eup %9658 }
0x2cba   : > { %v6355_v60 = vsel %vm1840_vm5, %v9659_v59, 0.0 }
0x2cbc   : > { %6356 = vadd.xlane.f32.xlu0 %v6355_v60 }
0x2cc8   : > { %6518 = vrot.lane.b32.xlu1 %v11748_v12, %s12167_s15 }
0x2ccc   : > { %6594 = vrot.lane.b32.xlu1 %v11756_v14, %s12167_s15 }
0x2cd2   : > { %6442 = vrot.lane.b32.xlu0 %v11750_v13, %s12167_s15 }
0x2cdb   : > { %v6348_v61 = vpop.xlane.xlu1 %6347 }
0x2cdc   : > { %9660 = vrcp.f32 %v6348_v61  ;;  %v8490_v61 = vld [vmem:[#allocation31 + $0x1] ss:$0 sm:$0xff] }
0x2ce6   : > { %v9661_v62 = vpop.eup %9660 }
0x2ce7   : > { %v6362_v63 = vmul.f32 %v9661_v62, %v9653_v43 }
0x2ce9   : > { %9063 = vmatmul.mubr.msk.f32.vlgmr.msra.gmra.mrb[62].mxu0 %vm1840_vm5, %v6362_v63 }
0x2cea   : > { %9072 = vmatprep.mubr.msk.f32.mxu0 %vm10520_vm0, %v10521_v1 }
0x2d44   : > { %v6354_v2 = vpop.xlane.xlu1 %6353 }
0x2d45   : > { %9662 = vrcp.f32 %v6354_v2  ;;  %v6351_v3 = vpop.xlane.xlu0 %6350 }
0x2d46   : > { %9664 = vrcp.f32 %v6351_v3 }
0x2d48   : > { %v6519_v0 = vpop.permute.xlu1 %6518 }
0x2d49   : > { %v6357_v4 = vpop.xlane.xlu0 %6356  ;;  %9071 = vmatpush3.msra.mxu0 %v6519_v0 }
0x2d4a   : > { %9666 = vrcp.f32 %v6357_v4  ;;  %9080 = vmatprep.subr.bf16.mxu0 %v10521_v1 }
0x2d4c   : > { %v6595_v12 = vpop.permute.xlu1 %6594 }
0x2d4d   : > { %v6443_v5 = vpop.permute.xlu0 %6442 }
0x2d4e   : > { %9066 = vmatpush3.msra.mxu1 %v6443_v5 }
0x2d4f   : > { %v9663_v6 = vpop.eup %9662  ;;  %9075 = vmatprep.subr.mxu1 %v10521_v1 }
0x2d50   : > { %v9665_v37 = vpop.eup %9664  ;;  %v6364_v8 = vmul.f32 %v9663_v6, %v9655_v56 }
0x2d51   : > { %v6363_v9 = vmul.f32 %v9665_v37, %v9657_v57 }
0x2d52   : > { %9073 = vmatmul.mubr.msk.f32.vlgmr.msra.gmra.mrb[64].mxu0 %vm1840_vm5, %v6364_v8 }
0x2d53   : > { %9068 = vmatmul.mubr.msk.f32.vlgmr.msra.gmra.mrb[78].mxu1 %vm1840_vm5, %v6363_v9  ;;  %9084 = vmatprep.mubr.msk.bf16.mxu0 %vm10520_vm0, %v10521_v1 }
0x2d54   : > { %v9667_v13 = vpop.eup %9666  ;;  %9076 = vmatpush3.msra.mxu1 %v6595_v12  ;;  %9077 = vmatprep.mubr.msk.f32.mxu1 %vm10520_vm0, %v10521_v1 }
0x2d55   : > { %v6365_v14 = vmul.f32 %v9667_v13, %v9659_v59  ;;  %9088 = vmatprep.subr.bf16.mxu1 %v10521_v1  ;;  %9081 = vmatpush3.bf16.msra.mxu0 %v9540_v17 }
0x2d56   : > { %9082 = vmatprep.subr.bf16.mxu0 %v10521_v1 }
0x2d57   : > { %9078 = vmatmul.mubr.msk.f32.vlgmr.msra.gmra.mrb[80].mxu1 %vm1840_vm5, %v6365_v14 }
0x2d58   : > { %9092 = vmatprep.mubr.msk.bf16.mxu1 %vm10520_vm0, %v10521_v1  ;;  %9089 = vmatpush3.bf16.msra.mxu1 %v9542_v41 }
0x2d59   : > { %9083 = vmatpush3.bf16.msra.mxu0 %v9541_v18  ;;  %9090 = vmatprep.subr.bf16.mxu1 %v10521_v1 }
0x2d5a   : > { %9096 = vmatprep.subr.bf16.mxu0 %v10521_v1 }
0x2d5c   : > { %9091 = vmatpush3.bf16.msra.mxu1 %v9543_v42 }
0x2d5d   : > { %9104 = vmatprep.subr.mxu1 %v10521_v1 }
0x2dbc   : > { %v6438_v15 = vpop.f32.mrb[62].mxu0 }
0x2dbd   : > { %v9064_v16 = vpop.f32.mrb[63].mxu0 }
0x2e25   : > { %v6590_v19 = vpop.f32.mrb[64].mxu0 }
0x2e26   : > { %v6514_v20 = vpop.f32.mrb[78].mxu1  ;;  %6675 = vrot.lane.b32.xlu1 %v6590_v19, %s12168_s18  ;;  %v9074_v10 = vpop.f32.mrb[65].mxu0 }
0x2e27   : > { %6671 = vrot.lane.b32.xlu0 %v6514_v20, %s12169_s10  ;;  %v9069_v21 = vpop.f32.mrb[79].mxu1 }
0x2e2a   : > { %v6666_v22 = vpop.f32.mrb[80].mxu1 }
0x2e2b   : > { %6679 = vrot.lane.b32.xlu0 %v6666_v22, %s12170_s9  ;;  %v9079_v23 = vpop.f32.mrb[81].mxu1 }
0x2e98   : > { %v6676_v25 = vpop.permute.xlu1 %6675 }
0x2e99   : > { %v6672_v24 = vpop.permute.xlu0 %6671 }
0x2e9a   : > { %v6682_v26 = vsel %vm1840_vm5, %v6438_v15, %v6672_v24 }
0x2e9b   : > { %v6683_v27 = vsel %vm1644_vm1, %v6682_v26, %v6676_v25 }
0x2e9d   : > { %v6680_v28 = vpop.permute.xlu0 %6679 }
0x2e9e   : > { %v6684_v29 = vsel %vm2519_vm8, %v6683_v27, %v6680_v28 }
0x2e9f   : > { %v6685_v47 = vpack.c.bf16 %v6684_v29, %v6684_v29 }
0x2ea1   : > { %9085 = vmatmul.mubr.msk.bf16.vlgmr.msra.gmra.mrb[68].mxu0 %vm1723_vm2, %v6685_v47 }
0x2ea2   : > { %9100 = vmatprep.mubr.msk.bf16.mxu0 %vm10520_vm0, %v10521_v1 }
0x2f74   : > { %v6741_v31 = vpop.f32.mrb[68].mxu0 }
0x2f75   : > { %v6742_v32 = vadd.f32 %v8485_v39, %v6741_v31  ;;  %v9086_v33 = vpop.f32.mrb[69].mxu0 }
0x2f76   : > { %v6744_v34 = vpop.f32.mrb[70].mxu0 }
0x2f77   : > { %v11836_v35 = vadd.f32 %v6742_v32, %v11731_v40  ;;  %v9087_v36 = vpop.f32.mrb[71].mxu0 }
0x2f79   : > { %v6752_v38 = vsel %vm1723_vm2, %v11836_v35, 0.0 }
0x2f7a   : > { %6753 = vadd.xlane.f32.xlu1 %v6752_v38 }
0x2f8b   : > { %6864 = vrot.lane.b32.xlu1 %v9543_v42, %s12177_s2 }
0x2f8f   : > { %6868 = vrot.lane.b32.xlu1 %v8499_v46, %s12177_s2 }
0x3007   : > { %v6754_v43 = vpop.xlane.xlu1 %6753 }
0x3008   : > { %v6755_v44 = vmul.f32 0.03125, %v6754_v43 }
0x300a   : > { %v6756_v40 = vsub.f32 %v11836_v35, %v6755_v44 }
0x300b   : > { %v6865_v50 = vpop.permute.xlu1 %6864 }
0x300c   : > { %v6757_v30 = vmul.f32 %v6756_v40, %v6756_v40  ;;  %v6777_v59 = vmul.f32 %v8489_v52, %v6756_v40 }
0x300e   : > { %v6758_v45 = vsel %vm1723_vm2, %v6757_v30, 0.0 }
0x300f   : > { %6759 = vadd.xlane.f32.xlu0 %v6758_v45 }
0x3025   : > { %6862 = vrot.lane.b32.xlu0 %v9542_v41, %s12177_s2 }
0x309c   : > { %v6760_v48 = vpop.xlane.xlu0 %6759 }
0x309d   : > { %v6761_v49 = vmul.f32 0.032258064, %v6760_v48 }
0x309f   : > { %9668 = vrsqrt.f32 %v6761_v49  ;;  %vm6764_vm6 = vcmp.eq.f32.partialorder %v6761_v49, inf  ;;  %v6767_v55 = vand.u32 2147483648, %v6761_v49  ;;  %vm6766_vm9 = vcmp.eq.f32.partialorder %v6761_v49, 0.0 }
0x30a0   : > { %v6863_v11 = vpop.permute.xlu0 %6862 }
0x30a1   : > { %9097 = vmatpush3.bf16.msra.mxu0 %v6863_v11 }
0x30a2   : > { %9098 = vmatprep.subr.bf16.mxu0 %v10521_v1 }
0x30a5   : > { %9099 = vmatpush3.bf16.msra.mxu0 %v6865_v50 }
0x30a6   : > { %9114 = vmatprep.subr.mxu0 %v10521_v1 }
0x30a8   : > { %9101 = vmatmul.mubr.msk.bf16.vlgmr.msra.gmra.mrb[72].mxu0 %vm1723_vm2, %v11608_v7  ;;  %v6869_v7 = vpop.permute.xlu1 %6868 }
0x30a9   : > { %v9669_v51 = vpop.eup %9668  ;;  %9116 = vmatprep.mubr.msk.f32.mxu0 %vm10520_vm0, %v10521_v1 }
0x30aa   : > { %v6763_v54 = vmul.f32 %v9669_v51, %v6761_v49 }
0x30ac   : > { %v6765_v56 = vsel %vm6764_vm6, %v6761_v49, %v6763_v54 }
0x30ad   : > { %v6768_v57 = vsel %vm6766_vm9, %v6767_v55, %v6765_v56 }
0x30ae   : > { %v6769_v58 = vadd.f32 1e-06, %v6768_v57 }
0x30b0   : > { %9670 = vrcp.f32 %v6769_v58 }
0x30ba   : > { %v9671_v60 = vpop.eup %9670 }
0x30bb   : > { %v6778_v62 = vmul.f32 %v9671_v60, %v6777_v59 }
0x30bd   : > { %v6785_v63 = vadd.f32 %v8490_v61, %v6778_v62 }
0x30bf   : > { %v6800_v2 = vpack.c.bf16 %v6785_v63, %v6785_v63 }
0x30c1   : > { %9093 = vmatmul.mubr.msk.bf16.vlgmr.msra.gmra.mrb[84].mxu1 %vm1723_vm2, %v6800_v2 }
0x30c2   : > { %9106 = vmatprep.mubr.msk.f32.mxu1 %vm10520_vm0, %v10521_v1 }
0x317b   : > { %v6905_v3 = vpop.f32.mrb[72].mxu0 }
0x317c   : > { %v6906_v0 = vadd.f32 %v6905_v3, %v6869_v7  ;;  %v9102_v4 = vpop.f32.mrb[73].mxu0 }
0x317d   : > { %v6908_v5 = vpop.f32.mrb[74].mxu0 }
0x317e   : > { %6923 = vrot.lane.b32.xlu1 %v6906_v0, %s12166_s0  ;;  %6919 = vrot.lane.b32.xlu0 %v6906_v0, %s12176_s1  ;;  %v9103_v6 = vpop.f32.mrb[75].mxu0 }
0x317f   : > { %9105 = vmatpush3.xpose.msk.msra.mxu1 %vm1840_vm5, %v6906_v0 }
0x3180   : > { %9109 = vmatprep.subr.mxu1 %v10521_v1 }
0x3182   : > { %6921 = vrot.lane.b32.xlu0 %v6906_v0, %s12175_s4 }
0x3194   : > { %v6856_v37 = vpop.f32.mrb[84].mxu1 }
0x3195   : > { %v6857_v8 = vadd.f32 %v8499_v46, %v6856_v37  ;;  %v9094_v9 = vpop.f32.mrb[85].mxu1 }
0x3196   : > { %v6859_v12 = vpop.f32.mrb[86].mxu1 }
0x3197   : > { %6914 = vrot.lane.b32.xlu0 %v6857_v8, %s12175_s4  ;;  %6912 = vrot.lane.b32.xlu1 %v6857_v8, %s12176_s1  ;;  %v9095_v13 = vpop.f32.mrb[87].mxu1 }
0x3198   : > { %9107 = vmatmul.mubr.msk.f32.vlgmr.msra.gmra.mrb[82].mxu1 %vm1840_vm5, %v6857_v8 }
0x3199   : > { %9111 = vmatprep.mubr.msk.f32.mxu1 %vm10520_vm0, %v10521_v1 }
0x319b   : > { %6916 = vrot.lane.b32.xlu1 %v6857_v8, %s12166_s0 }
0x31f0   : > { %v11869_v14 = vpop.permute.xlu0 %6919  ;;  %v11879_v16 = vpop.permute.xlu1 %6923 }
0x31f1   : > { %9110 = vmatpush3.xpose.msk.msra.mxu1 %vm1840_vm5, %v11869_v14 }
0x31f2   : > { %9119 = vmatprep.subr.mxu1 %v10521_v1 }
0x31f4   : > { %v11874_v15 = vpop.permute.xlu0 %6921 }
0x31f5   : > { %9115 = vmatpush3.xpose.msk.msra.mxu0 %vm1840_vm5, %v11874_v15 }
0x31f6   : > { %9124 = vmatprep.subr.mxu0 %v10521_v1 }
0x3209   : > { %v6915_v17 = vpop.permute.xlu0 %6914  ;;  %v6913_v18 = vpop.permute.xlu1 %6912 }
0x320a   : > { %9112 = vmatmul.mubr.msk.f32.vlgmr.msra.gmra.mrb[88].mxu1 %vm1840_vm5, %v6913_v18  ;;  %9117 = vmatmul.mubr.msk.f32.vlgmr.msra.gmra.mrb[66].mxu0 %vm1840_vm5, %v6915_v17  ;;  %v9545_v17 = vld [vmem:[%s12181_s8 + $0x18] sm:$0xff]  }
0x320b   : > { %9120 = vmatpush3.xpose.msk.msra.mxu1 %vm1840_vm5, %v11879_v16  ;;  %9121 = vmatprep.mubr.msk.f32.mxu1 %vm10520_vm0, %v10521_v1 }
0x320c   : > { %9126 = vmatprep.mubr.msk.f32.mxu0 %vm10520_vm0, %v10521_v1  ;;  %9129 = vmatprep.subr.mxu1 %v10521_v1 }
0x320d   : > { %v6917_v19 = vpop.permute.xlu1 %6916 }
0x320e   : > { %9122 = vmatmul.mubr.msk.f32.vlgmr.msra.gmra.mrb[90].mxu1 %vm1840_vm5, %v6917_v19 }
0x320f   : > { %9131 = vmatprep.mubr.msk.f32.mxu1 %vm10520_vm0, %v10521_v1 }
0x326b   : > { %v6995_v20 = vpop.f32.mrb[82].mxu1 }
0x326c   : > { %v7221_v10 = vmul.f32 0.35355338, %v6995_v20  ;;  %v9108_v21 = vpop.f32.mrb[83].mxu1 }
0x326e   : > { %v7225_v22 = vsel %vm2152_vm7, %v7221_v10, -1e+09 }
0x326f   : > { %v7229_v23 = vsel %vm1840_vm5, %v7225_v22, -inf }
0x3270   : > { %7230 = vmax.xlane.f32.xlu0 %v7229_v23 }
0x32dd   : > { %v7069_v24 = vpop.f32.mrb[88].mxu1  ;;  %v7143_v25 = vpop.f32.mrb[66].mxu0 }
0x32de   : > { %v7222_v26 = vmul.f32 0.35355338, %v7069_v24  ;;  %v7223_v27 = vmul.f32 0.35355338, %v7143_v25  ;;  %v9113_v28 = vpop.f32.mrb[89].mxu1  ;;  %v9118_v29 = vpop.f32.mrb[67].mxu0 }
0x32e0   : > { %v7226_v47 = vsel %vm2152_vm7, %v7222_v26, -1e+09  ;;  %v7227_v39 = vsel %vm2152_vm7, %v7223_v27, -1e+09 }
0x32e1   : > { %v7217_v31 = vpop.f32.mrb[90].mxu1  ;;  %v7235_v32 = vsel %vm1840_vm5, %v7227_v39, -inf  ;;  %v7232_v33 = vsel %vm1840_vm5, %v7226_v47, -inf }
0x32e2   : > { %v7224_v34 = vmul.f32 0.35355338, %v7217_v31  ;;  %7236 = vmax.xlane.f32.xlu0 %v7235_v32  ;;  %7233 = vmax.xlane.f32.xlu1 %v7232_v33  ;;  %v9123_v36 = vpop.f32.mrb[91].mxu1 }
0x32e4   : > { %v7228_v38 = vsel %vm2152_vm7, %v7224_v34, -1e+09 }
0x32e5   : > { %v7238_v41 = vsel %vm1840_vm5, %v7228_v38, -inf }
0x32e6   : > { %7239 = vmax.xlane.f32.xlu0 %v7238_v41 }
0x32f3   : > { %7273 = vrot.lane.b32.xlu1 %v6906_v0, %s12177_s2 }
0x32fd   : > { %v7231_v42 = vpop.xlane.xlu0 %7230 }
0x32fe   : > { %v7241_v43 = vsub.f32 %v7225_v22, %v7231_v42 }
0x3300   : > { %v7245_v44 = vmul.f32 1.442695, %v7241_v43 }
0x3302   : > { %9672 = vpow2.f32 %v7245_v44 }
0x330c   : > { %v9673_v40 = vpop.eup %9672 }
0x330d   : > { %v7253_v30 = vsel %vm1840_vm5, %v9673_v40, 0.0 }
0x3317   : > { %7254 = vadd.xlane.f32.xlu1 %v7253_v30  ;;  %v9546_v30 = vld [vmem:[%s12182_s11 + $0x10] sm:$0xff]  }
0x336f   : > { %v7237_v45 = vpop.xlane.xlu0 %7236  ;;  %v7234_v46 = vpop.xlane.xlu1 %7233 }
0x3370   : > { %v7243_v48 = vsub.f32 %v7227_v39, %v7237_v45  ;;  %v7242_v49 = vsub.f32 %v7226_v47, %v7234_v46  ;;  %v8516_v47 = vld [vmem:[#allocation22 + $0x1] ss:$0 sm:$0xff]  ;;  %v9548_v46 = vld [vmem:[%s12183_s12 + $0x20] sm:$0xff]  }
0x3371   : > { %v9547_v45 = vld [vmem:[%s12182_s11 + $0x18] sm:$0xff]  }
0x3372   : > { %v7249_v11 = vmul.f32 1.442695, %v7243_v48  ;;  %v7247_v53 = vmul.f32 1.442695, %v7242_v49 }
0x3373   : > { %v7274_v50 = vpop.permute.xlu1 %7273  ;;  %v7240_v51 = vpop.xlane.xlu0 %7239 }
0x3374   : > { %9674 = vpow2.f32 %v7249_v11  ;;  %v7244_v54 = vsub.f32 %v7228_v38, %v7240_v51  ;;  %9125 = vmatpush3.msra.mxu0 %v7274_v50 }
0x3375   : > { %9676 = vpow2.f32 %v7247_v53  ;;  %9134 = vmatprep.subr.mxu0 %v10521_v1 }
0x3376   : > { %v7251_v55 = vmul.f32 1.442695, %v7244_v54 }
0x3378   : > { %9678 = vpow2.f32 %v7251_v55 }
0x337e   : > { %v9675_v56 = vpop.eup %9674 }
0x337f   : > { %v9677_v57 = vpop.eup %9676  ;;  %v7259_v58 = vsel %vm1840_vm5, %v9675_v56, 0.0 }
0x3380   : > { %7260 = vadd.xlane.f32.xlu1 %v7259_v58  ;;  %v7256_v52 = vsel %vm1840_vm5, %v9677_v57, 0.0 }
0x3381   : > { %7257 = vadd.xlane.f32.xlu0 %v7256_v52  ;;  %v8521_v52 = vld [vmem:[#allocation34 + $0x1] ss:$0 sm:$0xff] }
0x3382   : > { %v9679_v59 = vpop.eup %9678 }
0x3383   : > { %v7262_v60 = vsel %vm1840_vm5, %v9679_v59, 0.0 }
0x3385   : > { %7263 = vadd.xlane.f32.xlu0 %v7262_v60 }
0x3391   : > { %7425 = vrot.lane.b32.xlu1 %v11874_v15, %s12177_s2 }
0x3395   : > { %7501 = vrot.lane.b32.xlu1 %v11879_v16, %s12177_s2  ;;  %v9544_v16 = vld [vmem:[%s12181_s8 + $0x10] sm:$0xff]  }
0x339b   : > { %7349 = vrot.lane.b32.xlu0 %v11869_v14, %s12177_s2  ;;  %s1618_s2 = sand.u32 1, %s10442_s16  }
0x339c   : > { %s7887_s4 = scalar_lea.sflag [#allocation4], %s1618_s2 }
0x33a4   : > { %v7255_v61 = vpop.xlane.xlu1 %7254 }
0x33a5   : > { %9680 = vrcp.f32 %v7255_v61 }
0x33af   : > { %v9681_v62 = vpop.eup %9680 }
0x33b0   : > { %v7269_v63 = vmul.f32 %v9681_v62, %v9673_v40  ;;  %v9550_v62 = vld [vmem:[%s12183_s12 + $0x30] sm:$0xff]  }
0x33b2   : > { %9127 = vmatmul.mubr.msk.f32.vlgmr.msra.gmra.mrb[76].mxu0 %vm1840_vm5, %v7269_v63  ;;  %v9551_v63 = vld [vmem:[%s12183_s12 + $0x38] sm:$0xff]  }
0x33b3   : > { %9136 = vmatprep.mubr.msk.f32.mxu0 %vm10520_vm0, %v10521_v1 }
0x340d   : > { %v7261_v2 = vpop.xlane.xlu1 %7260 }
0x340e   : > { %9682 = vrcp.f32 %v7261_v2  ;;  %v7258_v7 = vpop.xlane.xlu0 %7257  ;;  %v8534_v2 = vld [vmem:[#allocation23 + $0x1] ss:$0 sm:$0xff] }
0x340f   : > { %9684 = vrcp.f32 %v7258_v7 }
0x3411   : > { %v7426_v3 = vpop.permute.xlu1 %7425 }
0x3412   : > { %v7264_v0 = vpop.xlane.xlu0 %7263  ;;  %9135 = vmatpush3.msra.mxu0 %v7426_v3 }
0x3413   : > { %9686 = vrcp.f32 %v7264_v0  ;;  %9144 = vmatprep.subr.bf16.mxu0 %v10521_v1 }
0x3415   : > { %v7502_v9 = vpop.permute.xlu1 %7501 }
0x3416   : > { %v7350_v4 = vpop.permute.xlu0 %7349 }
0x3417   : > { %9130 = vmatpush3.msra.mxu1 %v7350_v4 }
0x3418   : > { %v9683_v5 = vpop.eup %9682  ;;  %9139 = vmatprep.subr.mxu1 %v10521_v1 }
0x3419   : > { %v9685_v6 = vpop.eup %9684  ;;  %v7271_v37 = vmul.f32 %v9683_v5, %v9675_v56  ;;  %v8520_v56 = vld [vmem:[#allocation32 + $0x1] ss:$0 sm:$0xff] }
0x341a   : > { %v7270_v8 = vmul.f32 %v9685_v6, %v9677_v57 }
0x341b   : > { %9137 = vmatmul.mubr.msk.f32.vlgmr.msra.gmra.mrb[78].mxu0 %vm1840_vm5, %v7271_v37 }
0x341c   : > { %9132 = vmatmul.mubr.msk.f32.vlgmr.msra.gmra.mrb[92].mxu1 %vm1840_vm5, %v7270_v8  ;;  %9148 = vmatprep.mubr.msk.bf16.mxu0 %vm10520_vm0, %v10521_v1  ;;  %v8538_v8 = vld [vmem:[#allocation25 + $0x1] ss:$0 sm:$0xff] }
0x341d   : > { %v9687_v12 = vpop.eup %9686  ;;  %9140 = vmatpush3.msra.mxu1 %v7502_v9  ;;  %9141 = vmatprep.mubr.msk.f32.mxu1 %vm10520_vm0, %v10521_v1 }
0x341e   : > { %v7272_v13 = vmul.f32 %v9687_v12, %v9679_v59  ;;  %9152 = vmatprep.subr.bf16.mxu1 %v10521_v1  ;;  %9145 = vmatpush3.bf16.msra.mxu0 %v9544_v16 }
0x341f   : > { %9146 = vmatprep.subr.bf16.mxu0 %v10521_v1 }
0x3420   : > { %9142 = vmatmul.mubr.msk.f32.vlgmr.msra.gmra.mrb[94].mxu1 %vm1840_vm5, %v7272_v13 }
0x3421   : > { %9156 = vmatprep.mubr.msk.bf16.mxu1 %vm10520_vm0, %v10521_v1  ;;  %9153 = vmatpush3.bf16.msra.mxu1 %v9546_v30 }
0x3422   : > { %9147 = vmatpush3.bf16.msra.mxu0 %v9545_v17  ;;  %9154 = vmatprep.subr.bf16.mxu1 %v10521_v1 }
0x3423   : > { %9160 = vmatprep.subr.bf16.mxu0 %v10521_v1 }
0x3425   : > { %9155 = vmatpush3.bf16.msra.mxu1 %v9547_v45 }
0x3485   : > { %v7345_v14 = vpop.f32.mrb[76].mxu0 }
0x3486   : > { %v9128_v15 = vpop.f32.mrb[77].mxu0 }
0x34ee   : > { %v7497_v18 = vpop.f32.mrb[78].mxu0 }
0x34ef   : > { %v7421_v19 = vpop.f32.mrb[92].mxu1  ;;  %7582 = vrot.lane.b32.xlu1 %v7497_v18, %s12168_s18  ;;  %v9138_v20 = vpop.f32.mrb[79].mxu0 }
0x34f0   : > { %7578 = vrot.lane.b32.xlu0 %v7421_v19, %s12169_s10  ;;  %v9133_v10 = vpop.f32.mrb[93].mxu1  ;;  %s8305_s10 = sshll.u32 %s1618_s2, 3 }
0x34f1   : > { %s1620_s18 = scalar_lea.vmem [#allocation38], %s8305_s10 }
0x34f2   : > { %s7900_s0 = sshll.u32 %s1620_s18, 4  ;;  %s11967_s0 = int_to_ptr.vmem [resolvable:$true] %s7900_s0 }
0x34f3   : > { %v7573_v21 = vpop.f32.mrb[94].mxu1  ;;  %s10340_s1 = scalar_lea.vmem %s11967_s0, 128 }
0x34f4   : > { %7586 = vrot.lane.b32.xlu0 %v7573_v21, %s12170_s9  ;;  %v9143_v22 = vpop.f32.mrb[95].mxu1  ;;  %s8547_s9 = sshll.u32 %s10773_s22, 7  ;;  %p10341_p8 = scmp.ne.s32.totalorder %s11967_s0, %s10340_s1 }
0x34f5   : > { %s11965_s15 = scalar_lea.hbm %s10750_s3, %s8547_s9  ;;  %s10531_s22 = smov [#allocation38]  }
0x34f6   : > { %p10342_p13 = pnand %p10341_p8, %p12184_p11  ;;  %s10344_s10 = sshll.u32 %s10531_s22, 4  ;;  %s10345_s10 = int_to_ptr.vmem [resolvable:$false] %s10344_s10 }
0x34f7   : > { %s10346_s5 = scalar_lea.vmem %s10345_s10, 256  ;;  %p10347_p5 = scmp.lt.s32.totalorder %s11967_s0, %s10345_s10 }
0x34f8   : > { %p10343_p6 = pneg %p10342_p13  ;;  %p10348_p0 = scmp.lt.s32.totalorder %s10346_s5, %s10340_s1 }
0x34fa   : > { %p10349_p9 = por %p10348_p0, %p10347_p5 }
0x34fc   : > { %p10350_p10 = pnand %p10349_p9, %p10343_p6 }
0x3561   : > { %v7583_v24 = vpop.permute.xlu1 %7582 }
0x3562   : > { %v7579_v23 = vpop.permute.xlu0 %7578 }
0x3563   : > { %v7589_v25 = vsel %vm1840_vm5, %v7345_v14, %v7579_v23 }
0x3564   : > { %v7590_v26 = vsel %vm1644_vm1, %v7589_v25, %v7583_v24 }
0x3566   : > { %v7587_v27 = vpop.permute.xlu0 %7586 }
0x3567   : > { %v7591_v28 = vsel %vm2519_vm8, %v7590_v26, %v7587_v27 }
0x3568   : > { %v7592_v29 = vpack.c.bf16 %v7591_v28, %v7591_v28 }
0x356a   : > { %9149 = vmatmul.mubr.msk.bf16.vlgmr.msra.gmra.mrb[80].mxu0 %vm1723_vm2, %v7592_v29  ;;  %v8544_v29 = vld [vmem:[#allocation35] ss:$0 sm:$0xff] }
0x356b   : > { %9168 = vmatprep.mubr.msk.bf16.mxu0 %vm10520_vm0, %v10521_v1  ;;  %9161 = vmatpush3.bf16.msra.mxu0 %v9548_v46 }
0x356c   : > { %9162 = vmatprep.subr.bf16.mxu0 %v10521_v1 }
0x363d   : > { %v7648_v39 = vpop.f32.mrb[80].mxu0 }
0x363e   : > { %v7649_v31 = vadd.f32 %v8516_v47, %v7648_v39  ;;  %v9150_v32 = vpop.f32.mrb[81].mxu0 }
0x363f   : > { %v7651_v33 = vpop.f32.mrb[82].mxu0 }
0x3640   : > { %v7654_v34 = vadd.f32 %v7649_v31, %v11836_v35  ;;  %v9151_v36 = vpop.f32.mrb[83].mxu0  ;;  %v9549_v35 = vld [vmem:[%s12183_s12 + $0x28] sm:$0xff]  }
0x3641   : > { %9163 = vmatpush3.bf16.msra.mxu0 %v9549_v35  ;;  %v8545_v31 = vld [vmem:[#allocation37] ss:$0 sm:$0xff] }
0x3642   : > { %v7659_v38 = vsel %vm1723_vm2, %v7654_v34, 0.0  ;;  %9164 = vmatprep.subr.bf16.mxu0 %v10521_v1 }
0x3643   : > { %7660 = vadd.xlane.f32.xlu1 %v7659_v38 }
0x3645   : > { %9165 = vmatpush3.bf16.msra.mxu0 %v9550_v62 }
0x3646   : > { %9166 = vmatprep.subr.bf16.mxu0 %v10521_v1 }
0x3649   : > { %9167 = vmatpush3.bf16.msra.mxu0 %v9551_v63 }
0x36d0   : > { %v7661_v41 = vpop.xlane.xlu1 %7660 }
0x36d1   : > { %v7662_v42 = vmul.f32 0.03125, %v7661_v41 }
0x36d3   : > { %v7663_v43 = vsub.f32 %v7654_v34, %v7662_v42 }
0x36d5   : > { %v7664_v44 = vmul.f32 %v7663_v43, %v7663_v43  ;;  %v7684_v57 = vmul.f32 %v8520_v56, %v7663_v43 }
0x36d7   : > { %v7665_v40 = vsel %vm1723_vm2, %v7664_v44, 0.0 }
0x36d8   : > { %7666 = vadd.xlane.f32.xlu0 %v7665_v40 }
0x3765   : > { %v7667_v48 = vpop.xlane.xlu0 %7666 }
0x3766   : > { %v7668_v49 = vmul.f32 0.032258064, %v7667_v48 }
0x3768   : > { %9688 = vrsqrt.f32 %v7668_v49  ;;  %vm7671_vm0 = vcmp.eq.f32.partialorder %v7668_v49, inf  ;;  %v7674_v50 = vand.u32 2147483648, %v7668_v49  ;;  %vm7673_vm1 = vcmp.eq.f32.partialorder %v7668_v49, 0.0 }
0x3772   : > { %v9689_v11 = vpop.eup %9688 }
0x3773   : > { %v7670_v53 = vmul.f32 %v9689_v11, %v7668_v49 }
0x3775   : > { %v7672_v51 = vsel %vm7671_vm0, %v7668_v49, %v7670_v53 }
0x3776   : > { %v7675_v54 = vsel %vm7673_vm1, %v7674_v50, %v7672_v51 }
0x3777   : > { %v7676_v55 = vadd.f32 1e-06, %v7675_v54 }
0x3779   : > { %9690 = vrcp.f32 %v7676_v55 }
0x3783   : > { %v9691_v58 = vpop.eup %9690 }
0x3784   : > { %v7685_v59 = vmul.f32 %v9691_v58, %v7684_v57 }
0x3786   : > { %v7692_v60 = vadd.f32 %v8521_v52, %v7685_v59 }
0x3788   : > { %v7711_v61 = vpack.c.bf16 %v7692_v60, %v7692_v60 }
0x378a   : > { %9157 = vmatmul.mubr.msk.bf16.vlgmr.msra.gmra.mrb[96].mxu1 %vm1723_vm2, %v7711_v61 }
0x385d   : > { %v7767_v7 = vpop.f32.mrb[96].mxu1 }
0x385e   : > { %v7768_v3 = vadd.f32 %v8534_v2, %v7767_v7  ;;  %v9158_v0 = vpop.f32.mrb[97].mxu1 }
0x385f   : > { %v7770_v4 = vpop.f32.mrb[98].mxu1 }
0x3860   : > { %v7773_v5 = vmax.f32 %v7768_v3, 0.0  ;;  %v9159_v6 = vpop.f32.mrb[99].mxu1 }
0x3862   : > { %v7774_v37 = vpack.c.bf16 %v7773_v5, %v7773_v5 }
0x3864   : > { %9169 = vmatmul.mubr.msk.bf16.vlgmr.msra.gmra.mrb[84].mxu0 %vm2728_vm11, %v7774_v37 }
0x3937   : > { %v7842_v9 = vpop.f32.mrb[84].mxu0 }
0x3938   : > { %v7843_v12 = vadd.f32 %v8538_v8, %v7842_v9  ;;  %v9170_v13 = vpop.f32.mrb[85].mxu0 }
0x3939   : > { %v7845_v14 = vpop.f32.mrb[86].mxu0 }
0x393a   : > { %v7848_v15 = vadd.f32 %v7843_v12, %v7654_v34  ;;  %v9171_v16 = vpop.f32.mrb[87].mxu0 }
0x393c   : > { %v7851_v1 = vsel %vm1723_vm2, %v7848_v15, 0.0 }
0x393d   : > { %7852 = vadd.xlane.f32.xlu0 %v7851_v1 }
0x39ca   : > { %v7853_v17 = vpop.xlane.xlu0 %7852 }
0x39cb   : > { %v7854_v18 = vmul.f32 0.03125, %v7853_v17 }
0x39cd   : > { %v7855_v19 = vsub.f32 %v7848_v15, %v7854_v18 }
0x39cf   : > { %v7856_v20 = vmul.f32 %v7855_v19, %v7855_v19  ;;  %v7876_v47 = vmul.f32 %v8544_v29, %v7855_v19 }
0x39d1   : > { %v7857_v10 = vsel %vm1723_vm2, %v7856_v20, 0.0 }
0x39d2   : > { %7858 = vadd.xlane.f32.xlu1 %v7857_v10 }
0x3a5f   : > { %v7859_v21 = vpop.xlane.xlu1 %7858 }
0x3a60   : > { %v7860_v22 = vmul.f32 0.032258064, %v7859_v21 }
0x3a62   : > { %9692 = vrsqrt.f32 %v7860_v22  ;;  %vm7863_vm5 = vcmp.eq.f32.partialorder %v7860_v22, inf  ;;  %v7866_v25 = vand.u32 2147483648, %v7860_v22  ;;  %vm7865_vm7 = vcmp.eq.f32.partialorder %v7860_v22, 0.0 }
0x3a6c   : > { %v9693_v23 = vpop.eup %9692 }
0x3a6d   : > { %v7862_v24 = vmul.f32 %v9693_v23, %v7860_v22 }
0x3a6f   : > { %v7864_v26 = vsel %vm7863_vm5, %v7860_v22, %v7862_v24 }
0x3a70   : > { %v7867_v27 = vsel %vm7865_vm7, %v7866_v25, %v7864_v26 }
0x3a71   : > { %v7868_v28 = vadd.f32 1e-06, %v7867_v27 }
0x3a73   : > { %9694 = vrcp.f32 %v7868_v28 }
0x3a7d   : > { %v9695_v39 = vpop.eup %9694 }
0x3a7e   : > { %v7877_v32 = vmul.f32 %v9695_v39, %v7876_v47 }
0x3a80   : > { %v7884_v33 = vadd.f32 %v8545_v31, %v7877_v32 }
0x3a82   : > { %7885 = vst.msk [vmem:[%s1620_s18] sm:$0xff] %vm1723_vm2, %v7884_v33 }
0x3a83   : > { %10353 = shalt.err (!%p10350_p10)
}
0x3a84   : > { %s10354_s2 = scalar_lea.hbm %s11965_s15, 128  ;;  %s10358_s9 = scalar_lea.hbm %s10750_s3, 256 }
0x3a85   : > { %p10355_p12 = scmp.ne.s32.totalorder %s11965_s15, %s10354_s2  ;;  %p10359_p3 = scmp.lt.u32.totalorder %s11965_s15, %s10750_s3 }
0x3a86   : > { %p10360_p4 = scmp.lt.u32.totalorder %s10358_s9, %s10354_s2  ;;  %p10362_p8 = scmp.lt.u32.totalorder %s10354_s2, %s11965_s15 }
0x3a87   : > { %p10356_p1 = pnand %p10355_p12, %p12184_p11 }
0x3a88   : > { %p10361_p7 = por %p10360_p4, %p10359_p3 }
0x3a89   : > { %p10357_p2 = pneg %p10356_p1 }
0x3a8a   : > { %p10363_p13 = por %p10362_p8, %p10361_p7 }
0x3a8c   : > { %p10364_p6 = pnand %p10363_p13, %p10357_p2 }
0x3a8e   : > { %10367 = shalt.err (!%p10364_p6)
}
0x3a8f   : > { %9270 = dma.vmem_to_hbm [thread:$0]  (%p12184_p11), %s11967_s0, 128, %s11965_s15, %s7887_s4  }
0x3a90 PF: > { %s12185_s5 = sld [smem:[#allocation87_spill]]  ;;  %s12186_s18 = sld [smem:[#allocation85_spill]] }
0x3a91   : > { %s12187_s1 = sld [smem:[#allocation90_spill]] }
0x3a96   : > { %p9392_p5 = scmp.ge.s32.totalorder %s12185_s5, 2  ;;  %s7912_s22 = sand.u32 1, %s12186_s18  }
0x3a97   : > { %p12188_p0 = scmp.ne.s32.totalorder %s12187_s1, 0  ;;  %s7913_s10 = scalar_lea.sflag [#allocation4], %s7912_s22 }
0x3a99   : > { %p9343_p9 = pnand %p9392_p5, %p12188_p0 }
0x3a9b   : > { %10433 = dma.done.wait (!%p9343_p9), %s7913_s10, 128  }
0x3a9c   : > { %10435 = vsyncadd (!%p9343_p9), %s7913_s10, 4294967168  ;;  %s12189_s18 = sld [smem:[#allocation88_spill]]  ;;  %s12190_s2 = sld [smem:[#allocation86_spill]] }
0x3a9d   : > { %s12191_s0 = sld [smem:[#allocation89_spill]]  ;;  %s12192_s15 = smov %s10442_s16 }
0x3aa2   : > { %p107_p10 = scmp.ge.s32.totalorder %s12189_s18, 4   ;;  %s12193_s16 = smov %s12190_s2 }
0x3aa4   :  { %109 = sbr.rel (!%p107_p10) target bundleno = 93 (0x5d), region = 397 }
0x3aab   :  { %7918 = vsyncpa [#allocation3], 1 }
0x3aac   :  { %7920 = vsyncpa [#allocation3 + $0x1], 1 }
0x3aad   :  { %7921 = vsyncpa [#allocation6], 1 }
0x3aae   :  { %7922 = vsyncpa [#allocation9], 1 }
0x3aaf   :  { %7923 = vsyncpa [#allocation12], 1 }
0x3ab0   :  { %7924 = vsyncpa [#allocation15], 1 }
0x3ab1   :  { %7925 = vsyncpa [#allocation18], 1 }
0x3ab2   :  { %7926 = vsyncpa [#allocation21], 1 }
0x3ab3   :  { %7927 = vsyncpa [#allocation24], 1 }
0x3ab4   :  { %7928 = vsyncpa [#allocation27], 1 }
0x3ab5   :  { %7929 = vsyncpa [#allocation30], 1 }
0x3ab6   :  { %7930 = vsyncpa [#allocation33], 1 }
0x3ab7   :  { %7931 = vsyncpa [#allocation36], 1 }
0x3ab8   :  { %7932 = vsyncpa [#allocation4], 1 }
0x3ab9   :  { %7934 = vsyncpa [#allocation4 + $0x1], 1 }

</bundles_post_ra>
